<compile_context>
chip_gen: v6e
topology: v6e:2x2x1
jax: 0.10.0
libtpu: 0.0.40
codegen_flags: <defaults>
</compile_context>

<pallas_src>
import math

import jax
import jax.numpy as jnp
from jax import lax
from jax.experimental import pallas as pl
from jax.experimental.pallas import tpu as pltpu

# ---- KANLinear hyper-parameters (defaults of the PyTorch module) -------------
GRID_SIZE = 5
SPLINE_ORDER = 3
GRID_RANGE = (-1.0, 1.0)
NUM_COEF = GRID_SIZE + SPLINE_ORDER            # = 8   spline basis functions per input
GRID_PTS = GRID_SIZE + 2 * SPLINE_ORDER + 1    # = 12  knots in the grid buffer
MAX_P = GRID_PTS - 2                           # = 10  planes at recursion level 1

STRIP = 16  # batch rows per Cox-de Boor strip (one packed bf16 sublane group)


# ---- Pallas kernel -----------------------------------------------------------
def kan_linear_kernel(x_ref, knots_ref, rl_ref, rrn_ref, w_ref, out_ref, act_ref):
    """Grid = (batch_tiles, out_tiles); out_tiles is the inner ("arbitrary") axis.

    The fused activation act = [tanh(x) | B-spline bases (coef-major)] depends only
    on the batch tile, so it is built once per batch tile (j == 0), cached in a bf16
    VMEM scratch, and reused for every output tile.  The build runs on 16-row strips
    to keep vreg pressure low and writes each plane straight into its lane-aligned
    slice of the scratch (no concatenate temporary).
    """
    j = pl.program_id(1)
    in_features = x_ref.shape[1]

    @pl.when(j == 0)
    def _build_activation():
        n_strips = act_ref.shape[0] // STRIP

        def knot(p):                                   # lane-dense (1, IN) knot row
            return knots_ref[p:p + 1, :]

        def strip_body(s, carry):
            r0 = pl.multiple_of(s * STRIP, STRIP)
            rows = pl.ds(r0, STRIP)
            x = x_ref[rows, :]                         # (STRIP, IN) f32

            # x - knot(p): computed once, reused at every recursion level
            d = [x - knot(p) for p in range(GRID_PTS)]

            # degree-0 indicator planes 1_[knot(p) <= x < knot(p+1)]
            # (shared >= compares; strict upper bound matches the PyTorch reference)
            ge = [x >= knot(p) for p in range(GRID_PTS)]
            planes = [
                jnp.logical_and(ge[p], jnp.logical_not(ge[p + 1])).astype(x.dtype)
                for p in range(GRID_PTS - 1)
            ]

            # Cox-de Boor recursion; denominators are precomputed reciprocals
            # (right-hand ones pre-negated) -> no divides or negations here.
            for k in range(1, SPLINE_ORDER + 1):
                base = (k - 1) * MAX_P
                planes = [
                    d[p] * rl_ref[base + p:base + p + 1, :] * planes[p]
                    + d[p + k + 1] * rrn_ref[base + p:base + p + 1, :] * planes[p + 1]
                    for p in range(GRID_PTS - 1 - k)
                ]
            # planes: NUM_COEF lane-dense (STRIP, IN) basis planes

            # write directly into lane-aligned slices of the bf16 activation cache:
            # [tanh(x) | b_0 | ... | b_{NUM_COEF-1}]
            act_ref[rows, pl.ds(0, in_features)] = jnp.tanh(x).astype(act_ref.dtype)
            for c in range(NUM_COEF):
                act_ref[rows, pl.ds((c + 1) * in_features, in_features)] = (
                    planes[c].astype(act_ref.dtype))
            return carry

        lax.fori_loop(0, n_strips, strip_body, 0)

    # single fused MXU pass: (TB, K) @ (K, T_OUT), bf16 operands, f32 accumulation
    out_ref[...] = jnp.dot(act_ref[...], w_ref[...],
                           preferred_element_type=jnp.float32).astype(out_ref.dtype)


# ---- wrapper helpers ----------------------------------------------------------
def _round_up(v, m):
    return (v + m - 1) // m * m


def _cdiv(a, b):
    return (a + b - 1) // b


def _vmem_capacity_bytes(default=64 * 1024 * 1024):
    """Per-core VMEM capacity; conservative 64 MiB (v7x) fallback."""
    try:
        cap = getattr(pltpu.get_tpu_info(), "vmem_capacity_bytes", None)
        if cap:
            return int(cap)
    except Exception:
        pass
    return default


def _vmem_usage_bytes(tb, t_out, in_features, k_dim):
    """Rough VMEM footprint of one pipeline step (used to size the tiles)."""
    return (tb * k_dim * 2                     # bf16 activation cache (scratch)
            + 2 * k_dim * t_out * 2            # fused W, double-buffered (bf16)
            + 2 * tb * in_features * 4         # x tile, double-buffered (f32)
            + 2 * tb * t_out * 4               # out tile, double-buffered (f32)
            + 2 * 80 * in_features * 4         # knots + reciprocal tables
            + (2 << 20))                       # slack for strip temporaries


def _choose_tiles(batch, out_features, in_features, block_b, block_o, vmem_budget):
    k_dim = in_features * (1 + NUM_COEF)
    b_rounded = _round_up(max(batch, 1), STRIP)

    # Batch tile: big (>= 256-512 rows) so the re-streamed (K, t_out) weight block is
    # amortized past the HBM/MXU crossover, but split into >= 2 tiles when there is
    # enough work so the "parallel" batch axis can feed both TensorCores (v7x megacore).
    n_btiles = _cdiv(b_rounded, max(block_b, STRIP))
    if n_btiles < 2 and b_rounded >= 2 * 256:
        n_btiles = 2
    tb = _round_up(_cdiv(b_rounded, n_btiles), STRIP)

    # Output tile: lane-dense multiple of 128; 256 default feeds the 256x256 MXU.
    t_out = min(_round_up(max(block_o, 128), 128), _round_up(out_features, 128))

    # Shrink until the pipeline fits the per-core VMEM budget (v7x has only 64 MiB).
    while _vmem_usage_bytes(tb, t_out, in_features, k_dim) > vmem_budget:
        if t_out > 128:
            t_out = max(128, _round_up(t_out // 2, 128))
        elif tb > 128:
            tb = max(128, _round_up(tb // 2, STRIP))
        elif tb > STRIP:
            tb = max(STRIP, _round_up(tb // 2, STRIP))
        else:
            # TODO(synk): for very large in_features (K = 9*IN no longer fits even with
            # minimal tiles, roughly IN >~ 8k on v7x) the contraction axis should get a
            # third "arbitrary" grid dim with an f32 accumulator; not needed here.
            break
    return tb, t_out, k_dim


# ---- wrapper -------------------------------------------------------------------
def kan_linear(x, grid, base_weight, spline_weight, spline_scaler,
               *, block_b=512, block_o=256):
    """KANLinear forward (tanh base activation).

    x: (B, IN), grid: (IN, GRID_PTS), base_weight: (OUT, IN),
    spline_weight: (OUT, IN, NUM_COEF), spline_scaler: (OUT, IN) -> (B, OUT) f32.
    Fast path expects IN to be a multiple of 128 (lane-dense activation slices);
    other IN stay correct but use masked stores.
    """
    B, IN = x.shape
    OUT = base_weight.shape[0]

    # --- one-time weight prep in XLA: fold scaler, coef-major reorder, pre-transpose,
    #     fuse base + spline into a single (K, OUT) bf16 matrix ---
    scaled = spline_weight * spline_scaler[:, :, None]                 # (OUT, IN, NC)
    w_spline = jnp.transpose(scaled, (2, 1, 0)).reshape(NUM_COEF * IN, OUT)
    w_fused = jnp.concatenate(
        [base_weight.T.astype(jnp.float32), w_spline.astype(jnp.float32)], axis=0
    ).astype(jnp.bfloat16)                                             # (K, OUT) bf16

    # --- grid-only constants: lane-dense knot rows + reciprocal denominators,
    #     flattened to 2-D (row = (level-1)*MAX_P + p), right reciprocals negated ---
    knots = grid.T.astype(jnp.float32)                                 # (GRID_PTS, IN)
    rl = jnp.zeros((SPLINE_ORDER * MAX_P, IN), jnp.float32)
    rrn = jnp.zeros((SPLINE_ORDER * MAX_P, IN), jnp.float32)
    for k in range(1, SPLINE_ORDER + 1):
        n_p = GRID_PTS - 1 - k
        inv_l = 1.0 / (grid[:, k:k + n_p] - grid[:, 0:n_p])            # (IN, n_p)
        inv_r = -1.0 / (grid[:, k + 1:k + 1 + n_p] - grid[:, 1:1 + n_p])
        base = (k - 1) * MAX_P
        rl = rl.at[base:base + n_p, :].set(inv_l.T)
        rrn = rrn.at[base:base + n_p, :].set(inv_r.T)

    # --- tiling: derived from the per-core VMEM budget (~75% of capacity) ---
    vmem_cap = _vmem_capacity_bytes()
    vmem_budget = (vmem_cap * 3) // 4
    tb, t_out, K = _choose_tiles(B, OUT, IN, block_b, block_o, vmem_budget)
    b_pad = _round_up(B, tb)
    out_pad = _round_up(OUT, t_out)

    x_p = x.astype(jnp.float32)
    if b_pad != B:
        x_p = jnp.pad(x_p, ((0, b_pad - B), (0, 0)))
    w_p = w_fused
    if out_pad != OUT:
        w_p = jnp.pad(w_p, ((0, 0), (0, out_pad - OUT)))

    grid_dims = (b_pad // tb, out_pad // t_out)
    n_btiles = grid_dims[0]

    vmem_limit = int(min(vmem_cap - (4 << 20),
                         max(_vmem_usage_bytes(tb, t_out, IN, K) + (8 << 20),
                             32 << 20)))

    cost = pl.CostEstimate(
        flops=2 * b_pad * K * out_pad + 80 * b_pad * IN,
        transcendentals=b_pad * IN,                                    # tanh
        # honest traffic: fused W is re-streamed once per batch tile (index_map (0, j))
        bytes_accessed=(x_p.size * 4
                        + n_btiles * K * out_pad * 2
                        + b_pad * out_pad * 4
                        + 80 * IN * 4),
    )

    out = pl.pallas_call(
        kan_linear_kernel,
        out_shape=jax.ShapeDtypeStruct((b_pad, out_pad), jnp.float32),
        grid_spec=pltpu.PrefetchScalarGridSpec(
            num_scalar_prefetch=0,
            grid=grid_dims,
            in_specs=[
                pl.BlockSpec((tb, IN), lambda i, j: (i, 0)),                    # x
                pl.BlockSpec((GRID_PTS, IN), lambda i, j: (0, 0)),              # knots
                pl.BlockSpec((SPLINE_ORDER * MAX_P, IN), lambda i, j: (0, 0)),  # 1/left
                pl.BlockSpec((SPLINE_ORDER * MAX_P, IN), lambda i, j: (0, 0)),  # -1/right
                pl.BlockSpec((K, t_out), lambda i, j: (0, j)),                  # fused W
            ],
            out_specs=pl.BlockSpec((tb, t_out), lambda i, j: (i, j)),
            scratch_shapes=[pltpu.VMEM((tb, K), jnp.bfloat16)],                 # act cache
        ),
        compiler_params=pltpu.CompilerParams(
            # batch tiles are independent -> shard across TensorCores (v7x megacore);
            # out tiles reuse the cached activation -> keep in-order.
            dimension_semantics=("parallel", "arbitrary"),
            vmem_limit_bytes=vmem_limit,
        ),
        cost_estimate=cost,
    )(x_p, knots, rl, rrn, w_p)

    return out[:B, :OUT]


# ---- pure-JAX reference (exact f32 transcription of the PyTorch forward) ------
def ref_forward(x, grid, base_weight, spline_weight, spline_scaler):
    xe = x[:, :, None]
    g = grid[None, :, :]
    bases = jnp.logical_and(xe >= g[:, :, :-1], xe < g[:, :, 1:]).astype(x.dtype)
    for k in range(1, SPLINE_ORDER + 1):
        left = (xe - g[:, :, : -(k + 1)]) / (g[:, :, k:-1] - g[:, :, : -(k + 1)])
        right = (g[:, :, k + 1:] - xe) / (g[:, :, k + 1:] - g[:, :, 1:-k])
        bases = left * bases[:, :, :-1] + right * bases[:, :, 1:]
    base_out = jnp.dot(jnp.tanh(x), base_weight.T,
                       precision=jax.lax.Precision.HIGHEST)   # module default: Tanh
    scaled_w = spline_weight * spline_scaler[:, :, None]
    spline_out = jnp.dot(bases.reshape(x.shape[0], -1),
                         scaled_w.reshape(base_weight.shape[0], -1).T,
                         precision=jax.lax.Precision.HIGHEST)
    return base_out + spline_out


# ---- main ---------------------------------------------------------------------
if __name__ == "__main__":
    # Small but non-trivial: with the default tiling (block_b=512, block_o=256) this
    # gives a 2x2 tile grid (two "parallel" batch tiles of 320 rows, two output
    # tiles) plus output-column padding.  IN is a multiple of 128 so the basis
    # planes and activation slices are fully lane-dense.
    B, IN_FEATURES, OUT_FEATURES = 640, 128, 384

    # grid buffer (exact formula from KANLinear.__init__)
    h = (GRID_RANGE[1] - GRID_RANGE[0]) / GRID_SIZE
    grid_1d = jnp.arange(-SPLINE_ORDER, GRID_SIZE + SPLINE_ORDER + 1,
                         dtype=jnp.float32) * h + GRID_RANGE[0]
    grid = jnp.broadcast_to(grid_1d, (IN_FEATURES, GRID_PTS)).astype(jnp.float32)

    # deterministic synthetic parameters with the torch module's shapes.
    # TODO(synk): torch init uses kaiming_normal_ + a curve2coeff lstsq solve for
    # spline_weight; here we use deterministic scaled normals of identical shapes.
    key = jax.random.PRNGKey(0)
    kx, kb, ks, kc = jax.random.split(key, 4)
    x = jax.random.uniform(kx, (B, IN_FEATURES), jnp.float32, -1.0, 1.0)
    base_weight = (jax.random.normal(kb, (OUT_FEATURES, IN_FEATURES), jnp.float32)
                   * math.sqrt(2.0 / IN_FEATURES))
    spline_weight = (jax.random.normal(ks, (OUT_FEATURES, IN_FEATURES, NUM_COEF),
                                       jnp.float32) * 0.1)
    spline_scaler = (jax.random.normal(kc, (OUT_FEATURES, IN_FEATURES), jnp.float32)
                     * math.sqrt(2.0 / IN_FEATURES))

    out = jax.jit(kan_linear)(x, grid, base_weight, spline_weight, spline_scaler)
    jax.block_until_ready(out)

    ref = ref_forward(x, grid, base_weight, spline_weight, spline_scaler)
    assert out.shape == (B, OUT_FEATURES)
    max_err = float(jnp.max(jnp.abs(out - ref)))
    # bf16 MXU operands -> relaxed tolerance vs the f32 reference
    assert jnp.allclose(out, ref, atol=2e-2, rtol=2e-2), (
        f"mismatch vs reference (max abs err {max_err})")

    print("KERNEL_OK")
</pallas_src>

<mosaic_0001>
module attributes {stable_mosaic.version = 11 : i64} {
  func.func @kan_linear_kernel(%arg0: i32, %arg1: i32, %arg2: memref<320x128xf32, #tpu.memory_space<vmem>>, %arg3: memref<12x128xf32, #tpu.memory_space<vmem>>, %arg4: memref<30x128xf32, #tpu.memory_space<vmem>>, %arg5: memref<30x128xf32, #tpu.memory_space<vmem>>, %arg6: memref<1152x256xbf16, #tpu.memory_space<vmem>>, %arg7: memref<320x256xf32, #tpu.memory_space<vmem>>, %arg8: memref<320x1152xbf16, #tpu.memory_space<vmem>>) attributes {dimension_semantics = [#tpu.dimension_semantics<parallel>, #tpu.dimension_semantics<arbitrary>], iteration_bounds = array<i64: 2, 2>, scalar_prefetch = 0 : i64, scratch_operands = 1 : i64, tpu.core_type = #tpu.core_type<tc>, window_params = [{transform_indices = @transform_0, window_bounds = array<i64: 320, 128>}, {pipeline_mode = #tpu.pipeline_mode<synchronous>, transform_indices = @transform_1, window_bounds = array<i64: 12, 128>}, {pipeline_mode = #tpu.pipeline_mode<synchronous>, transform_indices = @transform_2, window_bounds = array<i64: 30, 128>}, {pipeline_mode = #tpu.pipeline_mode<synchronous>, transform_indices = @transform_3, window_bounds = array<i64: 30, 128>}, {transform_indices = @transform_4, window_bounds = array<i64: 1152, 256>}, {transform_indices = @transform_5, window_bounds = array<i64: 320, 256>}]} {
    %c0_i32 = arith.constant 0 : i32
    %0 = arith.cmpi eq, %arg1, %c0_i32 : i32
    %1 = arith.extui %0 : i1 to i32
    %c0_i32_0 = arith.constant 0 : i32
    %2 = arith.cmpi ne, %1, %c0_i32_0 : i32
    scf.if %2 {
      %c0_i32_6 = arith.constant 0 : i32
      %c20_i32 = arith.constant 20 : i32
      %7 = arith.addi %c0_i32_6, %c20_i32 : i32
      %c1_i32 = arith.constant 1 : i32
      scf.for %arg9 = %c0_i32_6 to %7 step %c1_i32  : i32 {
        %c16_i32 = arith.constant 16 : i32
        %8 = arith.muli %arg9, %c16_i32 : i32
        %9 = tpu.assume_multiple %8, 16 : i32
        %10 = arith.index_cast %9 : i32 to index
        %c0_8 = arith.constant 0 : index
        %11 = vector.load %arg2[%10, %c0_8] : memref<320x128xf32, #tpu.memory_space<vmem>>, vector<16x128xf32>
        %c0_9 = arith.constant 0 : index
        %c0_10 = arith.constant 0 : index
        %12 = vector.load %arg3[%c0_9, %c0_10] : memref<12x128xf32, #tpu.memory_space<vmem>>, vector<1x128xf32>
        %13 = vector.broadcast %12 : vector<1x128xf32> to vector<16x128xf32>
        %14 = arith.subf %11, %13 : vector<16x128xf32>
        %c1 = arith.constant 1 : index
        %c0_11 = arith.constant 0 : index
        %15 = vector.load %arg3[%c1, %c0_11] : memref<12x128xf32, #tpu.memory_space<vmem>>, vector<1x128xf32>
        %16 = vector.broadcast %15 : vector<1x128xf32> to vector<16x128xf32>
        %17 = arith.subf %11, %16 : vector<16x128xf32>
        %c2 = arith.constant 2 : index
        %c0_12 = arith.constant 0 : index
        %18 = vector.load %arg3[%c2, %c0_12] : memref<12x128xf32, #tpu.memory_space<vmem>>, vector<1x128xf32>
        %19 = vector.broadcast %18 : vector<1x128xf32> to vector<16x128xf32>
        %20 = arith.subf %11, %19 : vector<16x128xf32>
        %c3 = arith.constant 3 : index
        %c0_13 = arith.constant 0 : index
        %21 = vector.load %arg3[%c3, %c0_13] : memref<12x128xf32, #tpu.memory_space<vmem>>, vector<1x128xf32>
        %22 = vector.broadcast %21 : vector<1x128xf32> to vector<16x128xf32>
        %23 = arith.subf %11, %22 : vector<16x128xf32>
        %c4 = arith.constant 4 : index
        %c0_14 = arith.constant 0 : index
        %24 = vector.load %arg3[%c4, %c0_14] : memref<12x128xf32, #tpu.memory_space<vmem>>, vector<1x128xf32>
        %25 = vector.broadcast %24 : vector<1x128xf32> to vector<16x128xf32>
        %26 = arith.subf %11, %25 : vector<16x128xf32>
        %c5 = arith.constant 5 : index
        %c0_15 = arith.constant 0 : index
        %27 = vector.load %arg3[%c5, %c0_15] : memref<12x128xf32, #tpu.memory_space<vmem>>, vector<1x128xf32>
        %28 = vector.broadcast %27 : vector<1x128xf32> to vector<16x128xf32>
        %29 = arith.subf %11, %28 : vector<16x128xf32>
        %c6 = arith.constant 6 : index
        %c0_16 = arith.constant 0 : index
        %30 = vector.load %arg3[%c6, %c0_16] : memref<12x128xf32, #tpu.memory_space<vmem>>, vector<1x128xf32>
        %31 = vector.broadcast %30 : vector<1x128xf32> to vector<16x128xf32>
        %32 = arith.subf %11, %31 : vector<16x128xf32>
        %c7 = arith.constant 7 : index
        %c0_17 = arith.constant 0 : index
        %33 = vector.load %arg3[%c7, %c0_17] : memref<12x128xf32, #tpu.memory_space<vmem>>, vector<1x128xf32>
        %34 = vector.broadcast %33 : vector<1x128xf32> to vector<16x128xf32>
        %35 = arith.subf %11, %34 : vector<16x128xf32>
        %c8 = arith.constant 8 : index
        %c0_18 = arith.constant 0 : index
        %36 = vector.load %arg3[%c8, %c0_18] : memref<12x128xf32, #tpu.memory_space<vmem>>, vector<1x128xf32>
        %37 = vector.broadcast %36 : vector<1x128xf32> to vector<16x128xf32>
        %38 = arith.subf %11, %37 : vector<16x128xf32>
        %c9 = arith.constant 9 : index
        %c0_19 = arith.constant 0 : index
        %39 = vector.load %arg3[%c9, %c0_19] : memref<12x128xf32, #tpu.memory_space<vmem>>, vector<1x128xf32>
        %40 = vector.broadcast %39 : vector<1x128xf32> to vector<16x128xf32>
        %41 = arith.subf %11, %40 : vector<16x128xf32>
        %c10 = arith.constant 10 : index
        %c0_20 = arith.constant 0 : index
        %42 = vector.load %arg3[%c10, %c0_20] : memref<12x128xf32, #tpu.memory_space<vmem>>, vector<1x128xf32>
        %43 = vector.broadcast %42 : vector<1x128xf32> to vector<16x128xf32>
        %44 = arith.subf %11, %43 : vector<16x128xf32>
        %c11 = arith.constant 11 : index
        %c0_21 = arith.constant 0 : index
        %45 = vector.load %arg3[%c11, %c0_21] : memref<12x128xf32, #tpu.memory_space<vmem>>, vector<1x128xf32>
        %46 = vector.broadcast %45 : vector<1x128xf32> to vector<16x128xf32>
        %47 = arith.subf %11, %46 : vector<16x128xf32>
        %c0_22 = arith.constant 0 : index
        %c0_23 = arith.constant 0 : index
        %48 = vector.load %arg3[%c0_22, %c0_23] : memref<12x128xf32, #tpu.memory_space<vmem>>, vector<1x128xf32>
        %49 = vector.broadcast %48 : vector<1x128xf32> to vector<16x128xf32>
        %50 = arith.cmpf oge, %11, %49 : vector<16x128xf32>
        %c1_24 = arith.constant 1 : index
        %c0_25 = arith.constant 0 : index
        %51 = vector.load %arg3[%c1_24, %c0_25] : memref<12x128xf32, #tpu.memory_space<vmem>>, vector<1x128xf32>
        %52 = vector.broadcast %51 : vector<1x128xf32> to vector<16x128xf32>
        %53 = arith.cmpf oge, %11, %52 : vector<16x128xf32>
        %c2_26 = arith.constant 2 : index
        %c0_27 = arith.constant 0 : index
        %54 = vector.load %arg3[%c2_26, %c0_27] : memref<12x128xf32, #tpu.memory_space<vmem>>, vector<1x128xf32>
        %55 = vector.broadcast %54 : vector<1x128xf32> to vector<16x128xf32>
        %56 = arith.cmpf oge, %11, %55 : vector<16x128xf32>
        %c3_28 = arith.constant 3 : index
        %c0_29 = arith.constant 0 : index
        %57 = vector.load %arg3[%c3_28, %c0_29] : memref<12x128xf32, #tpu.memory_space<vmem>>, vector<1x128xf32>
        %58 = vector.broadcast %57 : vector<1x128xf32> to vector<16x128xf32>
        %59 = arith.cmpf oge, %11, %58 : vector<16x128xf32>
        %c4_30 = arith.constant 4 : index
        %c0_31 = arith.constant 0 : index
        %60 = vector.load %arg3[%c4_30, %c0_31] : memref<12x128xf32, #tpu.memory_space<vmem>>, vector<1x128xf32>
        %61 = vector.broadcast %60 : vector<1x128xf32> to vector<16x128xf32>
        %62 = arith.cmpf oge, %11, %61 : vector<16x128xf32>
        %c5_32 = arith.constant 5 : index
        %c0_33 = arith.constant 0 : index
        %63 = vector.load %arg3[%c5_32, %c0_33] : memref<12x128xf32, #tpu.memory_space<vmem>>, vector<1x128xf32>
        %64 = vector.broadcast %63 : vector<1x128xf32> to vector<16x128xf32>
        %65 = arith.cmpf oge, %11, %64 : vector<16x128xf32>
        %c6_34 = arith.constant 6 : index
        %c0_35 = arith.constant 0 : index
        %66 = vector.load %arg3[%c6_34, %c0_35] : memref<12x128xf32, #tpu.memory_space<vmem>>, vector<1x128xf32>
        %67 = vector.broadcast %66 : vector<1x128xf32> to vector<16x128xf32>
        %68 = arith.cmpf oge, %11, %67 : vector<16x128xf32>
        %c7_36 = arith.constant 7 : index
        %c0_37 = arith.constant 0 : index
        %69 = vector.load %arg3[%c7_36, %c0_37] : memref<12x128xf32, #tpu.memory_space<vmem>>, vector<1x128xf32>
        %70 = vector.broadcast %69 : vector<1x128xf32> to vector<16x128xf32>
        %71 = arith.cmpf oge, %11, %70 : vector<16x128xf32>
        %c8_38 = arith.constant 8 : index
        %c0_39 = arith.constant 0 : index
        %72 = vector.load %arg3[%c8_38, %c0_39] : memref<12x128xf32, #tpu.memory_space<vmem>>, vector<1x128xf32>
        %73 = vector.broadcast %72 : vector<1x128xf32> to vector<16x128xf32>
        %74 = arith.cmpf oge, %11, %73 : vector<16x128xf32>
        %c9_40 = arith.constant 9 : index
        %c0_41 = arith.constant 0 : index
        %75 = vector.load %arg3[%c9_40, %c0_41] : memref<12x128xf32, #tpu.memory_space<vmem>>, vector<1x128xf32>
        %76 = vector.broadcast %75 : vector<1x128xf32> to vector<16x128xf32>
        %77 = arith.cmpf oge, %11, %76 : vector<16x128xf32>
        %c10_42 = arith.constant 10 : index
        %c0_43 = arith.constant 0 : index
        %78 = vector.load %arg3[%c10_42, %c0_43] : memref<12x128xf32, #tpu.memory_space<vmem>>, vector<1x128xf32>
        %79 = vector.broadcast %78 : vector<1x128xf32> to vector<16x128xf32>
        %80 = arith.cmpf oge, %11, %79 : vector<16x128xf32>
        %c11_44 = arith.constant 11 : index
        %c0_45 = arith.constant 0 : index
        %81 = vector.load %arg3[%c11_44, %c0_45] : memref<12x128xf32, #tpu.memory_space<vmem>>, vector<1x128xf32>
        %82 = vector.broadcast %81 : vector<1x128xf32> to vector<16x128xf32>
        %83 = arith.cmpf oge, %11, %82 : vector<16x128xf32>
        %cst_46 = arith.constant dense<true> : vector<16x128xi1>
        %84 = arith.xori %53, %cst_46 : vector<16x128xi1>
        %85 = arith.andi %50, %84 : vector<16x128xi1>
        %86 = arith.extui %85 : vector<16x128xi1> to vector<16x128xi32>
        %87 = arith.sitofp %86 : vector<16x128xi32> to vector<16x128xf32>
        %cst_47 = arith.constant dense<true> : vector<16x128xi1>
        %88 = arith.xori %56, %cst_47 : vector<16x128xi1>
        %89 = arith.andi %53, %88 : vector<16x128xi1>
        %90 = arith.extui %89 : vector<16x128xi1> to vector<16x128xi32>
        %91 = arith.sitofp %90 : vector<16x128xi32> to vector<16x128xf32>
        %cst_48 = arith.constant dense<true> : vector<16x128xi1>
        %92 = arith.xori %59, %cst_48 : vector<16x128xi1>
        %93 = arith.andi %56, %92 : vector<16x128xi1>
        %94 = arith.extui %93 : vector<16x128xi1> to vector<16x128xi32>
        %95 = arith.sitofp %94 : vector<16x128xi32> to vector<16x128xf32>
        %cst_49 = arith.constant dense<true> : vector<16x128xi1>
        %96 = arith.xori %62, %cst_49 : vector<16x128xi1>
        %97 = arith.andi %59, %96 : vector<16x128xi1>
        %98 = arith.extui %97 : vector<16x128xi1> to vector<16x128xi32>
        %99 = arith.sitofp %98 : vector<16x128xi32> to vector<16x128xf32>
        %cst_50 = arith.constant dense<true> : vector<16x128xi1>
        %100 = arith.xori %65, %cst_50 : vector<16x128xi1>
        %101 = arith.andi %62, %100 : vector<16x128xi1>
        %102 = arith.extui %101 : vector<16x128xi1> to vector<16x128xi32>
        %103 = arith.sitofp %102 : vector<16x128xi32> to vector<16x128xf32>
        %cst_51 = arith.constant dense<true> : vector<16x128xi1>
        %104 = arith.xori %68, %cst_51 : vector<16x128xi1>
        %105 = arith.andi %65, %104 : vector<16x128xi1>
        %106 = arith.extui %105 : vector<16x128xi1> to vector<16x128xi32>
        %107 = arith.sitofp %106 : vector<16x128xi32> to vector<16x128xf32>
        %cst_52 = arith.constant dense<true> : vector<16x128xi1>
        %108 = arith.xori %71, %cst_52 : vector<16x128xi1>
        %109 = arith.andi %68, %108 : vector<16x128xi1>
        %110 = arith.extui %109 : vector<16x128xi1> to vector<16x128xi32>
        %111 = arith.sitofp %110 : vector<16x128xi32> to vector<16x128xf32>
        %cst_53 = arith.constant dense<true> : vector<16x128xi1>
        %112 = arith.xori %74, %cst_53 : vector<16x128xi1>
        %113 = arith.andi %71, %112 : vector<16x128xi1>
        %114 = arith.extui %113 : vector<16x128xi1> to vector<16x128xi32>
        %115 = arith.sitofp %114 : vector<16x128xi32> to vector<16x128xf32>
        %cst_54 = arith.constant dense<true> : vector<16x128xi1>
        %116 = arith.xori %77, %cst_54 : vector<16x128xi1>
        %117 = arith.andi %74, %116 : vector<16x128xi1>
        %118 = arith.extui %117 : vector<16x128xi1> to vector<16x128xi32>
        %119 = arith.sitofp %118 : vector<16x128xi32> to vector<16x128xf32>
        %cst_55 = arith.constant dense<true> : vector<16x128xi1>
        %120 = arith.xori %80, %cst_55 : vector<16x128xi1>
        %121 = arith.andi %77, %120 : vector<16x128xi1>
        %122 = arith.extui %121 : vector<16x128xi1> to vector<16x128xi32>
        %123 = arith.sitofp %122 : vector<16x128xi32> to vector<16x128xf32>
        %cst_56 = arith.constant dense<true> : vector<16x128xi1>
        %124 = arith.xori %83, %cst_56 : vector<16x128xi1>
        %125 = arith.andi %80, %124 : vector<16x128xi1>
        %126 = arith.extui %125 : vector<16x128xi1> to vector<16x128xi32>
        %127 = arith.sitofp %126 : vector<16x128xi32> to vector<16x128xf32>
        %c0_57 = arith.constant 0 : index
        %c0_58 = arith.constant 0 : index
        %128 = vector.load %arg4[%c0_57, %c0_58] : memref<30x128xf32, #tpu.memory_space<vmem>>, vector<1x128xf32>
        %129 = vector.broadcast %128 : vector<1x128xf32> to vector<16x128xf32>
        %130 = arith.mulf %14, %129 : vector<16x128xf32>
        %131 = arith.mulf %130, %87 : vector<16x128xf32>
        %c0_59 = arith.constant 0 : index
        %c0_60 = arith.constant 0 : index
        %132 = vector.load %arg5[%c0_59, %c0_60] : memref<30x128xf32, #tpu.memory_space<vmem>>, vector<1x128xf32>
        %133 = vector.broadcast %132 : vector<1x128xf32> to vector<16x128xf32>
        %134 = arith.mulf %20, %133 : vector<16x128xf32>
        %135 = arith.mulf %134, %91 : vector<16x128xf32>
        %136 = arith.addf %131, %135 : vector<16x128xf32>
        %c1_61 = arith.constant 1 : index
        %c0_62 = arith.constant 0 : index
        %137 = vector.load %arg4[%c1_61, %c0_62] : memref<30x128xf32, #tpu.memory_space<vmem>>, vector<1x128xf32>
        %138 = vector.broadcast %137 : vector<1x128xf32> to vector<16x128xf32>
        %139 = arith.mulf %17, %138 : vector<16x128xf32>
        %140 = arith.mulf %139, %91 : vector<16x128xf32>
        %c1_63 = arith.constant 1 : index
        %c0_64 = arith.constant 0 : index
        %141 = vector.load %arg5[%c1_63, %c0_64] : memref<30x128xf32, #tpu.memory_space<vmem>>, vector<1x128xf32>
        %142 = vector.broadcast %141 : vector<1x128xf32> to vector<16x128xf32>
        %143 = arith.mulf %23, %142 : vector<16x128xf32>
        %144 = arith.mulf %143, %95 : vector<16x128xf32>
        %145 = arith.addf %140, %144 : vector<16x128xf32>
        %c2_65 = arith.constant 2 : index
        %c0_66 = arith.constant 0 : index
        %146 = vector.load %arg4[%c2_65, %c0_66] : memref<30x128xf32, #tpu.memory_space<vmem>>, vector<1x128xf32>
        %147 = vector.broadcast %146 : vector<1x128xf32> to vector<16x128xf32>
        %148 = arith.mulf %20, %147 : vector<16x128xf32>
        %149 = arith.mulf %148, %95 : vector<16x128xf32>
        %c2_67 = arith.constant 2 : index
        %c0_68 = arith.constant 0 : index
        %150 = vector.load %arg5[%c2_67, %c0_68] : memref<30x128xf32, #tpu.memory_space<vmem>>, vector<1x128xf32>
        %151 = vector.broadcast %150 : vector<1x128xf32> to vector<16x128xf32>
        %152 = arith.mulf %26, %151 : vector<16x128xf32>
        %153 = arith.mulf %152, %99 : vector<16x128xf32>
        %154 = arith.addf %149, %153 : vector<16x128xf32>
        %c3_69 = arith.constant 3 : index
        %c0_70 = arith.constant 0 : index
        %155 = vector.load %arg4[%c3_69, %c0_70] : memref<30x128xf32, #tpu.memory_space<vmem>>, vector<1x128xf32>
        %156 = vector.broadcast %155 : vector<1x128xf32> to vector<16x128xf32>
        %157 = arith.mulf %23, %156 : vector<16x128xf32>
        %158 = arith.mulf %157, %99 : vector<16x128xf32>
        %c3_71 = arith.constant 3 : index
        %c0_72 = arith.constant 0 : index
        %159 = vector.load %arg5[%c3_71, %c0_72] : memref<30x128xf32, #tpu.memory_space<vmem>>, vector<1x128xf32>
        %160 = vector.broadcast %159 : vector<1x128xf32> to vector<16x128xf32>
        %161 = arith.mulf %29, %160 : vector<16x128xf32>
        %162 = arith.mulf %161, %103 : vector<16x128xf32>
        %163 = arith.addf %158, %162 : vector<16x128xf32>
        %c4_73 = arith.constant 4 : index
        %c0_74 = arith.constant 0 : index
        %164 = vector.load %arg4[%c4_73, %c0_74] : memref<30x128xf32, #tpu.memory_space<vmem>>, vector<1x128xf32>
        %165 = vector.broadcast %164 : vector<1x128xf32> to vector<16x128xf32>
        %166 = arith.mulf %26, %165 : vector<16x128xf32>
        %167 = arith.mulf %166, %103 : vector<16x128xf32>
        %c4_75 = arith.constant 4 : index
        %c0_76 = arith.constant 0 : index
        %168 = vector.load %arg5[%c4_75, %c0_76] : memref<30x128xf32, #tpu.memory_space<vmem>>, vector<1x128xf32>
        %169 = vector.broadcast %168 : vector<1x128xf32> to vector<16x128xf32>
        %170 = arith.mulf %32, %169 : vector<16x128xf32>
        %171 = arith.mulf %170, %107 : vector<16x128xf32>
        %172 = arith.addf %167, %171 : vector<16x128xf32>
        %c5_77 = arith.constant 5 : index
        %c0_78 = arith.constant 0 : index
        %173 = vector.load %arg4[%c5_77, %c0_78] : memref<30x128xf32, #tpu.memory_space<vmem>>, vector<1x128xf32>
        %174 = vector.broadcast %173 : vector<1x128xf32> to vector<16x128xf32>
        %175 = arith.mulf %29, %174 : vector<16x128xf32>
        %176 = arith.mulf %175, %107 : vector<16x128xf32>
        %c5_79 = arith.constant 5 : index
        %c0_80 = arith.constant 0 : index
        %177 = vector.load %arg5[%c5_79, %c0_80] : memref<30x128xf32, #tpu.memory_space<vmem>>, vector<1x128xf32>
        %178 = vector.broadcast %177 : vector<1x128xf32> to vector<16x128xf32>
        %179 = arith.mulf %35, %178 : vector<16x128xf32>
        %180 = arith.mulf %179, %111 : vector<16x128xf32>
        %181 = arith.addf %176, %180 : vector<16x128xf32>
        %c6_81 = arith.constant 6 : index
        %c0_82 = arith.constant 0 : index
        %182 = vector.load %arg4[%c6_81, %c0_82] : memref<30x128xf32, #tpu.memory_space<vmem>>, vector<1x128xf32>
        %183 = vector.broadcast %182 : vector<1x128xf32> to vector<16x128xf32>
        %184 = arith.mulf %32, %183 : vector<16x128xf32>
        %185 = arith.mulf %184, %111 : vector<16x128xf32>
        %c6_83 = arith.constant 6 : index
        %c0_84 = arith.constant 0 : index
        %186 = vector.load %arg5[%c6_83, %c0_84] : memref<30x128xf32, #tpu.memory_space<vmem>>, vector<1x128xf32>
        %187 = vector.broadcast %186 : vector<1x128xf32> to vector<16x128xf32>
        %188 = arith.mulf %38, %187 : vector<16x128xf32>
        %189 = arith.mulf %188, %115 : vector<16x128xf32>
        %190 = arith.addf %185, %189 : vector<16x128xf32>
        %c7_85 = arith.constant 7 : index
        %c0_86 = arith.constant 0 : index
        %191 = vector.load %arg4[%c7_85, %c0_86] : memref<30x128xf32, #tpu.memory_space<vmem>>, vector<1x128xf32>
        %192 = vector.broadcast %191 : vector<1x128xf32> to vector<16x128xf32>
        %193 = arith.mulf %35, %192 : vector<16x128xf32>
        %194 = arith.mulf %193, %115 : vector<16x128xf32>
        %c7_87 = arith.constant 7 : index
        %c0_88 = arith.constant 0 : index
        %195 = vector.load %arg5[%c7_87, %c0_88] : memref<30x128xf32, #tpu.memory_space<vmem>>, vector<1x128xf32>
        %196 = vector.broadcast %195 : vector<1x128xf32> to vector<16x128xf32>
        %197 = arith.mulf %41, %196 : vector<16x128xf32>
        %198 = arith.mulf %197, %119 : vector<16x128xf32>
        %199 = arith.addf %194, %198 : vector<16x128xf32>
        %c8_89 = arith.constant 8 : index
        %c0_90 = arith.constant 0 : index
        %200 = vector.load %arg4[%c8_89, %c0_90] : memref<30x128xf32, #tpu.memory_space<vmem>>, vector<1x128xf32>
        %201 = vector.broadcast %200 : vector<1x128xf32> to vector<16x128xf32>
        %202 = arith.mulf %38, %201 : vector<16x128xf32>
        %203 = arith.mulf %202, %119 : vector<16x128xf32>
        %c8_91 = arith.constant 8 : index
        %c0_92 = arith.constant 0 : index
        %204 = vector.load %arg5[%c8_91, %c0_92] : memref<30x128xf32, #tpu.memory_space<vmem>>, vector<1x128xf32>
        %205 = vector.broadcast %204 : vector<1x128xf32> to vector<16x128xf32>
        %206 = arith.mulf %44, %205 : vector<16x128xf32>
        %207 = arith.mulf %206, %123 : vector<16x128xf32>
        %208 = arith.addf %203, %207 : vector<16x128xf32>
        %c9_93 = arith.constant 9 : index
        %c0_94 = arith.constant 0 : index
        %209 = vector.load %arg4[%c9_93, %c0_94] : memref<30x128xf32, #tpu.memory_space<vmem>>, vector<1x128xf32>
        %210 = vector.broadcast %209 : vector<1x128xf32> to vector<16x128xf32>
        %211 = arith.mulf %41, %210 : vector<16x128xf32>
        %212 = arith.mulf %211, %123 : vector<16x128xf32>
        %c9_95 = arith.constant 9 : index
        %c0_96 = arith.constant 0 : index
        %213 = vector.load %arg5[%c9_95, %c0_96] : memref<30x128xf32, #tpu.memory_space<vmem>>, vector<1x128xf32>
        %214 = vector.broadcast %213 : vector<1x128xf32> to vector<16x128xf32>
        %215 = arith.mulf %47, %214 : vector<16x128xf32>
        %216 = arith.mulf %215, %127 : vector<16x128xf32>
        %217 = arith.addf %212, %216 : vector<16x128xf32>
        %c10_97 = arith.constant 10 : index
        %c0_98 = arith.constant 0 : index
        %218 = vector.load %arg4[%c10_97, %c0_98] : memref<30x128xf32, #tpu.memory_space<vmem>>, vector<1x128xf32>
        %219 = vector.broadcast %218 : vector<1x128xf32> to vector<16x128xf32>
        %220 = arith.mulf %14, %219 : vector<16x128xf32>
        %221 = arith.mulf %220, %136 : vector<16x128xf32>
        %c10_99 = arith.constant 10 : index
        %c0_100 = arith.constant 0 : index
        %222 = vector.load %arg5[%c10_99, %c0_100] : memref<30x128xf32, #tpu.memory_space<vmem>>, vector<1x128xf32>
        %223 = vector.broadcast %222 : vector<1x128xf32> to vector<16x128xf32>
        %224 = arith.mulf %23, %223 : vector<16x128xf32>
        %225 = arith.mulf %224, %145 : vector<16x128xf32>
        %226 = arith.addf %221, %225 : vector<16x128xf32>
        %c11_101 = arith.constant 11 : index
        %c0_102 = arith.constant 0 : index
        %227 = vector.load %arg4[%c11_101, %c0_102] : memref<30x128xf32, #tpu.memory_space<vmem>>, vector<1x128xf32>
        %228 = vector.broadcast %227 : vector<1x128xf32> to vector<16x128xf32>
        %229 = arith.mulf %17, %228 : vector<16x128xf32>
        %230 = arith.mulf %229, %145 : vector<16x128xf32>
        %c11_103 = arith.constant 11 : index
        %c0_104 = arith.constant 0 : index
        %231 = vector.load %arg5[%c11_103, %c0_104] : memref<30x128xf32, #tpu.memory_space<vmem>>, vector<1x128xf32>
        %232 = vector.broadcast %231 : vector<1x128xf32> to vector<16x128xf32>
        %233 = arith.mulf %26, %232 : vector<16x128xf32>
        %234 = arith.mulf %233, %154 : vector<16x128xf32>
        %235 = arith.addf %230, %234 : vector<16x128xf32>
        %c12 = arith.constant 12 : index
        %c0_105 = arith.constant 0 : index
        %236 = vector.load %arg4[%c12, %c0_105] : memref<30x128xf32, #tpu.memory_space<vmem>>, vector<1x128xf32>
        %237 = vector.broadcast %236 : vector<1x128xf32> to vector<16x128xf32>
        %238 = arith.mulf %20, %237 : vector<16x128xf32>
        %239 = arith.mulf %238, %154 : vector<16x128xf32>
        %c12_106 = arith.constant 12 : index
        %c0_107 = arith.constant 0 : index
        %240 = vector.load %arg5[%c12_106, %c0_107] : memref<30x128xf32, #tpu.memory_space<vmem>>, vector<1x128xf32>
        %241 = vector.broadcast %240 : vector<1x128xf32> to vector<16x128xf32>
        %242 = arith.mulf %29, %241 : vector<16x128xf32>
        %243 = arith.mulf %242, %163 : vector<16x128xf32>
        %244 = arith.addf %239, %243 : vector<16x128xf32>
        %c13 = arith.constant 13 : index
        %c0_108 = arith.constant 0 : index
        %245 = vector.load %arg4[%c13, %c0_108] : memref<30x128xf32, #tpu.memory_space<vmem>>, vector<1x128xf32>
        %246 = vector.broadcast %245 : vector<1x128xf32> to vector<16x128xf32>
        %247 = arith.mulf %23, %246 : vector<16x128xf32>
        %248 = arith.mulf %247, %163 : vector<16x128xf32>
        %c13_109 = arith.constant 13 : index
        %c0_110 = arith.constant 0 : index
        %249 = vector.load %arg5[%c13_109, %c0_110] : memref<30x128xf32, #tpu.memory_space<vmem>>, vector<1x128xf32>
        %250 = vector.broadcast %249 : vector<1x128xf32> to vector<16x128xf32>
        %251 = arith.mulf %32, %250 : vector<16x128xf32>
        %252 = arith.mulf %251, %172 : vector<16x128xf32>
        %253 = arith.addf %248, %252 : vector<16x128xf32>
        %c14 = arith.constant 14 : index
        %c0_111 = arith.constant 0 : index
        %254 = vector.load %arg4[%c14, %c0_111] : memref<30x128xf32, #tpu.memory_space<vmem>>, vector<1x128xf32>
        %255 = vector.broadcast %254 : vector<1x128xf32> to vector<16x128xf32>
        %256 = arith.mulf %26, %255 : vector<16x128xf32>
        %257 = arith.mulf %256, %172 : vector<16x128xf32>
        %c14_112 = arith.constant 14 : index
        %c0_113 = arith.constant 0 : index
        %258 = vector.load %arg5[%c14_112, %c0_113] : memref<30x128xf32, #tpu.memory_space<vmem>>, vector<1x128xf32>
        %259 = vector.broadcast %258 : vector<1x128xf32> to vector<16x128xf32>
        %260 = arith.mulf %35, %259 : vector<16x128xf32>
        %261 = arith.mulf %260, %181 : vector<16x128xf32>
        %262 = arith.addf %257, %261 : vector<16x128xf32>
        %c15 = arith.constant 15 : index
        %c0_114 = arith.constant 0 : index
        %263 = vector.load %arg4[%c15, %c0_114] : memref<30x128xf32, #tpu.memory_space<vmem>>, vector<1x128xf32>
        %264 = vector.broadcast %263 : vector<1x128xf32> to vector<16x128xf32>
        %265 = arith.mulf %29, %264 : vector<16x128xf32>
        %266 = arith.mulf %265, %181 : vector<16x128xf32>
        %c15_115 = arith.constant 15 : index
        %c0_116 = arith.constant 0 : index
        %267 = vector.load %arg5[%c15_115, %c0_116] : memref<30x128xf32, #tpu.memory_space<vmem>>, vector<1x128xf32>
        %268 = vector.broadcast %267 : vector<1x128xf32> to vector<16x128xf32>
        %269 = arith.mulf %38, %268 : vector<16x128xf32>
        %270 = arith.mulf %269, %190 : vector<16x128xf32>
        %271 = arith.addf %266, %270 : vector<16x128xf32>
        %c16 = arith.constant 16 : index
        %c0_117 = arith.constant 0 : index
        %272 = vector.load %arg4[%c16, %c0_117] : memref<30x128xf32, #tpu.memory_space<vmem>>, vector<1x128xf32>
        %273 = vector.broadcast %272 : vector<1x128xf32> to vector<16x128xf32>
        %274 = arith.mulf %32, %273 : vector<16x128xf32>
        %275 = arith.mulf %274, %190 : vector<16x128xf32>
        %c16_118 = arith.constant 16 : index
        %c0_119 = arith.constant 0 : index
        %276 = vector.load %arg5[%c16_118, %c0_119] : memref<30x128xf32, #tpu.memory_space<vmem>>, vector<1x128xf32>
        %277 = vector.broadcast %276 : vector<1x128xf32> to vector<16x128xf32>
        %278 = arith.mulf %41, %277 : vector<16x128xf32>
        %279 = arith.mulf %278, %199 : vector<16x128xf32>
        %280 = arith.addf %275, %279 : vector<16x128xf32>
        %c17 = arith.constant 17 : index
        %c0_120 = arith.constant 0 : index
        %281 = vector.load %arg4[%c17, %c0_120] : memref<30x128xf32, #tpu.memory_space<vmem>>, vector<1x128xf32>
        %282 = vector.broadcast %281 : vector<1x128xf32> to vector<16x128xf32>
        %283 = arith.mulf %35, %282 : vector<16x128xf32>
        %284 = arith.mulf %283, %199 : vector<16x128xf32>
        %c17_121 = arith.constant 17 : index
        %c0_122 = arith.constant 0 : index
        %285 = vector.load %arg5[%c17_121, %c0_122] : memref<30x128xf32, #tpu.memory_space<vmem>>, vector<1x128xf32>
        %286 = vector.broadcast %285 : vector<1x128xf32> to vector<16x128xf32>
        %287 = arith.mulf %44, %286 : vector<16x128xf32>
        %288 = arith.mulf %287, %208 : vector<16x128xf32>
        %289 = arith.addf %284, %288 : vector<16x128xf32>
        %c18 = arith.constant 18 : index
        %c0_123 = arith.constant 0 : index
        %290 = vector.load %arg4[%c18, %c0_123] : memref<30x128xf32, #tpu.memory_space<vmem>>, vector<1x128xf32>
        %291 = vector.broadcast %290 : vector<1x128xf32> to vector<16x128xf32>
        %292 = arith.mulf %38, %291 : vector<16x128xf32>
        %293 = arith.mulf %292, %208 : vector<16x128xf32>
        %c18_124 = arith.constant 18 : index
        %c0_125 = arith.constant 0 : index
        %294 = vector.load %arg5[%c18_124, %c0_125] : memref<30x128xf32, #tpu.memory_space<vmem>>, vector<1x128xf32>
        %295 = vector.broadcast %294 : vector<1x128xf32> to vector<16x128xf32>
        %296 = arith.mulf %47, %295 : vector<16x128xf32>
        %297 = arith.mulf %296, %217 : vector<16x128xf32>
        %298 = arith.addf %293, %297 : vector<16x128xf32>
        %c20 = arith.constant 20 : index
        %c0_126 = arith.constant 0 : index
        %299 = vector.load %arg4[%c20, %c0_126] : memref<30x128xf32, #tpu.memory_space<vmem>>, vector<1x128xf32>
        %300 = vector.broadcast %299 : vector<1x128xf32> to vector<16x128xf32>
        %301 = arith.mulf %14, %300 : vector<16x128xf32>
        %302 = arith.mulf %301, %226 : vector<16x128xf32>
        %c20_127 = arith.constant 20 : index
        %c0_128 = arith.constant 0 : index
        %303 = vector.load %arg5[%c20_127, %c0_128] : memref<30x128xf32, #tpu.memory_space<vmem>>, vector<1x128xf32>
        %304 = vector.broadcast %303 : vector<1x128xf32> to vector<16x128xf32>
        %305 = arith.mulf %26, %304 : vector<16x128xf32>
        %306 = arith.mulf %305, %235 : vector<16x128xf32>
        %307 = arith.addf %302, %306 : vector<16x128xf32>
        %c21 = arith.constant 21 : index
        %c0_129 = arith.constant 0 : index
        %308 = vector.load %arg4[%c21, %c0_129] : memref<30x128xf32, #tpu.memory_space<vmem>>, vector<1x128xf32>
        %309 = vector.broadcast %308 : vector<1x128xf32> to vector<16x128xf32>
        %310 = arith.mulf %17, %309 : vector<16x128xf32>
        %311 = arith.mulf %310, %235 : vector<16x128xf32>
        %c21_130 = arith.constant 21 : index
        %c0_131 = arith.constant 0 : index
        %312 = vector.load %arg5[%c21_130, %c0_131] : memref<30x128xf32, #tpu.memory_space<vmem>>, vector<1x128xf32>
        %313 = vector.broadcast %312 : vector<1x128xf32> to vector<16x128xf32>
        %314 = arith.mulf %29, %313 : vector<16x128xf32>
        %315 = arith.mulf %314, %244 : vector<16x128xf32>
        %316 = arith.addf %311, %315 : vector<16x128xf32>
        %c22 = arith.constant 22 : index
        %c0_132 = arith.constant 0 : index
        %317 = vector.load %arg4[%c22, %c0_132] : memref<30x128xf32, #tpu.memory_space<vmem>>, vector<1x128xf32>
        %318 = vector.broadcast %317 : vector<1x128xf32> to vector<16x128xf32>
        %319 = arith.mulf %20, %318 : vector<16x128xf32>
        %320 = arith.mulf %319, %244 : vector<16x128xf32>
        %c22_133 = arith.constant 22 : index
        %c0_134 = arith.constant 0 : index
        %321 = vector.load %arg5[%c22_133, %c0_134] : memref<30x128xf32, #tpu.memory_space<vmem>>, vector<1x128xf32>
        %322 = vector.broadcast %321 : vector<1x128xf32> to vector<16x128xf32>
        %323 = arith.mulf %32, %322 : vector<16x128xf32>
        %324 = arith.mulf %323, %253 : vector<16x128xf32>
        %325 = arith.addf %320, %324 : vector<16x128xf32>
        %c23 = arith.constant 23 : index
        %c0_135 = arith.constant 0 : index
        %326 = vector.load %arg4[%c23, %c0_135] : memref<30x128xf32, #tpu.memory_space<vmem>>, vector<1x128xf32>
        %327 = vector.broadcast %326 : vector<1x128xf32> to vector<16x128xf32>
        %328 = arith.mulf %23, %327 : vector<16x128xf32>
        %329 = arith.mulf %328, %253 : vector<16x128xf32>
        %c23_136 = arith.constant 23 : index
        %c0_137 = arith.constant 0 : index
        %330 = vector.load %arg5[%c23_136, %c0_137] : memref<30x128xf32, #tpu.memory_space<vmem>>, vector<1x128xf32>
        %331 = vector.broadcast %330 : vector<1x128xf32> to vector<16x128xf32>
        %332 = arith.mulf %35, %331 : vector<16x128xf32>
        %333 = arith.mulf %332, %262 : vector<16x128xf32>
        %334 = arith.addf %329, %333 : vector<16x128xf32>
        %c24 = arith.constant 24 : index
        %c0_138 = arith.constant 0 : index
        %335 = vector.load %arg4[%c24, %c0_138] : memref<30x128xf32, #tpu.memory_space<vmem>>, vector<1x128xf32>
        %336 = vector.broadcast %335 : vector<1x128xf32> to vector<16x128xf32>
        %337 = arith.mulf %26, %336 : vector<16x128xf32>
        %338 = arith.mulf %337, %262 : vector<16x128xf32>
        %c24_139 = arith.constant 24 : index
        %c0_140 = arith.constant 0 : index
        %339 = vector.load %arg5[%c24_139, %c0_140] : memref<30x128xf32, #tpu.memory_space<vmem>>, vector<1x128xf32>
        %340 = vector.broadcast %339 : vector<1x128xf32> to vector<16x128xf32>
        %341 = arith.mulf %38, %340 : vector<16x128xf32>
        %342 = arith.mulf %341, %271 : vector<16x128xf32>
        %343 = arith.addf %338, %342 : vector<16x128xf32>
        %c25 = arith.constant 25 : index
        %c0_141 = arith.constant 0 : index
        %344 = vector.load %arg4[%c25, %c0_141] : memref<30x128xf32, #tpu.memory_space<vmem>>, vector<1x128xf32>
        %345 = vector.broadcast %344 : vector<1x128xf32> to vector<16x128xf32>
        %346 = arith.mulf %29, %345 : vector<16x128xf32>
        %347 = arith.mulf %346, %271 : vector<16x128xf32>
        %c25_142 = arith.constant 25 : index
        %c0_143 = arith.constant 0 : index
        %348 = vector.load %arg5[%c25_142, %c0_143] : memref<30x128xf32, #tpu.memory_space<vmem>>, vector<1x128xf32>
        %349 = vector.broadcast %348 : vector<1x128xf32> to vector<16x128xf32>
        %350 = arith.mulf %41, %349 : vector<16x128xf32>
        %351 = arith.mulf %350, %280 : vector<16x128xf32>
        %352 = arith.addf %347, %351 : vector<16x128xf32>
        %c26 = arith.constant 26 : index
        %c0_144 = arith.constant 0 : index
        %353 = vector.load %arg4[%c26, %c0_144] : memref<30x128xf32, #tpu.memory_space<vmem>>, vector<1x128xf32>
        %354 = vector.broadcast %353 : vector<1x128xf32> to vector<16x128xf32>
        %355 = arith.mulf %32, %354 : vector<16x128xf32>
        %356 = arith.mulf %355, %280 : vector<16x128xf32>
        %c26_145 = arith.constant 26 : index
        %c0_146 = arith.constant 0 : index
        %357 = vector.load %arg5[%c26_145, %c0_146] : memref<30x128xf32, #tpu.memory_space<vmem>>, vector<1x128xf32>
        %358 = vector.broadcast %357 : vector<1x128xf32> to vector<16x128xf32>
        %359 = arith.mulf %44, %358 : vector<16x128xf32>
        %360 = arith.mulf %359, %289 : vector<16x128xf32>
        %361 = arith.addf %356, %360 : vector<16x128xf32>
        %c27 = arith.constant 27 : index
        %c0_147 = arith.constant 0 : index
        %362 = vector.load %arg4[%c27, %c0_147] : memref<30x128xf32, #tpu.memory_space<vmem>>, vector<1x128xf32>
        %363 = vector.broadcast %362 : vector<1x128xf32> to vector<16x128xf32>
        %364 = arith.mulf %35, %363 : vector<16x128xf32>
        %365 = arith.mulf %364, %289 : vector<16x128xf32>
        %c27_148 = arith.constant 27 : index
        %c0_149 = arith.constant 0 : index
        %366 = vector.load %arg5[%c27_148, %c0_149] : memref<30x128xf32, #tpu.memory_space<vmem>>, vector<1x128xf32>
        %367 = vector.broadcast %366 : vector<1x128xf32> to vector<16x128xf32>
        %368 = arith.mulf %47, %367 : vector<16x128xf32>
        %369 = arith.mulf %368, %298 : vector<16x128xf32>
        %370 = arith.addf %365, %369 : vector<16x128xf32>
        %371 = math.tanh %11 : vector<16x128xf32>
        %372 = arith.truncf %371 : vector<16x128xf32> to vector<16x128xbf16>
        %373 = arith.index_cast %9 : i32 to index
        %c0_150 = arith.constant 0 : index
        %374 = vector.load %arg8[%373, %c0_150] : memref<320x1152xbf16, #tpu.memory_space<vmem>>, vector<16x128xbf16>
        tpu.vector_store %arg8[%373, %c0_150], %372 {strides = array<i32>} : memref<320x1152xbf16, #tpu.memory_space<vmem>>, vector<16x128xbf16>,
        %375 = arith.truncf %307 : vector<16x128xf32> to vector<16x128xbf16>
        %376 = arith.index_cast %9 : i32 to index
        %c128 = arith.constant 128 : index
        %377 = vector.load %arg8[%376, %c128] : memref<320x1152xbf16, #tpu.memory_space<vmem>>, vector<16x128xbf16>
        tpu.vector_store %arg8[%376, %c128], %375 {strides = array<i32>} : memref<320x1152xbf16, #tpu.memory_space<vmem>>, vector<16x128xbf16>,
        %378 = arith.truncf %316 : vector<16x128xf32> to vector<16x128xbf16>
        %379 = arith.index_cast %9 : i32 to index
        %c256 = arith.constant 256 : index
        %380 = vector.load %arg8[%379, %c256] : memref<320x1152xbf16, #tpu.memory_space<vmem>>, vector<16x128xbf16>
        tpu.vector_store %arg8[%379, %c256], %378 {strides = array<i32>} : memref<320x1152xbf16, #tpu.memory_space<vmem>>, vector<16x128xbf16>,
        %381 = arith.truncf %325 : vector<16x128xf32> to vector<16x128xbf16>
        %382 = arith.index_cast %9 : i32 to index
        %c384 = arith.constant 384 : index
        %383 = vector.load %arg8[%382, %c384] : memref<320x1152xbf16, #tpu.memory_space<vmem>>, vector<16x128xbf16>
        tpu.vector_store %arg8[%382, %c384], %381 {strides = array<i32>} : memref<320x1152xbf16, #tpu.memory_space<vmem>>, vector<16x128xbf16>,
        %384 = arith.truncf %334 : vector<16x128xf32> to vector<16x128xbf16>
        %385 = arith.index_cast %9 : i32 to index
        %c512 = arith.constant 512 : index
        %386 = vector.load %arg8[%385, %c512] : memref<320x1152xbf16, #tpu.memory_space<vmem>>, vector<16x128xbf16>
        tpu.vector_store %arg8[%385, %c512], %384 {strides = array<i32>} : memref<320x1152xbf16, #tpu.memory_space<vmem>>, vector<16x128xbf16>,
        %387 = arith.truncf %343 : vector<16x128xf32> to vector<16x128xbf16>
        %388 = arith.index_cast %9 : i32 to index
        %c640 = arith.constant 640 : index
        %389 = vector.load %arg8[%388, %c640] : memref<320x1152xbf16, #tpu.memory_space<vmem>>, vector<16x128xbf16>
        tpu.vector_store %arg8[%388, %c640], %387 {strides = array<i32>} : memref<320x1152xbf16, #tpu.memory_space<vmem>>, vector<16x128xbf16>,
        %390 = arith.truncf %352 : vector<16x128xf32> to vector<16x128xbf16>
        %391 = arith.index_cast %9 : i32 to index
        %c768 = arith.constant 768 : index
        %392 = vector.load %arg8[%391, %c768] : memref<320x1152xbf16, #tpu.memory_space<vmem>>, vector<16x128xbf16>
        tpu.vector_store %arg8[%391, %c768], %390 {strides = array<i32>} : memref<320x1152xbf16, #tpu.memory_space<vmem>>, vector<16x128xbf16>,
        %393 = arith.truncf %361 : vector<16x128xf32> to vector<16x128xbf16>
        %394 = arith.index_cast %9 : i32 to index
        %c896 = arith.constant 896 : index
        %395 = vector.load %arg8[%394, %c896] : memref<320x1152xbf16, #tpu.memory_space<vmem>>, vector<16x128xbf16>
        tpu.vector_store %arg8[%394, %c896], %393 {strides = array<i32>} : memref<320x1152xbf16, #tpu.memory_space<vmem>>, vector<16x128xbf16>,
        %396 = arith.truncf %370 : vector<16x128xf32> to vector<16x128xbf16>
        %397 = arith.index_cast %9 : i32 to index
        %c1024 = arith.constant 1024 : index
        %398 = vector.load %arg8[%397, %c1024] : memref<320x1152xbf16, #tpu.memory_space<vmem>>, vector<16x128xbf16>
        tpu.vector_store %arg8[%397, %c1024], %396 {strides = array<i32>} : memref<320x1152xbf16, #tpu.memory_space<vmem>>, vector<16x128xbf16>,
      }
      %c20_i32_7 = arith.constant 20 : i32
    } else {
    }
    %c0 = arith.constant 0 : index
    %c0_1 = arith.constant 0 : index
    %3 = vector.load %arg8[%c0, %c0_1] : memref<320x1152xbf16, #tpu.memory_space<vmem>>, vector<320x1152xbf16>
    %c0_2 = arith.constant 0 : index
    %c0_3 = arith.constant 0 : index
    %4 = vector.load %arg6[%c0_2, %c0_3] : memref<1152x256xbf16, #tpu.memory_space<vmem>>, vector<1152x256xbf16>
    %cst = arith.constant dense<0.000000e+00> : vector<320x256xf32>
    %5 = tpu.matmul %3, %4, %cst {dimension_numbers = #tpu.dot_dimension_numbers<[1], [0], [0], [1], [0, 0, 1, 1], [], []>} : vector<320x1152xbf16>, vector<1152x256xbf16>, vector<320x256xf32> -> vector<320x256xf32>
    %c0_4 = arith.constant 0 : index
    %c0_5 = arith.constant 0 : index
    %6 = vector.load %arg7[%c0_4, %c0_5] : memref<320x256xf32, #tpu.memory_space<vmem>>, vector<320x256xf32>
    tpu.vector_store %arg7[%c0_4, %c0_5], %5 {strides = array<i32>} : memref<320x256xf32, #tpu.memory_space<vmem>>, vector<320x256xf32>,
    return
  }
  func.func @transform_0(%arg0: i32, %arg1: i32) -> (i32, i32) {
    %c0_i32 = arith.constant 0 : i32
    %c0_i32_0 = arith.constant 0 : i32
    return %arg0, %c0_i32 : i32, i32
  }
  func.func @transform_1(%arg0: i32, %arg1: i32) -> (i32, i32) {
    %c0_i32 = arith.constant 0 : i32
    %c0_i32_0 = arith.constant 0 : i32
    %c0_i32_1 = arith.constant 0 : i32
    return %c0_i32, %c0_i32_0 : i32, i32
  }
  func.func @transform_2(%arg0: i32, %arg1: i32) -> (i32, i32) {
    %c0_i32 = arith.constant 0 : i32
    %c0_i32_0 = arith.constant 0 : i32
    %c0_i32_1 = arith.constant 0 : i32
    return %c0_i32, %c0_i32_0 : i32, i32
  }
  func.func @transform_3(%arg0: i32, %arg1: i32) -> (i32, i32) {
    %c0_i32 = arith.constant 0 : i32
    %c0_i32_0 = arith.constant 0 : i32
    %c0_i32_1 = arith.constant 0 : i32
    return %c0_i32, %c0_i32_0 : i32, i32
  }
  func.func @transform_4(%arg0: i32, %arg1: i32) -> (i32, i32) {
    %c0_i32 = arith.constant 0 : i32
    %c0_i32_0 = arith.constant 0 : i32
    return %c0_i32, %arg1 : i32, i32
  }
  func.func @transform_5(%arg0: i32, %arg1: i32) -> (i32, i32) {
    %c0_i32 = arith.constant 0 : i32
    return %arg0, %arg1 : i32, i32
  }
}

</mosaic_0001>

<bundles_post_ra>
// kernel: kan_linear.1
= control target key start
LH: loop header
LB: loop body
LE: loop exit
PB: predicated region body
PF: predicated region fallthrough
CT: control target
= control target key end

     0   :  { %s8555_s0 = inlined_call_operand.vmem [shape: f32[640,128], index: 0, kind: input, shape index: {}]   ;;  %s8556_s1 = inlined_call_operand.vmem [shape: f32[12,128], index: 1, kind: input, shape index: {}]   ;;  %s8557_s2 = inlined_call_operand.vmem [shape: f32[30,128], index: 2, kind: input, shape index: {}]   ;;  %s8558_s3 = inlined_call_operand.vmem [shape: f32[30,128], index: 3, kind: input, shape index: {}]   ;;  %s8559_s4 = inlined_call_operand.vmem [shape: bf16[1152,512], index: 4, kind: input, shape index: {}]   ;;  %s8560_s5 = inlined_call_operand.vmem [shape: f32[640,512], index: 5, kind: output, shape index: {}]  }
   0x1   :  { %8563 = sst [smem:[#allocation43_spill]] %s8555_s0 }
   0x2   :  { %s6448_s18 = smov 0   ;;  %s6450_s19 = smov 0  }
   0x3   :  { %s6452_s20 = smov 0   ;;  %s6454_s21 = smov 0  }
   0x4   :  { %s6456_s22 = smov 0   ;;  %s6458_s23 = smov 0  }
   0x5   :  { %s6460_s24 = smov 0   ;;  %s6462_s25 = smov 0  }
   0x6   :  { %s6464_s26 = smov 0  }
   0x7 LB: > { %s5223_s27 = sadd.s32 4294967295, %s6409_s26   ;;  %s24_s28 = sadd.s32 1, %s6401_s24  ;;  %s6409_s26 = sphi %s6464_s26, %s15_s26   ;;  %s6405_s25 = sphi %s6462_s25, %s8704_s25   ;;  %s6401_s24 = sphi %s6460_s24, %s8703_s24   ;;  %s6397_s23 = sphi %s6458_s23, %s8702_s23   ;;  %s6393_s22 = sphi %s6456_s22, %s8701_s22   ;;  %s6389_s21 = sphi %s6454_s21, %s8700_s21   ;;  %s6385_s20 = sphi %s6452_s20, %s8699_s20   ;;  %s6381_s19 = sphi %s6450_s19, %s8698_s19   ;;  %s6377_s18 = sphi %s6448_s18, %s8697_s18  }
   0x8   : > { %p25_p0 = scmp.ge.s32.totalorder %s24_s28, 2  ;;  %s27_s29 = sadd.s32 1, %s6405_s25 }
   0x9   : > { %s123_s30 = sadd.s32 1, %s6389_s21  ;;  %p130_p1 = scmp.ne.s32.totalorder %s6389_s21, %s6385_s20 }
   0xa   : > { %s8706_s28 = smov (%p25_p0, %s24_s28), 0  ;;  %s8708_s29 = smov (!%p25_p0, %s27_s29), %s6405_s25 }
   0xb   : > { %s120_s6 = ssub.s32 %s6401_s24, %s8706_s28  ;;  %p131_p2 = scmp.eq.s32.totalorder %s6409_s26, 0 }
   0xc   : > { %p29_p3 = scmp.ge.s32.totalorder %s8708_s29, 2  ;;  %p121_p4 = scmp.eq.s32.totalorder %s120_s6, 0 }
   0xd   : > { %p132_p5 = por %p131_p2, %p130_p1  ;;  %s151_s7 = sadd.s32 1, %s6381_s19 }
   0xe   : > { %s8710_s29 = smov (%p29_p3, %s8708_s29), 0  ;;  %p161_p6 = scmp.ne.s32.totalorder %s6381_s19, %s6377_s18 }
   0xf   : > { %s6509_s8 = scalar_select %p121_p4, %s6389_s21, %s123_s30  }
  0x10   : > { %s146_s9 = ssub.s32 %s6405_s25, %s8710_s29  ;;  %p162_p7 = scmp.eq.s32.totalorder %s5223_s27, 3 }
  0x11   : > { %s148_s10 = sor.u32 %s146_s9, %s120_s6  ;;  %p5226_p10 = scmp.ge.s32.totalorder %s6409_s26, 4 }
  0x12   : > { %p149_p8 = scmp.eq.s32.totalorder %s148_s10, 0  ;;  %p6515_p9 = por %p162_p7, %p161_p6 }
  0x13   : > { %193 = sbr.rel (%p5226_p10) target bundleno = 100 (0x64), region = 28 }
  0x14   : > { %s6520_s12 = scalar_select %p149_p8, %s6381_s19, %s151_s7  }
  0x18   : > { %205 = sbr.rel (!%p132_p5) target bundleno = 100 (0x64), region = 36  ;;  %s207_s13 = sand.u32 (%p132_p5), 1, %s6389_s21  }
  0x19   : > { %s5669_s14 = sshll.u32 (%p132_p5), %s6401_s24, 3  ;;  %s5769_s15 = smul.u32 (%p132_p5), 1152, %s207_s13 }
  0x1a   : > { %s6528_s27 = scalar_lea.vmem (%p132_p5), %s8559_s4, %s5669_s14 }
  0x1b   : > { %v527_v0 = vld [vmem:[%s6528_s27] sm:$0xff] (%p132_p5)  ;;  %v529_v1 = vld [vmem:[%s6528_s27 + $0x10] sm:$0xff] (%p132_p5)  ;;  %s6536_s30 = scalar_lea.vmem (%p132_p5), [#allocation3], %s5769_s15 }
  0x1c   : > { %v531_v2 = vld [vmem:[%s6528_s27 + $0x20] sm:$0xff] (%p132_p5)  ;;  %v533_v3 = vld [vmem:[%s6528_s27 + $0x30] sm:$0xff] (%p132_p5)  ;;  %528 = vst [vmem:[%s6536_s30] sm:$0xff] (%p132_p5), %v527_v0  ;;  %530 = vst [vmem:[%s6536_s30 + $0x8] sm:$0xff] (%p132_p5), %v529_v1 }
  0x1d   : > { %v535_v4 = vld [vmem:[%s6528_s27 + $0x40] sm:$0xff]  ;;  %v537_v5 = vld [vmem:[%s6528_s27 + $0x50] sm:$0xff]  ;;  %532 = vst [vmem:[%s6536_s30 + $0x10] sm:$0xff] %v531_v2  ;;  %534 = vst [vmem:[%s6536_s30 + $0x18] sm:$0xff] %v533_v3 }
  0x1e   : > { %536 = vst [vmem:[%s6536_s30 + $0x20] sm:$0xff] %v535_v4  ;;  %538 = vst [vmem:[%s6536_s30 + $0x28] sm:$0xff] %v537_v5  ;;  %v539_v6 = vld [vmem:[%s6528_s27 + $0x60] sm:$0xff]  ;;  %v541_v7 = vld [vmem:[%s6528_s27 + $0x70] sm:$0xff] }
  0x1f   : > { %v543_v8 = vld [vmem:[%s6528_s27 + $0x80] sm:$0xff]  ;;  %540 = vst [vmem:[%s6536_s30 + $0x30] sm:$0xff] %v539_v6  ;;  %542 = vst [vmem:[%s6536_s30 + $0x38] sm:$0xff] %v541_v7  ;;  %v545_v9 = vld [vmem:[%s6528_s27 + $0x90] sm:$0xff] }
  0x20   : > { %544 = vst [vmem:[%s6536_s30 + $0x40] sm:$0xff] %v543_v8  ;;  %v547_v10 = vld [vmem:[%s6528_s27 + $0xa0] sm:$0xff]  ;;  %v549_v11 = vld [vmem:[%s6528_s27 + $0xb0] sm:$0xff]  ;;  %546 = vst [vmem:[%s6536_s30 + $0x48] sm:$0xff] %v545_v9 }
  0x21   : > { %548 = vst [vmem:[%s6536_s30 + $0x50] sm:$0xff] %v547_v10  ;;  %550 = vst [vmem:[%s6536_s30 + $0x58] sm:$0xff] %v549_v11  ;;  %v551_v12 = vld [vmem:[%s6528_s27 + $0xc0] sm:$0xff]  ;;  %v553_v13 = vld [vmem:[%s6528_s27 + $0xd0] sm:$0xff] }
  0x22   : > { %v555_v14 = vld [vmem:[%s6528_s27 + $0xe0] sm:$0xff]  ;;  %552 = vst [vmem:[%s6536_s30 + $0x60] sm:$0xff] %v551_v12  ;;  %554 = vst [vmem:[%s6536_s30 + $0x68] sm:$0xff] %v553_v13  ;;  %v557_v15 = vld [vmem:[%s6528_s27 + $0xf0] sm:$0xff] }
  0x23   : > { %556 = vst [vmem:[%s6536_s30 + $0x70] sm:$0xff] %v555_v14  ;;  %v559_v16 = vld [vmem:[%s6528_s27 + $0x100] sm:$0xff]  ;;  %v561_v17 = vld [vmem:[%s6528_s27 + $0x110] sm:$0xff]  ;;  %558 = vst [vmem:[%s6536_s30 + $0x78] sm:$0xff] %v557_v15 }
  0x24   : > { %560 = vst [vmem:[%s6536_s30 + $0x80] sm:$0xff] %v559_v16  ;;  %562 = vst [vmem:[%s6536_s30 + $0x88] sm:$0xff] %v561_v17  ;;  %v563_v18 = vld [vmem:[%s6528_s27 + $0x120] sm:$0xff]  ;;  %v565_v19 = vld [vmem:[%s6528_s27 + $0x130] sm:$0xff] }
  0x25   : > { %v567_v20 = vld [vmem:[%s6528_s27 + $0x140] sm:$0xff]  ;;  %564 = vst [vmem:[%s6536_s30 + $0x90] sm:$0xff] %v563_v18  ;;  %566 = vst [vmem:[%s6536_s30 + $0x98] sm:$0xff] %v565_v19  ;;  %v569_v21 = vld [vmem:[%s6528_s27 + $0x150] sm:$0xff] }
  0x26   : > { %568 = vst [vmem:[%s6536_s30 + $0xa0] sm:$0xff] %v567_v20  ;;  %v571_v22 = vld [vmem:[%s6528_s27 + $0x160] sm:$0xff]  ;;  %v573_v23 = vld [vmem:[%s6528_s27 + $0x170] sm:$0xff]  ;;  %570 = vst [vmem:[%s6536_s30 + $0xa8] sm:$0xff] %v569_v21 }
  0x27   : > { %572 = vst [vmem:[%s6536_s30 + $0xb0] sm:$0xff] %v571_v22  ;;  %574 = vst [vmem:[%s6536_s30 + $0xb8] sm:$0xff] %v573_v23  ;;  %v575_v24 = vld [vmem:[%s6528_s27 + $0x180] sm:$0xff]  ;;  %v577_v25 = vld [vmem:[%s6528_s27 + $0x190] sm:$0xff] }
  0x28   : > { %v579_v26 = vld [vmem:[%s6528_s27 + $0x1a0] sm:$0xff]  ;;  %576 = vst [vmem:[%s6536_s30 + $0xc0] sm:$0xff] %v575_v24  ;;  %578 = vst [vmem:[%s6536_s30 + $0xc8] sm:$0xff] %v577_v25  ;;  %v581_v27 = vld [vmem:[%s6528_s27 + $0x1b0] sm:$0xff] }
  0x29   : > { %580 = vst [vmem:[%s6536_s30 + $0xd0] sm:$0xff] %v579_v26  ;;  %v583_v28 = vld [vmem:[%s6528_s27 + $0x1c0] sm:$0xff]  ;;  %v585_v29 = vld [vmem:[%s6528_s27 + $0x1d0] sm:$0xff]  ;;  %582 = vst [vmem:[%s6536_s30 + $0xd8] sm:$0xff] %v581_v27 }
  0x2a   : > { %584 = vst [vmem:[%s6536_s30 + $0xe0] sm:$0xff] %v583_v28  ;;  %586 = vst [vmem:[%s6536_s30 + $0xe8] sm:$0xff] %v585_v29  ;;  %v587_v30 = vld [vmem:[%s6528_s27 + $0x1e0] sm:$0xff]  ;;  %v589_v31 = vld [vmem:[%s6528_s27 + $0x1f0] sm:$0xff] }
  0x2b   : > { %v591_v32 = vld [vmem:[%s6528_s27 + $0x200] sm:$0xff]  ;;  %588 = vst [vmem:[%s6536_s30 + $0xf0] sm:$0xff] %v587_v30  ;;  %590 = vst [vmem:[%s6536_s30 + $0xf8] sm:$0xff] %v589_v31  ;;  %v593_v33 = vld [vmem:[%s6528_s27 + $0x210] sm:$0xff] }
  0x2c   : > { %592 = vst [vmem:[%s6536_s30 + $0x100] sm:$0xff] %v591_v32  ;;  %v595_v34 = vld [vmem:[%s6528_s27 + $0x220] sm:$0xff]  ;;  %v597_v35 = vld [vmem:[%s6528_s27 + $0x230] sm:$0xff]  ;;  %594 = vst [vmem:[%s6536_s30 + $0x108] sm:$0xff] %v593_v33 }
  0x2d   : > { %596 = vst [vmem:[%s6536_s30 + $0x110] sm:$0xff] %v595_v34  ;;  %598 = vst [vmem:[%s6536_s30 + $0x118] sm:$0xff] %v597_v35  ;;  %v599_v36 = vld [vmem:[%s6528_s27 + $0x240] sm:$0xff]  ;;  %v601_v37 = vld [vmem:[%s6528_s27 + $0x250] sm:$0xff] }
  0x2e   : > { %v603_v38 = vld [vmem:[%s6528_s27 + $0x260] sm:$0xff]  ;;  %600 = vst [vmem:[%s6536_s30 + $0x120] sm:$0xff] %v599_v36  ;;  %602 = vst [vmem:[%s6536_s30 + $0x128] sm:$0xff] %v601_v37  ;;  %v605_v39 = vld [vmem:[%s6528_s27 + $0x270] sm:$0xff] }
  0x2f   : > { %604 = vst [vmem:[%s6536_s30 + $0x130] sm:$0xff] %v603_v38  ;;  %v607_v40 = vld [vmem:[%s6528_s27 + $0x280] sm:$0xff]  ;;  %v609_v41 = vld [vmem:[%s6528_s27 + $0x290] sm:$0xff]  ;;  %606 = vst [vmem:[%s6536_s30 + $0x138] sm:$0xff] %v605_v39 }
  0x30   : > { %608 = vst [vmem:[%s6536_s30 + $0x140] sm:$0xff] %v607_v40  ;;  %610 = vst [vmem:[%s6536_s30 + $0x148] sm:$0xff] %v609_v41  ;;  %v611_v42 = vld [vmem:[%s6528_s27 + $0x2a0] sm:$0xff]  ;;  %v613_v43 = vld [vmem:[%s6528_s27 + $0x2b0] sm:$0xff] }
  0x31   : > { %v615_v44 = vld [vmem:[%s6528_s27 + $0x2c0] sm:$0xff]  ;;  %612 = vst [vmem:[%s6536_s30 + $0x150] sm:$0xff] %v611_v42  ;;  %614 = vst [vmem:[%s6536_s30 + $0x158] sm:$0xff] %v613_v43  ;;  %v617_v45 = vld [vmem:[%s6528_s27 + $0x2d0] sm:$0xff] }
  0x32   : > { %616 = vst [vmem:[%s6536_s30 + $0x160] sm:$0xff] %v615_v44  ;;  %v619_v46 = vld [vmem:[%s6528_s27 + $0x2e0] sm:$0xff]  ;;  %v621_v47 = vld [vmem:[%s6528_s27 + $0x2f0] sm:$0xff]  ;;  %618 = vst [vmem:[%s6536_s30 + $0x168] sm:$0xff] %v617_v45 }
  0x33   : > { %620 = vst [vmem:[%s6536_s30 + $0x170] sm:$0xff] %v619_v46  ;;  %622 = vst [vmem:[%s6536_s30 + $0x178] sm:$0xff] %v621_v47  ;;  %v623_v48 = vld [vmem:[%s6528_s27 + $0x300] sm:$0xff]  ;;  %v625_v49 = vld [vmem:[%s6528_s27 + $0x310] sm:$0xff] }
  0x34   : > { %v627_v50 = vld [vmem:[%s6528_s27 + $0x320] sm:$0xff]  ;;  %624 = vst [vmem:[%s6536_s30 + $0x180] sm:$0xff] %v623_v48  ;;  %626 = vst [vmem:[%s6536_s30 + $0x188] sm:$0xff] %v625_v49  ;;  %v629_v51 = vld [vmem:[%s6528_s27 + $0x330] sm:$0xff] }
  0x35   : > { %628 = vst [vmem:[%s6536_s30 + $0x190] sm:$0xff] %v627_v50  ;;  %v631_v52 = vld [vmem:[%s6528_s27 + $0x340] sm:$0xff]  ;;  %v633_v53 = vld [vmem:[%s6528_s27 + $0x350] sm:$0xff]  ;;  %630 = vst [vmem:[%s6536_s30 + $0x198] sm:$0xff] %v629_v51 }
  0x36   : > { %632 = vst [vmem:[%s6536_s30 + $0x1a0] sm:$0xff] %v631_v52  ;;  %634 = vst [vmem:[%s6536_s30 + $0x1a8] sm:$0xff] %v633_v53  ;;  %v635_v54 = vld [vmem:[%s6528_s27 + $0x360] sm:$0xff]  ;;  %v637_v55 = vld [vmem:[%s6528_s27 + $0x370] sm:$0xff] }
  0x37   : > { %v639_v56 = vld [vmem:[%s6528_s27 + $0x380] sm:$0xff]  ;;  %636 = vst [vmem:[%s6536_s30 + $0x1b0] sm:$0xff] %v635_v54  ;;  %638 = vst [vmem:[%s6536_s30 + $0x1b8] sm:$0xff] %v637_v55  ;;  %v641_v57 = vld [vmem:[%s6528_s27 + $0x390] sm:$0xff] }
  0x38   : > { %640 = vst [vmem:[%s6536_s30 + $0x1c0] sm:$0xff] %v639_v56  ;;  %v643_v58 = vld [vmem:[%s6528_s27 + $0x3a0] sm:$0xff]  ;;  %v645_v59 = vld [vmem:[%s6528_s27 + $0x3b0] sm:$0xff]  ;;  %642 = vst [vmem:[%s6536_s30 + $0x1c8] sm:$0xff] %v641_v57 }
  0x39   : > { %644 = vst [vmem:[%s6536_s30 + $0x1d0] sm:$0xff] %v643_v58  ;;  %646 = vst [vmem:[%s6536_s30 + $0x1d8] sm:$0xff] %v645_v59  ;;  %v647_v60 = vld [vmem:[%s6528_s27 + $0x3c0] sm:$0xff]  ;;  %v649_v61 = vld [vmem:[%s6528_s27 + $0x3d0] sm:$0xff] }
  0x3a   : > { %v651_v62 = vld [vmem:[%s6528_s27 + $0x3e0] sm:$0xff]  ;;  %648 = vst [vmem:[%s6536_s30 + $0x1e0] sm:$0xff] %v647_v60  ;;  %650 = vst [vmem:[%s6536_s30 + $0x1e8] sm:$0xff] %v649_v61  ;;  %v653_v63 = vld [vmem:[%s6528_s27 + $0x3f0] sm:$0xff] }
  0x3b   : > { %652 = vst [vmem:[%s6536_s30 + $0x1f0] sm:$0xff] %v651_v62  ;;  %v655_v0 = vld [vmem:[%s6528_s27 + $0x400] sm:$0xff]  ;;  %v657_v1 = vld [vmem:[%s6528_s27 + $0x410] sm:$0xff]  ;;  %654 = vst [vmem:[%s6536_s30 + $0x1f8] sm:$0xff] %v653_v63 }
  0x3c   : > { %656 = vst [vmem:[%s6536_s30 + $0x200] sm:$0xff] %v655_v0  ;;  %658 = vst [vmem:[%s6536_s30 + $0x208] sm:$0xff] %v657_v1  ;;  %v659_v2 = vld [vmem:[%s6528_s27 + $0x420] sm:$0xff]  ;;  %v661_v3 = vld [vmem:[%s6528_s27 + $0x430] sm:$0xff] }
  0x3d   : > { %v663_v4 = vld [vmem:[%s6528_s27 + $0x440] sm:$0xff]  ;;  %660 = vst [vmem:[%s6536_s30 + $0x210] sm:$0xff] %v659_v2  ;;  %662 = vst [vmem:[%s6536_s30 + $0x218] sm:$0xff] %v661_v3  ;;  %v665_v5 = vld [vmem:[%s6528_s27 + $0x450] sm:$0xff] }
  0x3e   : > { %664 = vst [vmem:[%s6536_s30 + $0x220] sm:$0xff] %v663_v4  ;;  %v667_v6 = vld [vmem:[%s6528_s27 + $0x460] sm:$0xff]  ;;  %v669_v7 = vld [vmem:[%s6528_s27 + $0x470] sm:$0xff]  ;;  %666 = vst [vmem:[%s6536_s30 + $0x228] sm:$0xff] %v665_v5 }
  0x3f   : > { %668 = vst [vmem:[%s6536_s30 + $0x230] sm:$0xff] %v667_v6  ;;  %670 = vst [vmem:[%s6536_s30 + $0x238] sm:$0xff] %v669_v7  ;;  %v671_v8 = vld [vmem:[%s6528_s27 + $0x480] sm:$0xff]  ;;  %v673_v9 = vld [vmem:[%s6528_s27 + $0x490] sm:$0xff] }
  0x40   : > { %v675_v10 = vld [vmem:[%s6528_s27 + $0x4a0] sm:$0xff]  ;;  %672 = vst [vmem:[%s6536_s30 + $0x240] sm:$0xff] %v671_v8  ;;  %674 = vst [vmem:[%s6536_s30 + $0x248] sm:$0xff] %v673_v9  ;;  %v677_v11 = vld [vmem:[%s6528_s27 + $0x4b0] sm:$0xff] }
  0x41   : > { %676 = vst [vmem:[%s6536_s30 + $0x250] sm:$0xff] %v675_v10  ;;  %v679_v12 = vld [vmem:[%s6528_s27 + $0x4c0] sm:$0xff]  ;;  %v681_v13 = vld [vmem:[%s6528_s27 + $0x4d0] sm:$0xff]  ;;  %678 = vst [vmem:[%s6536_s30 + $0x258] sm:$0xff] %v677_v11 }
  0x42   : > { %680 = vst [vmem:[%s6536_s30 + $0x260] sm:$0xff] %v679_v12  ;;  %682 = vst [vmem:[%s6536_s30 + $0x268] sm:$0xff] %v681_v13  ;;  %v683_v14 = vld [vmem:[%s6528_s27 + $0x4e0] sm:$0xff]  ;;  %v685_v15 = vld [vmem:[%s6528_s27 + $0x4f0] sm:$0xff] }
  0x43   : > { %v687_v16 = vld [vmem:[%s6528_s27 + $0x500] sm:$0xff]  ;;  %684 = vst [vmem:[%s6536_s30 + $0x270] sm:$0xff] %v683_v14  ;;  %686 = vst [vmem:[%s6536_s30 + $0x278] sm:$0xff] %v685_v15  ;;  %v689_v17 = vld [vmem:[%s6528_s27 + $0x510] sm:$0xff] }
  0x44   : > { %688 = vst [vmem:[%s6536_s30 + $0x280] sm:$0xff] %v687_v16  ;;  %v691_v18 = vld [vmem:[%s6528_s27 + $0x520] sm:$0xff]  ;;  %v693_v19 = vld [vmem:[%s6528_s27 + $0x530] sm:$0xff]  ;;  %690 = vst [vmem:[%s6536_s30 + $0x288] sm:$0xff] %v689_v17 }
  0x45   : > { %692 = vst [vmem:[%s6536_s30 + $0x290] sm:$0xff] %v691_v18  ;;  %694 = vst [vmem:[%s6536_s30 + $0x298] sm:$0xff] %v693_v19  ;;  %v695_v20 = vld [vmem:[%s6528_s27 + $0x540] sm:$0xff]  ;;  %v697_v21 = vld [vmem:[%s6528_s27 + $0x550] sm:$0xff] }
  0x46   : > { %v699_v22 = vld [vmem:[%s6528_s27 + $0x560] sm:$0xff]  ;;  %696 = vst [vmem:[%s6536_s30 + $0x2a0] sm:$0xff] %v695_v20  ;;  %698 = vst [vmem:[%s6536_s30 + $0x2a8] sm:$0xff] %v697_v21  ;;  %v701_v23 = vld [vmem:[%s6528_s27 + $0x570] sm:$0xff] }
  0x47   : > { %700 = vst [vmem:[%s6536_s30 + $0x2b0] sm:$0xff] %v699_v22  ;;  %v703_v24 = vld [vmem:[%s6528_s27 + $0x580] sm:$0xff]  ;;  %v705_v25 = vld [vmem:[%s6528_s27 + $0x590] sm:$0xff]  ;;  %702 = vst [vmem:[%s6536_s30 + $0x2b8] sm:$0xff] %v701_v23 }
  0x48   : > { %704 = vst [vmem:[%s6536_s30 + $0x2c0] sm:$0xff] %v703_v24  ;;  %706 = vst [vmem:[%s6536_s30 + $0x2c8] sm:$0xff] %v705_v25  ;;  %v707_v26 = vld [vmem:[%s6528_s27 + $0x5a0] sm:$0xff]  ;;  %v709_v27 = vld [vmem:[%s6528_s27 + $0x5b0] sm:$0xff] }
  0x49   : > { %v711_v28 = vld [vmem:[%s6528_s27 + $0x5c0] sm:$0xff]  ;;  %708 = vst [vmem:[%s6536_s30 + $0x2d0] sm:$0xff] %v707_v26  ;;  %710 = vst [vmem:[%s6536_s30 + $0x2d8] sm:$0xff] %v709_v27  ;;  %v713_v29 = vld [vmem:[%s6528_s27 + $0x5d0] sm:$0xff] }
  0x4a   : > { %712 = vst [vmem:[%s6536_s30 + $0x2e0] sm:$0xff] %v711_v28  ;;  %v715_v30 = vld [vmem:[%s6528_s27 + $0x5e0] sm:$0xff]  ;;  %v717_v31 = vld [vmem:[%s6528_s27 + $0x5f0] sm:$0xff]  ;;  %714 = vst [vmem:[%s6536_s30 + $0x2e8] sm:$0xff] %v713_v29 }
  0x4b   : > { %716 = vst [vmem:[%s6536_s30 + $0x2f0] sm:$0xff] %v715_v30  ;;  %718 = vst [vmem:[%s6536_s30 + $0x2f8] sm:$0xff] %v717_v31  ;;  %v719_v32 = vld [vmem:[%s6528_s27 + $0x600] sm:$0xff]  ;;  %v721_v33 = vld [vmem:[%s6528_s27 + $0x610] sm:$0xff] }
  0x4c   : > { %v723_v34 = vld [vmem:[%s6528_s27 + $0x620] sm:$0xff]  ;;  %720 = vst [vmem:[%s6536_s30 + $0x300] sm:$0xff] %v719_v32  ;;  %722 = vst [vmem:[%s6536_s30 + $0x308] sm:$0xff] %v721_v33  ;;  %v725_v35 = vld [vmem:[%s6528_s27 + $0x630] sm:$0xff] }
  0x4d   : > { %724 = vst [vmem:[%s6536_s30 + $0x310] sm:$0xff] %v723_v34  ;;  %v727_v36 = vld [vmem:[%s6528_s27 + $0x640] sm:$0xff]  ;;  %v729_v37 = vld [vmem:[%s6528_s27 + $0x650] sm:$0xff]  ;;  %726 = vst [vmem:[%s6536_s30 + $0x318] sm:$0xff] %v725_v35 }
  0x4e   : > { %728 = vst [vmem:[%s6536_s30 + $0x320] sm:$0xff] %v727_v36  ;;  %730 = vst [vmem:[%s6536_s30 + $0x328] sm:$0xff] %v729_v37  ;;  %v731_v38 = vld [vmem:[%s6528_s27 + $0x660] sm:$0xff]  ;;  %v733_v39 = vld [vmem:[%s6528_s27 + $0x670] sm:$0xff] }
  0x4f   : > { %v735_v40 = vld [vmem:[%s6528_s27 + $0x680] sm:$0xff]  ;;  %732 = vst [vmem:[%s6536_s30 + $0x330] sm:$0xff] %v731_v38  ;;  %734 = vst [vmem:[%s6536_s30 + $0x338] sm:$0xff] %v733_v39  ;;  %v737_v41 = vld [vmem:[%s6528_s27 + $0x690] sm:$0xff] }
  0x50   : > { %736 = vst [vmem:[%s6536_s30 + $0x340] sm:$0xff] %v735_v40  ;;  %v739_v42 = vld [vmem:[%s6528_s27 + $0x6a0] sm:$0xff]  ;;  %v741_v43 = vld [vmem:[%s6528_s27 + $0x6b0] sm:$0xff]  ;;  %738 = vst [vmem:[%s6536_s30 + $0x348] sm:$0xff] %v737_v41 }
  0x51   : > { %740 = vst [vmem:[%s6536_s30 + $0x350] sm:$0xff] %v739_v42  ;;  %742 = vst [vmem:[%s6536_s30 + $0x358] sm:$0xff] %v741_v43  ;;  %v743_v44 = vld [vmem:[%s6528_s27 + $0x6c0] sm:$0xff]  ;;  %v745_v45 = vld [vmem:[%s6528_s27 + $0x6d0] sm:$0xff] }
  0x52   : > { %v747_v46 = vld [vmem:[%s6528_s27 + $0x6e0] sm:$0xff]  ;;  %744 = vst [vmem:[%s6536_s30 + $0x360] sm:$0xff] %v743_v44  ;;  %746 = vst [vmem:[%s6536_s30 + $0x368] sm:$0xff] %v745_v45  ;;  %v749_v47 = vld [vmem:[%s6528_s27 + $0x6f0] sm:$0xff] }
  0x53   : > { %748 = vst [vmem:[%s6536_s30 + $0x370] sm:$0xff] %v747_v46  ;;  %v751_v48 = vld [vmem:[%s6528_s27 + $0x700] sm:$0xff]  ;;  %v753_v49 = vld [vmem:[%s6528_s27 + $0x710] sm:$0xff]  ;;  %750 = vst [vmem:[%s6536_s30 + $0x378] sm:$0xff] %v749_v47 }
  0x54   : > { %752 = vst [vmem:[%s6536_s30 + $0x380] sm:$0xff] %v751_v48  ;;  %754 = vst [vmem:[%s6536_s30 + $0x388] sm:$0xff] %v753_v49  ;;  %v755_v50 = vld [vmem:[%s6528_s27 + $0x720] sm:$0xff]  ;;  %v757_v51 = vld [vmem:[%s6528_s27 + $0x730] sm:$0xff] }
  0x55   : > { %v759_v52 = vld [vmem:[%s6528_s27 + $0x740] sm:$0xff]  ;;  %756 = vst [vmem:[%s6536_s30 + $0x390] sm:$0xff] %v755_v50  ;;  %758 = vst [vmem:[%s6536_s30 + $0x398] sm:$0xff] %v757_v51  ;;  %v761_v53 = vld [vmem:[%s6528_s27 + $0x750] sm:$0xff] }
  0x56   : > { %760 = vst [vmem:[%s6536_s30 + $0x3a0] sm:$0xff] %v759_v52  ;;  %v763_v54 = vld [vmem:[%s6528_s27 + $0x760] sm:$0xff]  ;;  %v765_v55 = vld [vmem:[%s6528_s27 + $0x770] sm:$0xff]  ;;  %762 = vst [vmem:[%s6536_s30 + $0x3a8] sm:$0xff] %v761_v53 }
  0x57   : > { %764 = vst [vmem:[%s6536_s30 + $0x3b0] sm:$0xff] %v763_v54  ;;  %766 = vst [vmem:[%s6536_s30 + $0x3b8] sm:$0xff] %v765_v55  ;;  %v767_v56 = vld [vmem:[%s6528_s27 + $0x780] sm:$0xff]  ;;  %v769_v57 = vld [vmem:[%s6528_s27 + $0x790] sm:$0xff] }
  0x58   : > { %v771_v58 = vld [vmem:[%s6528_s27 + $0x7a0] sm:$0xff]  ;;  %768 = vst [vmem:[%s6536_s30 + $0x3c0] sm:$0xff] %v767_v56  ;;  %770 = vst [vmem:[%s6536_s30 + $0x3c8] sm:$0xff] %v769_v57  ;;  %v773_v59 = vld [vmem:[%s6528_s27 + $0x7b0] sm:$0xff] }
  0x59   : > { %772 = vst [vmem:[%s6536_s30 + $0x3d0] sm:$0xff] %v771_v58  ;;  %v775_v60 = vld [vmem:[%s6528_s27 + $0x7c0] sm:$0xff]  ;;  %v777_v61 = vld [vmem:[%s6528_s27 + $0x7d0] sm:$0xff]  ;;  %774 = vst [vmem:[%s6536_s30 + $0x3d8] sm:$0xff] %v773_v59 }
  0x5a   : > { %776 = vst [vmem:[%s6536_s30 + $0x3e0] sm:$0xff] %v775_v60  ;;  %778 = vst [vmem:[%s6536_s30 + $0x3e8] sm:$0xff] %v777_v61  ;;  %v779_v62 = vld [vmem:[%s6528_s27 + $0x7e0] sm:$0xff]  ;;  %v781_v63 = vld [vmem:[%s6528_s27 + $0x7f0] sm:$0xff] }
  0x5b   : > { %v783_v0 = vld [vmem:[%s6528_s27 + $0x800] sm:$0xff]  ;;  %780 = vst [vmem:[%s6536_s30 + $0x3f0] sm:$0xff] %v779_v62  ;;  %782 = vst [vmem:[%s6536_s30 + $0x3f8] sm:$0xff] %v781_v63  ;;  %v785_v1 = vld [vmem:[%s6528_s27 + $0x810] sm:$0xff] }
  0x5c   : > { %784 = vst [vmem:[%s6536_s30 + $0x400] sm:$0xff] %v783_v0  ;;  %v787_v2 = vld [vmem:[%s6528_s27 + $0x820] sm:$0xff]  ;;  %v789_v3 = vld [vmem:[%s6528_s27 + $0x830] sm:$0xff]  ;;  %786 = vst [vmem:[%s6536_s30 + $0x408] sm:$0xff] %v785_v1 }
  0x5d   : > { %788 = vst [vmem:[%s6536_s30 + $0x410] sm:$0xff] %v787_v2  ;;  %790 = vst [vmem:[%s6536_s30 + $0x418] sm:$0xff] %v789_v3  ;;  %v791_v4 = vld [vmem:[%s6528_s27 + $0x840] sm:$0xff]  ;;  %v793_v5 = vld [vmem:[%s6528_s27 + $0x850] sm:$0xff] }
  0x5e   : > { %v795_v6 = vld [vmem:[%s6528_s27 + $0x860] sm:$0xff]  ;;  %792 = vst [vmem:[%s6536_s30 + $0x420] sm:$0xff] %v791_v4  ;;  %794 = vst [vmem:[%s6536_s30 + $0x428] sm:$0xff] %v793_v5  ;;  %v797_v7 = vld [vmem:[%s6528_s27 + $0x870] sm:$0xff] }
  0x5f   : > { %796 = vst [vmem:[%s6536_s30 + $0x430] sm:$0xff] %v795_v6  ;;  %v799_v8 = vld [vmem:[%s6528_s27 + $0x880] sm:$0xff]  ;;  %v801_v9 = vld [vmem:[%s6528_s27 + $0x890] sm:$0xff]  ;;  %798 = vst [vmem:[%s6536_s30 + $0x438] sm:$0xff] %v797_v7 }
  0x60   : > { %800 = vst [vmem:[%s6536_s30 + $0x440] sm:$0xff] %v799_v8  ;;  %802 = vst [vmem:[%s6536_s30 + $0x448] sm:$0xff] %v801_v9  ;;  %v803_v10 = vld [vmem:[%s6528_s27 + $0x8a0] sm:$0xff]  ;;  %v805_v11 = vld [vmem:[%s6528_s27 + $0x8b0] sm:$0xff] }
  0x61   : > { %v807_v12 = vld [vmem:[%s6528_s27 + $0x8c0] sm:$0xff]  ;;  %804 = vst [vmem:[%s6536_s30 + $0x450] sm:$0xff] %v803_v10  ;;  %806 = vst [vmem:[%s6536_s30 + $0x458] sm:$0xff] %v805_v11  ;;  %v809_v13 = vld [vmem:[%s6528_s27 + $0x8d0] sm:$0xff] }
  0x62   : > { %808 = vst [vmem:[%s6536_s30 + $0x460] sm:$0xff] %v807_v12  ;;  %v811_v14 = vld [vmem:[%s6528_s27 + $0x8e0] sm:$0xff]  ;;  %v813_v15 = vld [vmem:[%s6528_s27 + $0x8f0] sm:$0xff]  ;;  %810 = vst [vmem:[%s6536_s30 + $0x468] sm:$0xff] %v809_v13 }
  0x63   : > { %812 = vst [vmem:[%s6536_s30 + $0x470] sm:$0xff] %v811_v14  ;;  %814 = vst [vmem:[%s6536_s30 + $0x478] sm:$0xff] %v813_v15 }
  0x64 PF: > { %p5229_p11 = scmp.ge.s32.totalorder %s6409_s26, 1  ;;  %p819_p12 = scmp.lt.s32.totalorder %s6409_s26, 5 }
  0x66   : > { %p820_p13 = pnand %p5229_p11, %p819_p12 }
  0x68   : > { %823 = sbr.rel (%p820_p13) target bundleno = 900 (0x384), region = 74 }
  0x6d   : > { %s826_s6 = sand.u32 1, %s6385_s20   ;;  %s854_s7 = sand.u32 1, %s6377_s18  }
  0x6e   : > { %s5770_s9 = smul.u32 1152, %s826_s6  ;;  %s8565_s0 = sld [smem:[#allocation43_spill]] }
  0x6f   : > { %s5771_s10 = smul.u32 640, %s854_s7  ;;  %p5231_p1 = scmp.ne.s32.totalorder %s6393_s22, 0 }
  0x70   : > { %s857_s13 = smul.u32 40, %s6397_s23  ;;  %s6830_s27 = scalar_lea.vmem [#allocation3], %s5770_s9 }
  0x71   : > { %s6832_s30 = scalar_lea.vmem [#allocation4], %s5771_s10  ;;  %s6835_s20 = smov (!%p5231_p1), 0  }
  0x72   : > { %p858_p0 = scmp.lt.s32.totalorder %s857_s13, 79  ;;  %870 = sbr.rel (%p5231_p1) target bundleno = 219 (0xdb), region = 82 }
  0x74   : > { %s8712_s13 = smov (!%p858_p0, %s857_s13), 79 }
  0x75   : > { %s5230_s14 = sshll.u32 %s8712_s13, 3 }
  0x76   : > { %s6828_s17 = scalar_lea.vmem %s8565_s0, %s5230_s14 }
  0x77 LB: >> { %v6843_v16 = vld [vmem:[%s8556_s1] ss:$0 sm:$0xff]  ;;  %v6848_v17 = vld [vmem:[%s8556_s1 + $0x1] ss:$0 sm:$0xff]  ;;  %s5232_s10 = sshll.u32 %s6413_s20, 4  ;;  %vm6415_vm5 = vmmov 1   ;;  %s6413_s20 = sphi %s6835_s20, %s876_s20  }
  0x78   : >> { %v6854_v18 = vld [vmem:[%s8556_s1 + $0x2] ss:$0 sm:$0xff]  ;;  %v6859_v19 = vld [vmem:[%s8556_s1 + $0x3] ss:$0 sm:$0xff]  ;;  %s878_s18 = scalar_lea.vmem %s6828_s17, %s5232_s10  ;;  %v6867_v20 = vld [vmem:[%s8556_s1 + $0x4] ss:$0 sm:$0xff] }
  0x79   : >> { %v6872_v21 = vld [vmem:[%s8557_s2] ss:$0 sm:$0xff]  ;;  %v6881_v24 = vld [vmem:[%s878_s18 + $0x8] sm:$0xff]  ;;  %v6886_v25 = vld [vmem:[%s8557_s2 + $0x1] ss:$0 sm:$0xff]  ;;  %v6416_v45 = vmov 0.0  }
  0x7a   : >> { %v6877_v22 = vld [vmem:[%s8558_s3] ss:$0 sm:$0xff]  ;;  %5855 = vtanh.f32 %v6881_v24  ;;  %v6902_v29 = vld [vmem:[%s8558_s3 + $0x1] ss:$0 sm:$0xff]  ;;  %v6907_v30 = vld [vmem:[%s8557_s2 + $0x2] ss:$0 sm:$0xff]  ;;  %v7016_v57 = vsub.f32 %v6881_v24, %v6843_v16  ;;  %v7023_v60 = vsub.f32 %v6881_v24, %v6848_v17  ;;  %v7027_v61 = vsub.f32 %v6881_v24, %v6854_v18 }
  0x7b   : >> { %v6879_v23 = vld [vmem:[%s878_s18] sm:$0xff]  ;;  %v6929_v34 = vld [vmem:[%s8557_s2 + $0xa] ss:$0 sm:$0xff]  ;;  %v6939_v36 = vld [vmem:[%s8557_s2 + $0xb] ss:$0 sm:$0xff]  ;;  %s7002_s6 = sshra.s32 %s5232_s10, 3  ;;  %v7036_v63 = vsub.f32 %v6881_v24, %v6859_v19  ;;  %v7040_v0 = vsub.f32 %v6881_v24, %v6867_v20  ;;  %vm966_vm14 = vcmp.ge.f32.partialorder %v6881_v24, %v6843_v16  ;;  %vm968_vm15 = vcmp.ge.f32.partialorder %v6881_v24, %v6848_v17 }
  0x7c   : >> { %v886_v26 = vsub.f32 %v6879_v23, %v6843_v16  ;;  %v6893_v27 = vsub.f32 %v6879_v23, %v6848_v17  ;;  %v6897_v28 = vsub.f32 %v6879_v23, %v6854_v18  ;;  %v6912_v31 = vld [vmem:[%s8558_s3 + $0x2] ss:$0 sm:$0xff]  ;;  %v6916_v32 = vsub.f32 %v6879_v23, %v6859_v19  ;;  %v6934_v35 = vld [vmem:[%s8558_s3 + $0xa] ss:$0 sm:$0xff]  ;;  %v6955_v38 = vld [vmem:[%s8558_s3 + $0xb] ss:$0 sm:$0xff] }
  0x7d   : >> { %v6920_v33 = vsub.f32 %v6879_v23, %v6867_v20  ;;  %vm965_vm0 = vcmp.ge.f32.partialorder %v6879_v23, %v6843_v16  ;;  %vm967_vm1 = vcmp.ge.f32.partialorder %v6879_v23, %v6848_v17  ;;  %vm969_vm2 = vcmp.ge.f32.partialorder %v6879_v23, %v6854_v18  ;;  %v6960_v39 = vld [vmem:[%s8557_s2 + $0x14] ss:$0 sm:$0xff]  ;;  %v6998_v54 = vld [vmem:[%s8556_s1 + $0x5] ss:$0 sm:$0xff]  ;;  %s5672_s10 = smul.u32 36, %s7002_s6  ;;  %s876_s20 = sadd.s32 1, %s6413_s20  }
  0x7e   : >> { %vm971_vm3 = vcmp.ge.f32.partialorder %v6879_v23, %v6859_v19  ;;  %vm973_vm4 = vcmp.ge.f32.partialorder %v6879_v23, %v6867_v20  ;;  %vm989_vm6 = vmxor %vm967_vm1, %vm6415_vm5  ;;  %v1082_v37 = vmul.f32 %v6872_v21, %v886_v26  ;;  %v1091_v40 = vmul.f32 %v6877_v22, %v6897_v28  ;;  %v6973_v44 = vld [vmem:[%s8558_s3 + $0x14] ss:$0 sm:$0xff]  ;;  %p873_p2 = scmp.ge.s32.totalorder %s876_s20, 20  }
  0x7f   : >> { %vm991_vm7 = vmand %vm965_vm0, %vm989_vm6  ;;  %v1102_v41 = vmul.f32 %v6886_v25, %v6893_v27  ;;  %v1111_v42 = vmul.f32 %v6902_v29, %v6916_v32  ;;  %v1122_v43 = vmul.f32 %v6907_v30, %v6897_v28  ;;  %v1131_v47 = vmul.f32 %v6912_v31, %v6920_v33  ;;  %s7110_s15 = scalar_lea.vmem [#allocation2], %s5672_s10 }
  0x80   : >> { %v5245_v46 = vsel %vm991_vm7, 1.0, %v6416_v45  ;;  %vm997_vm8 = vmxor %vm969_vm2, %vm6415_vm5  ;;  %v1282_v48 = vmul.f32 %v6929_v34, %v886_v26  ;;  %v1291_v49 = vmul.f32 %v6934_v35, %v6916_v32  ;;  %v1302_v51 = vmul.f32 %v6939_v36, %v6893_v27 }
  0x81   : >> { %vm999_vm9 = vmand %vm967_vm1, %vm997_vm8  ;;  %v1084_v50 = vmul.f32 %v5245_v46, %v1082_v37  ;;  %v1311_v52 = vmul.f32 %v6955_v38, %v6920_v33  ;;  %v6993_v53 = vmul.f32 %v6960_v39, %v886_v26  ;;  %v7011_v56 = vmul.f32 %v6973_v44, %v6920_v33 }
  0x82   : >> { %v5247_v55 = vsel %vm999_vm9, 1.0, %v6416_v45  ;;  %vm1005_vm10 = vmxor %vm971_vm3, %vm6415_vm5  ;;  %5857 = vtanh.f32 %v6879_v23  ;;  %v7044_v1 = vsub.f32 %v6881_v24, %v6998_v54  ;;  %vm970_vm0 = vcmp.ge.f32.partialorder %v6881_v24, %v6854_v18 }
  0x83   : >> { %vm1007_vm11 = vmand %vm969_vm2, %vm1005_vm10  ;;  %v1093_v58 = vmul.f32 %v5247_v55, %v1091_v40  ;;  %v1104_v59 = vmul.f32 %v5247_v55, %v1102_v41  ;;  %vm972_vm1 = vcmp.ge.f32.partialorder %v6881_v24, %v6859_v19  ;;  %vm974_vm2 = vcmp.ge.f32.partialorder %v6881_v24, %v6867_v20  ;;  %v5291_v55 = vld [vmem:[%s8557_s2 + $0xc] ss:$0 sm:$0xff]  ;;  %v5293_v20 = vld [vmem:[%s8557_s2 + $0xd] ss:$0 sm:$0xff] }
  0x84   : >> { %v5249_v62 = vsel %vm1007_vm11, 1.0, %v6416_v45  ;;  %vm1013_vm12 = vmxor %vm973_vm4, %vm6415_vm5  ;;  %vm976_vm6 = vcmp.ge.f32.partialorder %v6881_v24, %v6998_v54  ;;  %v1083_v9 = vmul.f32 %v6872_v21, %v7016_v57  ;;  %v1092_v10 = vmul.f32 %v6877_v22, %v7027_v61  ;;  %v7086_v21 = vld [vmem:[%s8557_s2 + $0x3] ss:$0 sm:$0xff] }
  0x85   : >> { %vm1015_vm13 = vmand %vm971_vm3, %vm1013_vm12  ;;  %v1095_v2 = vadd.f32 %v1093_v58, %v1084_v50  ;;  %v1113_v3 = vmul.f32 %v5249_v62, %v1111_v42  ;;  %v1124_v4 = vmul.f32 %v5249_v62, %v1122_v43  ;;  %v1103_v11 = vmul.f32 %v6886_v25, %v7023_v60  ;;  %v7091_v22 = vld [vmem:[%s8558_s3 + $0x3] ss:$0 sm:$0xff]  ;;  %v7141_v58 = vld [vmem:[%s8558_s3 + $0xc] ss:$0 sm:$0xff] }
  0x86   : >> { %v7053_v5 = vsel %vm1015_vm13, 1.0, %v6416_v45  ;;  %vm990_vm3 = vmxor %vm968_vm15, %vm6415_vm5  ;;  %v1112_v37 = vmul.f32 %v6902_v29, %v7036_v63  ;;  %v1123_v40 = vmul.f32 %v6907_v30, %v7027_v61  ;;  %v1132_v17 = vmul.f32 %v6912_v31, %v7040_v0 }
  0x87   : >> { %v1115_v6 = vadd.f32 %v1113_v3, %v1104_v59  ;;  %v1133_v7 = vmul.f32 %v7053_v5, %v1131_v47  ;;  %v1284_v8 = vmul.f32 %v1282_v48, %v1095_v2  ;;  %vm992_vm7 = vmand %vm966_vm14, %vm990_vm3  ;;  %v5856_v12 = vpop.eup %5855  ;;  %v1143_v46 = vmul.f32 %v7086_v21, %v7036_v63 }
  0x88   : >> { %v5246_v16 = vsel %vm992_vm7, 1.0, %v6416_v45  ;;  %vm998_vm8 = vmxor %vm970_vm0, %vm6415_vm5  ;;  %v5671_v25 = vpack.c.bf16 %v5856_v12, %v5856_v12  ;;  %v1152_v47 = vmul.f32 %v7091_v22, %v7044_v1  ;;  %v1283_v18 = vmul.f32 %v6929_v34, %v7016_v57 }
  0x89   : >> { %v7076_v13 = vadd.f32 %v1133_v7, %v1124_v4  ;;  %v1293_v14 = vmul.f32 %v1291_v49, %v1115_v6  ;;  %v1304_v15 = vmul.f32 %v1302_v51, %v1115_v6  ;;  %vm1000_vm9 = vmand %vm968_vm15, %vm998_vm8  ;;  %v1085_v26 = vmul.f32 %v5246_v16, %v1083_v9  ;;  %v5307_v6 = vld [vmem:[%s8557_s2 + $0x15] ss:$0 sm:$0xff] }
  0x8a   : >> { %v5248_v43 = vsel %vm1000_vm9, 1.0, %v6416_v45  ;;  %vm1006_vm10 = vmxor %vm972_vm1, %vm6415_vm5  ;;  %1633 = vst [vmem:[%s7110_s15 + $0x24] sm:$0xf] %v5671_v25  ;;  %v1312_v62 = vmul.f32 %v6955_v38, %v7040_v0  ;;  %v1332_v38 = vmul.f32 %v7141_v58, %v7044_v1  ;;  %v1463_v25 = vmul.f32 %v6960_v39, %v7016_v57 }
  0x8b   : >> { %v1295_v41 = vadd.f32 %v1293_v14, %v1284_v8  ;;  %v1313_v42 = vmul.f32 %v1311_v52, %v7076_v13  ;;  %vm1008_vm11 = vmand %vm970_vm0, %vm1006_vm10  ;;  %v1094_v29 = vmul.f32 %v5248_v43, %v1092_v10  ;;  %v1105_v30 = vmul.f32 %v5248_v43, %v1103_v11  ;;  %v5308_v14 = vld [vmem:[%s8558_s3 + $0x15] ss:$0 sm:$0xff] }
  0x8c   : >> { %v5250_v49 = vsel %vm1008_vm11, 1.0, %v6416_v45  ;;  %vm1014_vm12 = vmxor %vm974_vm2, %vm6415_vm5  ;;  %v1492_v39 = vmul.f32 %v5308_v14, %v7044_v1  ;;  %vm975_vm0 = vcmp.ge.f32.partialorder %v6879_v23, %v6998_v54 }
  0x8d   : >> { %v7120_v48 = vadd.f32 %v1313_v42, %v1304_v15  ;;  %v1464_v31 = vmul.f32 %v6993_v53, %v1295_v41  ;;  %vm1016_vm13 = vmand %vm972_vm1, %vm1014_vm12  ;;  %v1096_v50 = vadd.f32 %v1094_v29, %v1085_v26  ;;  %v1114_v51 = vmul.f32 %v5250_v49, %v1112_v37  ;;  %v7173_v15 = vld [vmem:[%s8556_s1 + $0x6] ss:$0 sm:$0xff]  ;;  %v5276_v29 = vld [vmem:[%s8558_s3 + $0x4] ss:$0 sm:$0xff] }
  0x8e   : >> { %v1125_v52 = vmul.f32 %v5250_v49, %v1123_v40  ;;  %v1292_v53 = vmul.f32 %v6934_v35, %v7036_v63  ;;  %v5252_v59 = vsel %vm1016_vm13, 1.0, %v6416_v45  ;;  %vm1022_vm14 = vmxor %vm976_vm6, %vm6415_vm5  ;;  %v1303_v35 = vmul.f32 %v6939_v36, %v7023_v60 }
  0x8f   : >> { %v5858_v34 = vpop.eup %5857  ;;  %v1473_v19 = vmul.f32 %v7011_v56, %v7120_v48  ;;  %vm1024_vm15 = vmand %vm974_vm2, %vm1022_vm14  ;;  %v1116_v2 = vadd.f32 %v1114_v51, %v1105_v30  ;;  %v1134_v3 = vmul.f32 %v5252_v59, %v1132_v17  ;;  %v1145_v56 = vmul.f32 %v5252_v59, %v1143_v46  ;;  %v5275_v17 = vld [vmem:[%s8557_s2 + $0x4] ss:$0 sm:$0xff]  ;;  %v5294_v59 = vld [vmem:[%s8558_s3 + $0xd] ss:$0 sm:$0xff] }
  0x90   : >> { %v1285_v4 = vmul.f32 %v1283_v18, %v1096_v50  ;;  %v7161_v8 = vsel %vm1024_vm15, 1.0, %v6416_v45  ;;  %v1323_v36 = vmul.f32 %v5291_v55, %v7027_v61  ;;  %v1472_v26 = vmul.f32 %v6973_v44, %v7040_v0  ;;  %vm1021_vm2 = vmxor %vm975_vm0, %vm6415_vm5 }
  0x91   : >> { %v1475_v7 = vadd.f32 %v1473_v19, %v1464_v31  ;;  %v1136_v9 = vadd.f32 %v1134_v3, %v1125_v52  ;;  %v1154_v10 = vmul.f32 %v7161_v8, %v1152_v47  ;;  %v1294_v11 = vmul.f32 %v1292_v53, %v1116_v2  ;;  %vm1023_vm3 = vmand %vm973_vm4, %vm1021_vm2 }
  0x92   : >> { %v1305_v12 = vmul.f32 %v1303_v35, %v1116_v2  ;;  %v1483_v37 = vmul.f32 %v5307_v6, %v7023_v60  ;;  %v7192_v44 = vsub.f32 %v6879_v23, %v6998_v54  ;;  %v7196_v57 = vsub.f32 %v6879_v23, %v7173_v15 }
  0x93   : >> { %v5693_v16 = vpack.c.bf16 %v1475_v7, %v5858_v34  ;;  %v7180_v40 = vadd.f32 %v1154_v10, %v1145_v56  ;;  %v1296_v41 = vadd.f32 %v1294_v11, %v1285_v4  ;;  %v1314_v42 = vmul.f32 %v1312_v62, %v1136_v9  ;;  %v7255_v11 = vld [vmem:[%s8556_s1 + $0x7] ss:$0 sm:$0xff] }
  0x94   : >> { %v1325_v43 = vmul.f32 %v1323_v36, %v1136_v9  ;;  %vm977_vm1 = vcmp.ge.f32.partialorder %v6879_v23, %v7173_v15  ;;  %v1142_v47 = vmul.f32 %v7086_v21, %v6916_v32  ;;  %v1151_v31 = vmul.f32 %v7091_v22, %v7192_v44  ;;  %v5310_v36 = vld [vmem:[%s8558_s3 + $0x16] ss:$0 sm:$0xff] }
  0x95   : >> { %5694 = vst [vmem:[%s7110_s15] sm:$0xff] %v5693_v16   ;;  %v1316_v60 = vadd.f32 %v1314_v42, %v1305_v12  ;;  %v1334_v30 = vmul.f32 %v1332_v38, %v7180_v40  ;;  %v1465_v46 = vmul.f32 %v1463_v25, %v1296_v41  ;;  %v1162_v49 = vmul.f32 %v5275_v17, %v6920_v33  ;;  %vm1029_vm4 = vmxor %vm977_vm1, %vm6415_vm5  ;;  %v5278_v41 = vld [vmem:[%s8558_s3 + $0x5] ss:$0 sm:$0xff] }
  0x96   : >> { %v1171_v18 = vmul.f32 %v5276_v29, %v7196_v57  ;;  %v5253_v53 = vsel %vm1023_vm3, 1.0, %v6416_v45  ;;  %vm1031_vm7 = vmand %vm975_vm0, %vm1029_vm4  ;;  %v1144_v21 = vmul.f32 %v7053_v5, %v1142_v47  ;;  %v1322_v19 = vmul.f32 %v5291_v55, %v6897_v28  ;;  %v5309_v5 = vld [vmem:[%s8557_s2 + $0x16] ss:$0 sm:$0xff] }
  0x97   : >> { %v7216_v50 = vadd.f32 %v1334_v30, %v1325_v43  ;;  %v1474_v51 = vmul.f32 %v1472_v26, %v1316_v60  ;;  %v1485_v52 = vmul.f32 %v1483_v37, %v1316_v60  ;;  %v1153_v22 = vmul.f32 %v5253_v53, %v1151_v31  ;;  %v5277_v26 = vld [vmem:[%s8557_s2 + $0x5] ss:$0 sm:$0xff] }
  0x98   : >> { %v1164_v34 = vmul.f32 %v5253_v53, %v1162_v49  ;;  %v7236_v2 = vsel %vm1031_vm7, 1.0, %v6416_v45  ;;  %v1331_v3 = vmul.f32 %v7141_v58, %v7192_v44  ;;  %v1324_v4 = vmul.f32 %v1322_v19, %v7076_v13  ;;  %v5295_v49 = vld [vmem:[%s8557_s2 + $0xe] ss:$0 sm:$0xff] }
  0x99   : >> { %v1476_v35 = vadd.f32 %v1474_v51, %v1465_v46  ;;  %v1494_v62 = vmul.f32 %v1492_v39, %v7216_v50  ;;  %v1155_v56 = vadd.f32 %v1153_v22, %v1144_v21  ;;  %v1173_v55 = vmul.f32 %v7236_v2, %v1171_v18 }
  0x9a   : >> { %v1342_v7 = vmul.f32 %v5293_v20, %v6916_v32  ;;  %v1351_v9 = vmul.f32 %v5294_v59, %v7196_v57  ;;  %v1482_v58 = vmul.f32 %v5307_v6, %v6893_v27  ;;  %v1491_v10 = vmul.f32 %v5308_v14, %v7192_v44 }
  0x9b   : >> { %v1496_v38 = vadd.f32 %v1494_v62, %v1485_v52  ;;  %v7257_v13 = vadd.f32 %v1173_v55, %v1164_v34  ;;  %v1333_v12 = vmul.f32 %v1331_v3, %v1155_v56  ;;  %v1502_v25 = vmul.f32 %v5309_v5, %v6897_v28  ;;  %v5311_v34 = vld [vmem:[%s8557_s2 + $0x17] ss:$0 sm:$0xff] }
  0x9c   : >> { %v1344_v16 = vmul.f32 %v1342_v7, %v1155_v56  ;;  %v1484_v27 = vmul.f32 %v1482_v58, %v7120_v48  ;;  %v1511_v6 = vmul.f32 %v5310_v36, %v7196_v57  ;;  %v7267_v14 = vsub.f32 %v6881_v24, %v7173_v15 }
  0x9d   : >> { %v5698_v37 = vpack.c.bf16 %v1496_v38, %v1476_v35  ;;  %v1335_v42 = vadd.f32 %v1333_v12, %v1324_v4  ;;  %v1353_v28 = vmul.f32 %v1351_v9, %v7257_v13  ;;  %v7275_v43 = vsub.f32 %v6881_v24, %v7255_v11  ;;  %v7330_v4 = vld [vmem:[%s8556_s1 + $0x8] ss:$0 sm:$0xff]  ;;  %v5279_v12 = vld [vmem:[%s8557_s2 + $0x6] ss:$0 sm:$0xff] }
  0x9e   : >> { %vm978_vm8 = vcmp.ge.f32.partialorder %v6881_v24, %v7173_v15  ;;  %vm980_vm9 = vcmp.ge.f32.partialorder %v6881_v24, %v7255_v11  ;;  %v1163_v48 = vmul.f32 %v5275_v17, %v7040_v0  ;;  %v1172_v39 = vmul.f32 %v5276_v29, %v7267_v14  ;;  %v5296_v17 = vld [vmem:[%s8558_s3 + $0xe] ss:$0 sm:$0xff]  ;;  %v5298_v15 = vld [vmem:[%s8558_s3 + $0xf] ss:$0 sm:$0xff] }
  0x9f   : >> { %5730 = vst [vmem:[%s7110_s15 + $0x28] sm:$0xff] %v5698_v37   ;;  %vm1030_vm10 = vmxor %vm978_vm8, %vm6415_vm5  ;;  %v1183_v60 = vmul.f32 %v5277_v26, %v7044_v1  ;;  %v7289_v30 = vadd.f32 %v1353_v28, %v1344_v16  ;;  %v1493_v46 = vmul.f32 %v1491_v10, %v1335_v42  ;;  %v1504_v47 = vmul.f32 %v1502_v25, %v1335_v42 }
  0xa0   : >> { %vm1032_vm11 = vmand %vm976_vm6, %vm1030_vm10  ;;  %v1192_v31 = vmul.f32 %v5278_v41, %v7275_v43  ;;  %v1165_v54 = vmul.f32 %v7161_v8, %v1163_v48  ;;  %v1343_v18 = vmul.f32 %v5293_v20, %v7036_v63  ;;  %v1352_v51 = vmul.f32 %v5294_v59, %v7267_v14  ;;  %v5312_v8 = vld [vmem:[%s8558_s3 + $0x17] ss:$0 sm:$0xff] }
  0xa1   : >> { %v5256_v29 = vsel %vm1032_vm11, 1.0, %v6416_v45  ;;  %vm1038_vm12 = vmxor %vm980_vm9, %vm6415_vm5  ;;  %v1495_v52 = vadd.f32 %v1493_v46, %v1484_v27  ;;  %v1513_v53 = vmul.f32 %v1511_v6, %v7289_v30  ;;  %v1363_v59 = vmul.f32 %v5295_v49, %v7040_v0 }
  0xa2   : >> { %vm1040_vm6 = vmand %vm978_vm8, %vm1038_vm12  ;;  %v1174_v21 = vmul.f32 %v5256_v29, %v1172_v39  ;;  %v1185_v22 = vmul.f32 %v5256_v29, %v1183_v60  ;;  %v1345_v19 = vmul.f32 %v1343_v18, %v7180_v40  ;;  %v1372_v35 = vmul.f32 %v5296_v17, %v7275_v43  ;;  %v5297_v39 = vld [vmem:[%s8557_s2 + $0xf] ss:$0 sm:$0xff]  ;;  %v5313_v29 = vld [vmem:[%s8557_s2 + $0x18] ss:$0 sm:$0xff] }
  0xa3   : >> { %v7320_v20 = vsel %vm1040_vm6, 1.0, %v6416_v45  ;;  %v1515_v62 = vadd.f32 %v1513_v53, %v1504_v47  ;;  %v1503_v55 = vmul.f32 %v5309_v5, %v7027_v61  ;;  %v1512_v7 = vmul.f32 %v5310_v36, %v7267_v14  ;;  %v5280_v36 = vld [vmem:[%s8558_s3 + $0x6] ss:$0 sm:$0xff] }
  0xa4   : >> { %v1176_v3 = vadd.f32 %v1174_v21, %v1165_v54  ;;  %v1194_v56 = vmul.f32 %v7320_v20, %v1192_v31  ;;  %v1523_v40 = vmul.f32 %v5311_v34, %v7036_v63  ;;  %v1532_v38 = vmul.f32 %v5312_v8, %v7275_v43  ;;  %v5314_v54 = vld [vmem:[%s8558_s3 + $0x18] ss:$0 sm:$0xff] }
  0xa5   : >> { %v7337_v9 = vsub.f32 %v6879_v23, %v7255_v11  ;;  %v5703_v58 = vpack.c.bf16 %v1515_v62, %v1495_v52  ;;  %v1505_v63 = vmul.f32 %v1503_v55, %v7216_v50  ;;  %v7350_v16 = vsub.f32 %v6879_v23, %v7330_v4 }
  0xa6   : >> { %v7339_v10 = vadd.f32 %v1194_v56, %v1185_v22  ;;  %v1354_v61 = vmul.f32 %v1352_v51, %v1176_v3  ;;  %v1365_v5 = vmul.f32 %v1363_v59, %v1176_v3  ;;  %vm979_vm13 = vcmp.ge.f32.partialorder %v6879_v23, %v7255_v11  ;;  %v5299_v11 = vld [vmem:[%s8557_s2 + $0x10] ss:$0 sm:$0xff] }
  0xa7   : >> { %vm981_vm14 = vcmp.ge.f32.partialorder %v6879_v23, %v7330_v4  ;;  %5731 = vst [vmem:[%s7110_s15 + $0x8] sm:$0xff] %v5703_v58   ;;  %vm1037_vm15 = vmxor %vm979_vm13, %vm6415_vm5  ;;  %v1182_v50 = vmul.f32 %v5277_v26, %v7192_v44  ;;  %v1191_v27 = vmul.f32 %v5278_v41, %v7337_v9  ;;  %v1202_v6 = vmul.f32 %v5279_v12, %v7196_v57 }
  0xa8   : >> { %v1356_v25 = vadd.f32 %v1354_v61, %v1345_v19  ;;  %v1374_v37 = vmul.f32 %v1372_v35, %v7339_v10  ;;  %vm1039_vm0 = vmand %vm977_vm1, %vm1037_vm15  ;;  %v1211_v42 = vmul.f32 %v5280_v36, %v7350_v16  ;;  %v1362_v28 = vmul.f32 %v5295_v49, %v6920_v33  ;;  %v7406_v19 = vld [vmem:[%s8556_s1 + $0x9] ss:$0 sm:$0xff] }
  0xa9   : >> { %v1371_v48 = vmul.f32 %v5296_v17, %v7337_v9  ;;  %v5257_v46 = vsel %vm1039_vm0, 1.0, %v6416_v45  ;;  %vm1045_vm1 = vmxor %vm981_vm14, %vm6415_vm5  ;;  %v1184_v47 = vmul.f32 %v7236_v2, %v1182_v50  ;;  %v1382_v2 = vmul.f32 %v5297_v39, %v7192_v44 }
  0xaa   : >> { %v7374_v60 = vadd.f32 %v1374_v37, %v1365_v5  ;;  %v1514_v26 = vmul.f32 %v1512_v7, %v1356_v25  ;;  %v1525_v41 = vmul.f32 %v1523_v40, %v1356_v25  ;;  %vm1047_vm2 = vmand %vm979_vm13, %vm1045_vm1  ;;  %v1193_v31 = vmul.f32 %v5257_v46, %v1191_v27 }
  0xab   : >> { %v1204_v49 = vmul.f32 %v5257_v46, %v1202_v6  ;;  %v1364_v17 = vmul.f32 %v1362_v28, %v7257_v13  ;;  %v7397_v52 = vsel %vm1047_vm2, 1.0, %v6416_v45  ;;  %v1391_v13 = vmul.f32 %v5298_v15, %v7350_v16 }
  0xac   : >> { %v1516_v18 = vadd.f32 %v1514_v26, %v1505_v63  ;;  %v1534_v51 = vmul.f32 %v1532_v38, %v7374_v60  ;;  %v1195_v53 = vadd.f32 %v1193_v31, %v1184_v47  ;;  %v1213_v21 = vmul.f32 %v7397_v52, %v1211_v42  ;;  %v5315_v26 = vld [vmem:[%s8557_s2 + $0x19] ss:$0 sm:$0xff] }
  0xad   : >> { %v1522_v22 = vmul.f32 %v5311_v34, %v6916_v32  ;;  %v1531_v35 = vmul.f32 %v5312_v8, %v7337_v9  ;;  %v1542_v62 = vmul.f32 %v5313_v29, %v6920_v33  ;;  %v1551_v3 = vmul.f32 %v5314_v54, %v7350_v16  ;;  %v5281_v32 = vld [vmem:[%s8557_s2 + $0x7] ss:$0 sm:$0xff] }
  0xae   : >> { %v1536_v59 = vadd.f32 %v1534_v51, %v1525_v41  ;;  %v7411_v56 = vadd.f32 %v1213_v21, %v1204_v49  ;;  %v1373_v55 = vmul.f32 %v1371_v48, %v1195_v53  ;;  %v1384_v7 = vmul.f32 %v1382_v2, %v1195_v53  ;;  %v5282_v34 = vld [vmem:[%s8558_s3 + $0x7] ss:$0 sm:$0xff]  ;;  %v7481_v51 = vld [vmem:[%s8556_s1 + $0xa] ss:$0 sm:$0xff] }
  0xaf   : >> { %v1524_v40 = vmul.f32 %v1522_v22, %v7289_v30  ;;  %v7422_v33 = vsub.f32 %v6881_v24, %v7330_v4  ;;  %v7426_v38 = vsub.f32 %v6881_v24, %v7406_v19  ;;  %vm982_vm3 = vcmp.ge.f32.partialorder %v6881_v24, %v7330_v4 }
  0xb0   : >> { %v5708_v8 = vpack.c.bf16 %v1536_v59, %v1516_v18  ;;  %v1375_v30 = vadd.f32 %v1373_v55, %v1364_v17  ;;  %v1393_v58 = vmul.f32 %v1391_v13, %v7411_v56  ;;  %vm984_vm4 = vcmp.ge.f32.partialorder %v6881_v24, %v7406_v19  ;;  %vm1046_vm7 = vmxor %vm982_vm3, %vm6415_vm5 }
  0xb1   : >> { %v1203_v61 = vmul.f32 %v5279_v12, %v7267_v14  ;;  %vm1048_vm8 = vmand %vm980_vm9, %vm1046_vm7  ;;  %v1212_v5 = vmul.f32 %v5280_v36, %v7422_v33  ;;  %v1223_v63 = vmul.f32 %v5281_v32, %v7275_v43  ;;  %v1232_v25 = vmul.f32 %v5282_v34, %v7426_v38  ;;  %v5300_v12 = vld [vmem:[%s8558_s3 + $0x10] ss:$0 sm:$0xff] }
  0xb2   : >> { %5732 = vst [vmem:[%s7110_s15 + $0x30] sm:$0xff] %v5708_v8   ;;  %v1383_v37 = vmul.f32 %v5297_v39, %v7044_v1  ;;  %v7446_v50 = vadd.f32 %v1393_v58, %v1384_v7  ;;  %v1533_v27 = vmul.f32 %v1531_v35, %v1375_v30  ;;  %v1544_v6 = vmul.f32 %v1542_v62, %v1375_v30  ;;  %vm1054_vm10 = vmxor %vm984_vm4, %vm6415_vm5  ;;  %v7492_v62 = vld [vmem:[%s8557_s2 + $0x8] ss:$0 sm:$0xff] }
  0xb3   : >> { %v5260_v42 = vsel %vm1048_vm8, 1.0, %v6416_v45  ;;  %vm1056_vm9 = vmand %vm982_vm3, %vm1054_vm10  ;;  %v1205_v36 = vmul.f32 %v7320_v20, %v1203_v61  ;;  %v1392_v31 = vmul.f32 %v5298_v15, %v7422_v33  ;;  %v5316_v20 = vld [vmem:[%s8558_s3 + $0x19] ss:$0 sm:$0xff]  ;;  %v1412_v18 = vmul.f32 %v5300_v12, %v7426_v38 }
  0xb4   : >> { %v1214_v28 = vmul.f32 %v5260_v42, %v1212_v5  ;;  %v1225_v48 = vmul.f32 %v5260_v42, %v1223_v63  ;;  %v1385_v39 = vmul.f32 %v1383_v37, %v7339_v10  ;;  %v1535_v41 = vadd.f32 %v1533_v27, %v1524_v40  ;;  %v7512_v40 = vld [vmem:[%s8557_s2 + $0x11] ss:$0 sm:$0xff] }
  0xb5   : >> { %v1553_v46 = vmul.f32 %v1551_v3, %v7446_v50  ;;  %v7469_v47 = vsel %vm1056_vm9, 1.0, %v6416_v45  ;;  %v1403_v10 = vmul.f32 %v5299_v11, %v7267_v14  ;;  %v1543_v53 = vmul.f32 %v5313_v29, %v7040_v0  ;;  %v7497_v0 = vld [vmem:[%s8558_s3 + $0x8] ss:$0 sm:$0xff] }
  0xb6   : >> { %v1216_v49 = vadd.f32 %v1214_v28, %v1205_v36  ;;  %v1234_v17 = vmul.f32 %v7469_v47, %v1232_v25  ;;  %v1552_v15 = vmul.f32 %v5314_v54, %v7422_v33  ;;  %v1563_v21 = vmul.f32 %v5315_v26, %v7044_v1 }
  0xb7   : >> { %v1555_v2 = vadd.f32 %v1553_v46, %v1544_v6  ;;  %v1572_v35 = vmul.f32 %v5316_v20, %v7426_v38  ;;  %v1545_v1 = vmul.f32 %v1543_v53, %v7374_v60  ;;  %v949_v54 = vsub.f32 %v6879_v23, %v7406_v19  ;;  %v7545_v6 = vld [vmem:[%s8557_s2 + $0x1a] ss:$0 sm:$0xff] }
  0xb8   : >> { %v7486_v13 = vadd.f32 %v1234_v17, %v1225_v48  ;;  %v1394_v22 = vmul.f32 %v1392_v31, %v1216_v49  ;;  %v1405_v59 = vmul.f32 %v1403_v10, %v1216_v49  ;;  %v956_v3 = vsub.f32 %v6879_v23, %v7481_v51 }
  0xb9   : >> { %v5713_v29 = vpack.c.bf16 %v1555_v2, %v1535_v41  ;;  %vm983_vm11 = vcmp.ge.f32.partialorder %v6879_v23, %v7406_v19  ;;  %vm985_vm12 = vcmp.ge.f32.partialorder %v6879_v23, %v7481_v51  ;;  %v1222_v60 = vmul.f32 %v5281_v32, %v7337_v9  ;;  %v7532_v32 = vld [vmem:[%s8558_s3 + $0x11] ss:$0 sm:$0xff]  ;;  %v5286_v2 = vld [vmem:[%s8558_s3 + $0x9] ss:$0 sm:$0xff] }
  0xba   : >> { %v1396_v55 = vadd.f32 %v1394_v22, %v1385_v39  ;;  %v1414_v7 = vmul.f32 %v1412_v18, %v7486_v13  ;;  %vm1053_vm6 = vmxor %vm983_vm11, %vm6415_vm5  ;;  %v1231_v8 = vmul.f32 %v5282_v34, %v949_v54  ;;  %v1242_v30 = vmul.f32 %v7492_v62, %v7350_v16  ;;  %v5285_v18 = vld [vmem:[%s8557_s2 + $0x9] ss:$0 sm:$0xff] }
  0xbb   : >> { %5733 = vst [vmem:[%s7110_s15 + $0x10] sm:$0xff] %v5713_v29   ;;  %v1251_v58 = vmul.f32 %v7497_v0, %v956_v3  ;;  %vm1055_vm13 = vmand %vm981_vm14, %vm1053_vm6  ;;  %v1402_v25 = vmul.f32 %v5299_v11, %v7196_v57  ;;  %v1224_v37 = vmul.f32 %v7397_v52, %v1222_v60  ;;  %v1411_v27 = vmul.f32 %v5300_v12, %v949_v54  ;;  %v7554_v52 = vld [vmem:[%s8558_s3 + $0x1a] ss:$0 sm:$0xff]  ;;  %v5244_v12 = vld [vmem:[%s8556_s1 + $0xb] ss:$0 sm:$0xff] }
  0xbc   : >> { %v7523_v61 = vadd.f32 %v1414_v7, %v1405_v59  ;;  %v1554_v5 = vmul.f32 %v1552_v15, %v1396_v55  ;;  %v1565_v63 = vmul.f32 %v1563_v21, %v1396_v55  ;;  %v5261_v34 = vsel %vm1055_vm13, 1.0, %v6416_v45  ;;  %vm1061_vm15 = vmxor %vm985_vm12, %vm6415_vm5  ;;  %v5304_v15 = vld [vmem:[%s8558_s3 + $0x12] ss:$0 sm:$0xff]  ;;  %v5319_v21 = vld [vmem:[%s8557_s2 + $0x1b] ss:$0 sm:$0xff] }
  0xbd   : >> { %v1422_v4 = vmul.f32 %v7512_v40, %v7337_v9  ;;  %vm1063_vm14 = vmand %vm983_vm11, %vm1061_vm15  ;;  %v1233_v36 = vmul.f32 %v5261_v34, %v1231_v8  ;;  %v1244_v28 = vmul.f32 %v5261_v34, %v1242_v30  ;;  %v1404_v39 = vmul.f32 %v1402_v25, %v7411_v56  ;;  %v5303_v56 = vld [vmem:[%s8557_s2 + $0x12] ss:$0 sm:$0xff] }
  0xbe   : >> { %v1556_v42 = vadd.f32 %v1554_v5, %v1545_v1  ;;  %v1574_v11 = vmul.f32 %v1572_v35, %v7523_v61  ;;  %v5263_v48 = vsel %vm1063_vm14, 1.0, %v6416_v45  ;;  %v1431_v41 = vmul.f32 %v7532_v32, %v956_v3 }
  0xbf   : >> { %v1562_v46 = vmul.f32 %v5315_v26, %v7192_v44  ;;  %v1235_v49 = vadd.f32 %v1233_v36, %v1224_v37  ;;  %v1253_v17 = vmul.f32 %v5263_v48, %v1251_v58  ;;  %v1571_v10 = vmul.f32 %v5316_v20, %v949_v54 }
  0xc0   : >> { %v1576_v31 = vadd.f32 %v1574_v11, %v1565_v63  ;;  %v1582_v44 = vmul.f32 %v7545_v6, %v7196_v57  ;;  %v1591_v26 = vmul.f32 %v7554_v52, %v956_v3  ;;  %v963_v20 = vsub.f32 %v6879_v23, %v5244_v12  ;;  %v5320_v57 = vld [vmem:[%s8558_s3 + $0x1b] ss:$0 sm:$0xff] }
  0xc1   : >> { %v1564_v53 = vmul.f32 %v1562_v46, %v7446_v50  ;;  %v1255_v59 = vadd.f32 %v1253_v17, %v1244_v28  ;;  %v1413_v35 = vmul.f32 %v1411_v27, %v1235_v49  ;;  %v1424_v29 = vmul.f32 %v1422_v4, %v1235_v49 }
  0xc2   : >> { %v5718_v22 = vpack.c.bf16 %v1576_v31, %v1556_v42  ;;  %vm987_vm0 = vcmp.ge.f32.partialorder %v6879_v23, %v5244_v12  ;;  %v1262_v50 = vmul.f32 %v5285_v18, %v949_v54  ;;  %v1271_v1 = vmul.f32 %v5286_v2, %v963_v20 }
  0xc3   : >> { %v1442_v3 = vmul.f32 %v5303_v56, %v7350_v16  ;;  %v1415_v55 = vadd.f32 %v1413_v35, %v1404_v39  ;;  %v1433_v7 = vmul.f32 %v1431_v41, %v1255_v59  ;;  %vm1069_vm1 = vmxor %vm987_vm0, %vm6415_vm5  ;;  %v1451_v60 = vmul.f32 %v5304_v15, %v963_v20 }
  0xc4   : >> { %5734 = vst [vmem:[%s7110_s15 + $0x38] sm:$0xff] %v5718_v22   ;;  %v1602_v8 = vmul.f32 %v5319_v21, %v7337_v9  ;;  %vm1071_vm2 = vmand %vm985_vm12, %vm1069_vm1  ;;  %v1264_v30 = vmul.f32 %v5263_v48, %v1262_v50  ;;  %v1611_v5 = vmul.f32 %v5320_v57, %v963_v20  ;;  %v957_v54 = vsub.f32 %v6881_v24, %v7481_v51 }
  0xc5   : >> { %v1444_v58 = vmul.f32 %v1442_v3, %v1255_v59  ;;  %v1435_v63 = vadd.f32 %v1433_v7, %v1424_v29  ;;  %v1573_v16 = vmul.f32 %v1571_v10, %v1415_v55  ;;  %v1584_v25 = vmul.f32 %v1582_v44, %v1415_v55 }
  0xc6   : >> { %v5265_v34 = vsel %vm1071_vm2, 1.0, %v6416_v45  ;;  %v964_v27 = vsub.f32 %v6881_v24, %v5244_v12  ;;  %vm986_vm3 = vcmp.ge.f32.partialorder %v6881_v24, %v7481_v51  ;;  %vm988_vm7 = vcmp.ge.f32.partialorder %v6881_v24, %v5244_v12 }
  0xc7   : >> { %v1273_v37 = vmul.f32 %v5265_v34, %v1271_v1  ;;  %v1575_v23 = vadd.f32 %v1573_v16, %v1564_v53  ;;  %v1593_v9 = vmul.f32 %v1591_v26, %v1435_v63  ;;  %v1604_v4 = vmul.f32 %v1602_v8, %v1435_v63  ;;  %vm1062_vm8 = vmxor %vm986_vm3, %vm6415_vm5 }
  0xc8   : >> { %v1243_v42 = vmul.f32 %v7492_v62, %v7422_v33  ;;  %vm1064_vm10 = vmand %vm984_vm4, %vm1062_vm8  ;;  %v1252_v36 = vmul.f32 %v7497_v0, %v957_v54  ;;  %v1263_v28 = vmul.f32 %v5285_v18, %v7426_v38  ;;  %v1272_v12 = vmul.f32 %v5286_v2, %v964_v27 }
  0xc9   : >> { %v1275_v11 = vadd.f32 %v1273_v37, %v1264_v30  ;;  %v1595_v48 = vadd.f32 %v1593_v9, %v1584_v25  ;;  %v5264_v39 = vsel %vm1064_vm10, 1.0, %v6416_v45  ;;  %vm1070_vm9 = vmxor %vm988_vm7, %vm6415_vm5  ;;  %v1423_v62 = vmul.f32 %v7512_v40, %v7275_v43 }
  0xca   : >> { %v1245_v41 = vmul.f32 %v7469_v47, %v1243_v42  ;;  %vm1072_vm4 = vmand %vm986_vm3, %vm1070_vm9  ;;  %v1254_v19 = vmul.f32 %v5264_v39, %v1252_v36  ;;  %v1265_v0 = vmul.f32 %v5264_v39, %v1263_v28  ;;  %v1432_v38 = vmul.f32 %v7532_v32, %v957_v54 }
  0xcb   : >> { %v1453_v46 = vmul.f32 %v1451_v60, %v1275_v11  ;;  %v5723_v31 = vpack.c.bf16 %v1595_v48, %v1575_v23  ;;  %v5266_v49 = vsel %vm1072_vm4, 1.0, %v6416_v45  ;;  %v1425_v17 = vmul.f32 %v1423_v62, %v7486_v13 }
  0xcc   : >> { %v1443_v10 = vmul.f32 %v5303_v56, %v7422_v33  ;;  %v1256_v18 = vadd.f32 %v1254_v19, %v1245_v41  ;;  %v1274_v2 = vmul.f32 %v5266_v49, %v1272_v12  ;;  %v1452_v40 = vmul.f32 %v5304_v15, %v964_v27 }
  0xcd   : >> { %v1455_v47 = vadd.f32 %v1453_v46, %v1444_v58  ;;  %5735 = vst [vmem:[%s7110_s15 + $0x18] sm:$0xff] %v5723_v31   ;;  %v1583_v24 = vmul.f32 %v7545_v6, %v7267_v14  ;;  %v1592_v51 = vmul.f32 %v7554_v52, %v957_v54  ;;  %v1603_v32 = vmul.f32 %v5319_v21, %v7275_v43 }
  0xce   : >> { %v1276_v44 = vadd.f32 %v1274_v2, %v1265_v0  ;;  %v1434_v45 = vmul.f32 %v1432_v38, %v1256_v18  ;;  %v1445_v13 = vmul.f32 %v1443_v10, %v1256_v18  ;;  %v1612_v26 = vmul.f32 %v5320_v57, %v964_v27 }
  0xcf   : >> { %v1613_v53 = vmul.f32 %v1611_v5, %v1455_v47  ;;  %v1585_v15 = vmul.f32 %v1583_v24, %v7523_v61 }
  0xd0   : >> { %v1436_v56 = vadd.f32 %v1434_v45, %v1425_v17  ;;  %v1454_v20 = vmul.f32 %v1452_v40, %v1276_v44 }
  0xd1   : >> { %v1615_v33 = vadd.f32 %v1613_v53, %v1604_v4 }
  0xd2   : >> { %v1456_v59 = vadd.f32 %v1454_v20, %v1445_v13  ;;  %v1594_v35 = vmul.f32 %v1592_v51, %v1436_v56  ;;  %v1605_v14 = vmul.f32 %v1603_v32, %v1436_v56 }
  0xd3   : >> { %v5687_v22 = vpack.c.bf16 %v1615_v33, %v1615_v33 }
  0xd4   : >> { %v1596_v6 = vadd.f32 %v1594_v35, %v1585_v15  ;;  %v1614_v52 = vmul.f32 %v1612_v26, %v1456_v59 }
  0xd5   : >> { %1712 = vst [vmem:[%s7110_s15 + $0x20] sm:$0xf] %v5687_v22 }
  0xd6   : >> { %v1616_v29 = vadd.f32 %v1614_v52, %v1605_v14  ;;  %875 = sbr.rel (!%p873_p2) target bundleno = 119 (0x77), region = 152 }
  0xd8   : >> { %v5728_v43 = vpack.c.bf16 %v1616_v29, %v1596_v6 }
  0xda   : >> { %5736 = vst [vmem:[%s7110_s15 + $0x40] sm:$0xff] %v5728_v43  }
  0xdb PF: > { %v5859_v61 = vld [vmem:[%s6830_s27 + $0x74] ss:$8 sps:$4 sm:$0xff]   ;;  %v5861_v21 = vld [vmem:[%s6830_s27 + $0x70] ss:$8 sps:$4 sm:$0xff]   ;;  %v5862_v57 = vld [vmem:[%s6830_s27 + $0x64] ss:$8 sps:$4 sm:$0xff]  }
  0xdc   : > { %3698 = vmatprep.subr.bf16.mxu0 %v5859_v61  ;;  %5737 = vmatprep.subr.bf16.mxu1 %v5859_v61  ;;  %v5864_v50 = vld [vmem:[%s6830_s27 + $0x60] ss:$8 sps:$4 sm:$0xff]   ;;  %v5865_v1 = vld [vmem:[%s6830_s27 + $0x54] ss:$8 sps:$4 sm:$0xff]   ;;  %v5867_v3 = vld [vmem:[%s6830_s27 + $0x50] ss:$8 sps:$4 sm:$0xff]  }
  0xdd   : > { %3699 = vmatpush1.bf16.msra.mxu0 %v5861_v21  ;;  %5753 = vmatpush1.bf16.msra.mxu1 %v5861_v21  ;;  %v5868_v55 = vld [vmem:[%s6830_s27 + $0x44] ss:$8 sps:$4 sm:$0xff]   ;;  %v5870_v7 = vld [vmem:[%s6830_s27 + $0x40] ss:$8 sps:$4 sm:$0xff]   ;;  %v5871_v60 = vld [vmem:[%s6830_s27 + $0x34] ss:$8 sps:$4 sm:$0xff]  }
  0xde   : > { %3700 = vmatprep.subr.bf16.mxu0 %v5862_v57  ;;  %5738 = vmatprep.subr.bf16.mxu1 %v5862_v57  ;;  %v5873_v8 = vld [vmem:[%s6830_s27 + $0x30] ss:$8 sps:$4 sm:$0xff]   ;;  %v5874_v30 = vld [vmem:[%s6830_s27 + $0x24] ss:$8 sps:$4 sm:$0xff]   ;;  %v5876_v58 = vld [vmem:[%s6830_s27 + $0x20] ss:$8 sps:$4 sm:$0xff]  }
  0xdf   : > { %v5877_v5 = vld [vmem:[%s6830_s27 + $0x14] ss:$8 sps:$4 sm:$0xff]   ;;  %v5879_v63 = vld [vmem:[%s6830_s27 + $0x10] ss:$8 sps:$4 sm:$0xff]   ;;  %v5880_v25 = vld [vmem:[%s6830_s27 + $0x4] ss:$8 sps:$4 sm:$0xff]  }
  0xe0   : > { %v5882_v34 = vld [vmem:[%s6830_s27] ss:$8 sps:$4 sm:$0xff]   ;;  %v5883_v37 = vld [vmem:[%s6830_s27 + $0xf4] ss:$8 sps:$4 sm:$0xff]   ;;  %v5885_v27 = vld [vmem:[%s6830_s27 + $0xf0] ss:$8 sps:$4 sm:$0xff]  }
  0xe1   : > { %3701 = vmatpush1.bf16.msra.mxu0 %v5864_v50  ;;  %5754 = vmatpush1.bf16.msra.mxu1 %v5864_v50  ;;  %v5909_v54 = vld [vmem:[#allocation2 + $0x4] ss:$36 sps:$4 sm:$0xff]   ;;  %v5912_v16 = vld [vmem:[#allocation2 + $0x2d4] ss:$36 sps:$4 sm:$0xff]   ;;  %v5922_v18 = vld [vmem:[#allocation2 + $0x4c] ss:$36 sps:$4 sm:$0xff]  }
  0xe2   : > { %3702 = vmatprep.subr.bf16.mxu0 %v5865_v1  ;;  %5739 = vmatprep.subr.bf16.mxu1 %v5865_v1  ;;  %v5886_v23 = vld [vmem:[%s6830_s27 + $0xe4] ss:$8 sps:$4 sm:$0xff]   ;;  %v5888_v9 = vld [vmem:[%s6830_s27 + $0xe0] ss:$8 sps:$4 sm:$0xff]   ;;  %v5889_v4 = vld [vmem:[%s6830_s27 + $0xd4] ss:$8 sps:$4 sm:$0xff]  }
  0xe3   : > { %3730 = vmatprep.mubr.bf16.mxu0 %v5909_v54  ;;  %3830 = vmatprep.mubr.bf16.mxu1 %v5912_v16  ;;  %v5891_v42 = vld [vmem:[%s6830_s27 + $0xd0] ss:$8 sps:$4 sm:$0xff]   ;;  %v5892_v11 = vld [vmem:[%s6830_s27 + $0xc4] ss:$8 sps:$4 sm:$0xff]   ;;  %v5894_v36 = vld [vmem:[%s6830_s27 + $0xc0] ss:$8 sps:$4 sm:$0xff]  }
  0xe4   : > { %v5895_v28 = vld [vmem:[%s6830_s27 + $0xb4] ss:$8 sps:$4 sm:$0xff]   ;;  %v5897_v12 = vld [vmem:[%s6830_s27 + $0xb0] ss:$8 sps:$4 sm:$0xff]   ;;  %v5898_v48 = vld [vmem:[%s6830_s27 + $0xa4] ss:$8 sps:$4 sm:$0xff]  }
  0xe5   : > { %3703 = vmatpush1.bf16.msra.mxu0 %v5867_v3  ;;  %5755 = vmatpush1.bf16.msra.mxu1 %v5867_v3  ;;  %v5900_v39 = vld [vmem:[%s6830_s27 + $0xa0] ss:$8 sps:$4 sm:$0xff]   ;;  %v5901_v41 = vld [vmem:[%s6830_s27 + $0x94] ss:$8 sps:$4 sm:$0xff]   ;;  %v5903_v62 = vld [vmem:[%s6830_s27 + $0x90] ss:$8 sps:$4 sm:$0xff]  }
  0xe6   : > { %3704 = vmatprep.subr.bf16.mxu0 %v5868_v55  ;;  %5740 = vmatprep.subr.bf16.mxu1 %v5868_v55  ;;  %v5904_v46 = vld [vmem:[%s6830_s27 + $0x84] ss:$8 sps:$4 sm:$0xff]   ;;  %v5906_v19 = vld [vmem:[%s6830_s27 + $0x80] ss:$8 sps:$4 sm:$0xff]   ;;  %v5915_v0 = vld [vmem:[%s6830_s27 + $0x174] ss:$8 sps:$4 sm:$0xff]  }
  0xe7   : > { %v5907_v38 = vld [vmem:[#allocation2] ss:$36 sps:$4 sm:$0xff]   ;;  %v5918_v31 = vld [vmem:[%s6830_s27 + $0x274] ss:$8 sps:$4 sm:$0xff]   ;;  %v5913_v17 = vld [vmem:[%s6830_s27 + $0x170] ss:$8 sps:$4 sm:$0xff]  }
  0xe8   : > { %v5910_v49 = vld [vmem:[#allocation2 + $0x2d0] ss:$36 sps:$4 sm:$0xff]   ;;  %v5921_v47 = vld [vmem:[%s6830_s27 + $0x164] ss:$8 sps:$4 sm:$0xff]   ;;  %v5924_v2 = vld [vmem:[#allocation2 + $0x31c] ss:$36 sps:$4 sm:$0xff]  }
  0xe9   : > { %3705 = vmatpush1.bf16.msra.mxu0 %v5870_v7  ;;  %5756 = vmatpush1.bf16.msra.mxu1 %v5870_v7  ;;  %v5916_v10 = vld [vmem:[%s6830_s27 + $0x270] ss:$8 sps:$4 sm:$0xff]   ;;  %v5928_v40 = vld [vmem:[%s6830_s27 + $0x264] ss:$8 sps:$4 sm:$0xff]   ;;  %v5919_v24 = vld [vmem:[%s6830_s27 + $0x160] ss:$8 sps:$4 sm:$0xff]  }
  0xea   : > { %3706 = vmatprep.subr.bf16.mxu0 %v5871_v60  ;;  %5741 = vmatprep.subr.bf16.mxu1 %v5871_v60  ;;  %v5926_v51 = vld [vmem:[%s6830_s27 + $0x260] ss:$8 sps:$4 sm:$0xff]   ;;  %v5933_v32 = vld [vmem:[%s6830_s27 + $0x154] ss:$8 sps:$4 sm:$0xff]   ;;  %v5931_v13 = vld [vmem:[%s6830_s27 + $0x150] ss:$8 sps:$4 sm:$0xff]  }
  0xeb   : > { %v5929_v53 = vld [vmem:[#allocation2 + $0x48] ss:$36 sps:$4 sm:$0xff]   ;;  %v5936_v44 = vld [vmem:[%s6830_s27 + $0x254] ss:$8 sps:$4 sm:$0xff]   ;;  %v5934_v26 = vld [vmem:[%s6830_s27 + $0x250] ss:$8 sps:$4 sm:$0xff]  }
  0xec   : > { %v5930_v45 = vld [vmem:[#allocation2 + $0x318] ss:$36 sps:$4 sm:$0xff]   ;;  %v5939_v56 = vld [vmem:[#allocation2 + $0x364] ss:$36 sps:$4 sm:$0xff]   ;;  %v5944_v14 = vld [vmem:[#allocation2 + $0x90] ss:$36 sps:$4 sm:$0xff]  }
  0xed   : > { %3707 = vmatpush1.bf16.msra.mxu0 %v5873_v8  ;;  %5757 = vmatpush1.bf16.msra.mxu1 %v5873_v8  ;;  %v5937_v33 = vld [vmem:[#allocation2 + $0x94] ss:$36 sps:$4 sm:$0xff]   ;;  %v5943_v20 = vld [vmem:[%s6830_s27 + $0x144] ss:$8 sps:$4 sm:$0xff]   ;;  %v5941_v22 = vld [vmem:[%s6830_s27 + $0x140] ss:$8 sps:$4 sm:$0xff]  }
  0xee   : > { %3708 = vmatprep.subr.bf16.mxu0 %v5874_v30  ;;  %5742 = vmatprep.subr.bf16.mxu1 %v5874_v30  ;;  %v5948_v15 = vld [vmem:[%s6830_s27 + $0x244] ss:$8 sps:$4 sm:$0xff]   ;;  %v5946_v59 = vld [vmem:[%s6830_s27 + $0x240] ss:$8 sps:$4 sm:$0xff]   ;;  %v5951_v35 = vld [vmem:[%s6830_s27 + $0x134] ss:$8 sps:$4 sm:$0xff]  }
  0xef   : > { %v5954_v6 = vld [vmem:[%s6830_s27 + $0x234] ss:$8 sps:$4 sm:$0xff]   ;;  %v5945_v52 = vld [vmem:[#allocation2 + $0x360] ss:$36 sps:$4 sm:$0xff]   ;;  %v5949_v29 = vld [vmem:[%s6830_s27 + $0x130] ss:$8 sps:$4 sm:$0xff]  }
  0xf0   : > { %v5952_v43 = vld [vmem:[%s6830_s27 + $0x230] ss:$8 sps:$4 sm:$0xff]   ;;  %v5955_v61 = vld [vmem:[#allocation2 + $0xdc] ss:$36 sps:$4 sm:$0xff]   ;;  %v5963_v57 = vld [vmem:[%s6830_s27 + $0x124] ss:$8 sps:$4 sm:$0xff]  }
  0xf1   : > { %3709 = vmatpush1.bf16.msra.mxu0 %v5876_v58  ;;  %5758 = vmatpush1.bf16.msra.mxu1 %v5876_v58  ;;  %v5957_v21 = vld [vmem:[#allocation2 + $0x3ac] ss:$36 sps:$4 sm:$0xff]   ;;  %v5961_v1 = vld [vmem:[%s6830_s27 + $0x120] ss:$8 sps:$4 sm:$0xff]   ;;  %v5959_v55 = vld [vmem:[#allocation2 + $0xd8] ss:$36 sps:$4 sm:$0xff]  }
  0xf2   : > { %3710 = vmatprep.subr.bf16.mxu0 %v5877_v5  ;;  %5743 = vmatprep.subr.bf16.mxu1 %v5877_v5  ;;  %v5966_v50 = vld [vmem:[%s6830_s27 + $0x224] ss:$8 sps:$4 sm:$0xff]   ;;  %v5964_v3 = vld [vmem:[%s6830_s27 + $0x220] ss:$8 sps:$4 sm:$0xff]   ;;  %v5969_v60 = vld [vmem:[%s6830_s27 + $0x114] ss:$8 sps:$4 sm:$0xff]  }
  0xf3   : > { %v5960_v7 = vld [vmem:[#allocation2 + $0x3a8] ss:$36 sps:$4 sm:$0xff]   ;;  %v5978_v8 = vld [vmem:[%s6830_s27 + $0x214] ss:$8 sps:$4 sm:$0xff]   ;;  %v5967_v30 = vld [vmem:[%s6830_s27 + $0x110] ss:$8 sps:$4 sm:$0xff]  }
  0xf4   : > { %v5970_v58 = vld [vmem:[#allocation2 + $0x124] ss:$36 sps:$4 sm:$0xff]   ;;  %v5972_v5 = vld [vmem:[#allocation2 + $0x3f4] ss:$36 sps:$4 sm:$0xff]   ;;  %s5664_s17 = sshll.u32 (%p6515_p9), %s6393_s22, 1 }
  0xf5   : > { %3711 = vmatpush1.bf16.msra.mxu0 %v5879_v63  ;;  %5759 = vmatpush1.bf16.msra.mxu1 %v5879_v63  ;;  %v5976_v54 = vld [vmem:[%s6830_s27 + $0x210] ss:$8 sps:$4 sm:$0xff]   ;;  %v5981_v63 = vld [vmem:[%s6830_s27 + $0x104] ss:$8 sps:$4 sm:$0xff]  }
  0xf6   : > { %3712 = vmatprep.subr.bf16.mxu0 %v5880_v25  ;;  %5744 = vmatprep.subr.bf16.mxu1 %v5880_v25  ;;  %v5984_v16 = vld [vmem:[%s6830_s27 + $0x204] ss:$8 sps:$4 sm:$0xff]   ;;  %v5979_v25 = vld [vmem:[%s6830_s27 + $0x100] ss:$8 sps:$4 sm:$0xff]  }
  0xf9   : > { %3713 = vmatpush1.bf16.msra.mxu0 %v5882_v34  ;;  %5760 = vmatpush1.bf16.msra.mxu1 %v5882_v34  ;;  %v5982_v34 = vld [vmem:[%s6830_s27 + $0x200] ss:$8 sps:$4 sm:$0xff]  }
  0xfa   : > { %3714 = vmatprep.subr.bf16.mxu0 %v5883_v37  ;;  %5745 = vmatprep.subr.bf16.mxu1 %v5883_v37  ;;  %v5974_v37 = vld [vmem:[#allocation2 + $0x120] ss:$36 sps:$4 sm:$0xff]  }
  0xfd   : > { %3715 = vmatpush2.bf16.msra.mxu0 %v5885_v27  ;;  %5761 = vmatpush2.bf16.msra.mxu1 %v5885_v27  ;;  %v5975_v27 = vld [vmem:[#allocation2 + $0x3f0] ss:$36 sps:$4 sm:$0xff]  }
  0xfe   : > { %3716 = vmatprep.subr.bf16.mxu0 %v5886_v23  ;;  %5746 = vmatprep.subr.bf16.mxu1 %v5886_v23  ;;  %v5993_v23 = vld [vmem:[%s6830_s27 + $0x1f4] ss:$8 sps:$4 sm:$0xff]  }
 0x101   : > { %3717 = vmatpush2.bf16.msra.mxu0 %v5888_v9  ;;  %5762 = vmatpush2.bf16.msra.mxu1 %v5888_v9  ;;  %v5996_v9 = vld [vmem:[%s6830_s27 + $0x2f4] ss:$8 sps:$4 sm:$0xff]  }
 0x102   : > { %3718 = vmatprep.subr.bf16.mxu0 %v5889_v4  ;;  %5747 = vmatprep.subr.bf16.mxu1 %v5889_v4  ;;  %v5985_v4 = vld [vmem:[#allocation2 + $0x16c] ss:$36 sps:$4 sm:$0xff]  }
 0x105   : > { %3719 = vmatpush2.bf16.msra.mxu0 %v5891_v42  ;;  %5763 = vmatpush2.bf16.msra.mxu1 %v5891_v42  ;;  %v5987_v42 = vld [vmem:[#allocation2 + $0x43c] ss:$36 sps:$4 sm:$0xff]  }
 0x106   : > { %3720 = vmatprep.subr.bf16.mxu0 %v5892_v11  ;;  %5748 = vmatprep.subr.bf16.mxu1 %v5892_v11  ;;  %v5991_v11 = vld [vmem:[%s6830_s27 + $0x1f0] ss:$8 sps:$4 sm:$0xff]  }
 0x109   : > { %3721 = vmatpush2.bf16.msra.mxu0 %v5894_v36  ;;  %5764 = vmatpush2.bf16.msra.mxu1 %v5894_v36  ;;  %v5994_v36 = vld [vmem:[%s6830_s27 + $0x2f0] ss:$8 sps:$4 sm:$0xff]  }
 0x10a   : > { %3722 = vmatprep.subr.bf16.mxu0 %v5895_v28  ;;  %5749 = vmatprep.subr.bf16.mxu1 %v5895_v28  ;;  %v5999_v28 = vld [vmem:[%s6830_s27 + $0x1e4] ss:$8 sps:$4 sm:$0xff]  }
 0x10d   : > { %3723 = vmatpush2.bf16.msra.mxu0 %v5897_v12  ;;  %5765 = vmatpush2.bf16.msra.mxu1 %v5897_v12  ;;  %v6006_v12 = vld [vmem:[%s6830_s27 + $0x2e4] ss:$8 sps:$4 sm:$0xff]  }
 0x10e   : > { %3724 = vmatprep.subr.bf16.mxu0 %v5898_v48  ;;  %5750 = vmatprep.subr.bf16.mxu1 %v5898_v48  ;;  %v5997_v48 = vld [vmem:[%s6830_s27 + $0x1e0] ss:$8 sps:$4 sm:$0xff]  }
 0x111   : > { %3725 = vmatpush2.bf16.msra.mxu0 %v5900_v39  ;;  %5766 = vmatpush2.bf16.msra.mxu1 %v5900_v39  ;;  %v6004_v39 = vld [vmem:[%s6830_s27 + $0x2e0] ss:$8 sps:$4 sm:$0xff]  }
 0x112   : > { %3726 = vmatprep.subr.bf16.mxu0 %v5901_v41  ;;  %5751 = vmatprep.subr.bf16.mxu1 %v5901_v41  ;;  %v5989_v41 = vld [vmem:[#allocation2 + $0x168] ss:$36 sps:$4 sm:$0xff]  }
 0x115   : > { %3727 = vmatpush2.bf16.msra.mxu0 %v5903_v62  ;;  %5767 = vmatpush2.bf16.msra.mxu1 %v5903_v62  ;;  %v5990_v62 = vld [vmem:[#allocation2 + $0x438] ss:$36 sps:$4 sm:$0xff]  }
 0x116   : > { %3728 = vmatprep.subr.bf16.mxu0 %v5904_v46  ;;  %5752 = vmatprep.subr.bf16.mxu1 %v5904_v46  ;;  %v6011_v46 = vld [vmem:[%s6830_s27 + $0x1d4] ss:$8 sps:$4 sm:$0xff]  }
 0x119   : > { %3729 = vmatpush2.bf16.msra.mxu0 %v5906_v19  ;;  %5768 = vmatpush2.bf16.msra.mxu1 %v5906_v19  ;;  %v6014_v19 = vld [vmem:[%s6830_s27 + $0x2d4] ss:$8 sps:$4 sm:$0xff]  }
 0x11a   : > { %3931 = vmatprep.subr.bf16.mxu1 %v5915_v0  ;;  %4164 = vmatprep.subr.bf16.mxu0 %v5918_v31  ;;  %v6000_v0 = vld [vmem:[#allocation2 + $0x1b4] ss:$36 sps:$4 sm:$0xff]  }
 0x11b   : > { %v6009_v31 = vld [vmem:[%s6830_s27 + $0x1d0] ss:$8 sps:$4 sm:$0xff]  }
 0x11c   : > { %3731 = vmatmul.mubr.bf16.vlgmr.msra.gmra.mxu0 %v5907_v38  ;;  %3831 = vmatmul.mubr.bf16.vlgmr.msra.gmra.mxu1 %v5910_v49  ;;  %v6002_v38 = vld [vmem:[#allocation2 + $0x484] ss:$36 sps:$4 sm:$0xff]   ;;  %v6012_v49 = vld [vmem:[%s6830_s27 + $0x2d0] ss:$8 sps:$4 sm:$0xff]  }
 0x11d   : > { %3932 = vmatpush1.bf16.msra.mxu1 %v5913_v17  ;;  %4165 = vmatpush1.bf16.msra.mxu0 %v5916_v10  ;;  %v6021_v17 = vld [vmem:[%s6830_s27 + $0x1c4] ss:$8 sps:$4 sm:$0xff]  }
 0x11e   : > { %3933 = vmatprep.subr.bf16.mxu1 %v5921_v47  ;;  %3740 = vmatprep.mubr.bf16.mxu0 %v5922_v18  ;;  %v6026_v10 = vld [vmem:[%s6830_s27 + $0x2c4] ss:$8 sps:$4 sm:$0xff]   ;;  %v6019_v47 = vld [vmem:[%s6830_s27 + $0x1c0] ss:$8 sps:$4 sm:$0xff]  }
 0x11f   : > { %3840 = vmatprep.mubr.bf16.mxu1 %v5924_v2  ;;  %4166 = vmatprep.subr.bf16.mxu0 %v5928_v40  ;;  %v6024_v18 = vld [vmem:[%s6830_s27 + $0x2c0] ss:$8 sps:$4 sm:$0xff]   ;;  %v6007_v2 = vld [vmem:[#allocation2 + $0x1b0] ss:$36 sps:$4 sm:$0xff]  }
 0x120   : > { %v6008_v40 = vld [vmem:[#allocation2 + $0x480] ss:$36 sps:$4 sm:$0xff]  }
 0x121   : > { %3934 = vmatpush1.bf16.msra.mxu1 %v5919_v24  ;;  %4167 = vmatpush1.bf16.msra.mxu0 %v5926_v51  ;;  %v6029_v24 = vld [vmem:[%s6830_s27 + $0x1b4] ss:$8 sps:$4 sm:$0xff]  }
 0x122   : > { %3935 = vmatprep.subr.bf16.mxu1 %v5933_v32  ;;  %4168 = vmatprep.subr.bf16.mxu0 %v5936_v44  ;;  %v6032_v51 = vld [vmem:[%s6830_s27 + $0x2b4] ss:$8 sps:$4 sm:$0xff]   ;;  %v6027_v44 = vld [vmem:[%s6830_s27 + $0x1b0] ss:$8 sps:$4 sm:$0xff]  }
 0x123   : > { %v6015_v32 = vld [vmem:[#allocation2 + $0x1fc] ss:$36 sps:$4 sm:$0xff]  }
 0x124   : > { %3741 = vmatmul.mubr.bf16.gmra.mxu0 %v5929_v53  ;;  %3841 = vmatmul.mubr.bf16.gmra.mxu1 %v5930_v45  ;;  %v6017_v53 = vld [vmem:[#allocation2 + $0x4cc] ss:$36 sps:$4 sm:$0xff]  }
 0x125   : > { %3936 = vmatpush1.bf16.msra.mxu1 %v5931_v13  ;;  %4169 = vmatpush1.bf16.msra.mxu0 %v5934_v26  ;;  %v6030_v45 = vld [vmem:[%s6830_s27 + $0x2b0] ss:$8 sps:$4 sm:$0xff]   ;;  %v6041_v13 = vld [vmem:[%s6830_s27 + $0x1a4] ss:$8 sps:$4 sm:$0xff]  }
 0x126   : > { %3750 = vmatprep.mubr.bf16.mxu0 %v5937_v33  ;;  %3850 = vmatprep.mubr.bf16.mxu1 %v5939_v56  ;;  %v6044_v26 = vld [vmem:[%s6830_s27 + $0x2a4] ss:$8 sps:$4 sm:$0xff]   ;;  %v6039_v33 = vld [vmem:[%s6830_s27 + $0x1a0] ss:$8 sps:$4 sm:$0xff]  }
 0x127   : > { %3937 = vmatprep.subr.bf16.mxu1 %v5943_v20  ;;  %4170 = vmatprep.subr.bf16.mxu0 %v5948_v15  ;;  %v6042_v56 = vld [vmem:[%s6830_s27 + $0x2a0] ss:$8 sps:$4 sm:$0xff]   ;;  %v6022_v20 = vld [vmem:[#allocation2 + $0x1f8] ss:$36 sps:$4 sm:$0xff]  }
 0x128   : > { %v6023_v15 = vld [vmem:[#allocation2 + $0x4c8] ss:$36 sps:$4 sm:$0xff]  }
 0x129   : > { %3938 = vmatpush1.bf16.msra.mxu1 %v5941_v22  ;;  %4171 = vmatpush1.bf16.msra.mxu0 %v5946_v59  ;;  %v6047_v22 = vld [vmem:[%s6830_s27 + $0x194] ss:$8 sps:$4 sm:$0xff]  }
 0x12a   : > { %3939 = vmatprep.subr.bf16.mxu1 %v5951_v35  ;;  %4172 = vmatprep.subr.bf16.mxu0 %v5954_v6  ;;  %v6056_v59 = vld [vmem:[%s6830_s27 + $0x294] ss:$8 sps:$4 sm:$0xff]   ;;  %v6033_v35 = vld [vmem:[#allocation2 + $0x244] ss:$36 sps:$4 sm:$0xff]   ;;  %v6045_v6 = vld [vmem:[%s6830_s27 + $0x190] ss:$8 sps:$4 sm:$0xff]  }
 0x12c   : > { %3751 = vmatmul.mubr.bf16.gmra.mxu0 %v5944_v14  ;;  %3851 = vmatmul.mubr.bf16.gmra.mxu1 %v5945_v52  ;;  %v6035_v14 = vld [vmem:[#allocation2 + $0x514] ss:$36 sps:$4 sm:$0xff]  }
 0x12d   : > { %3940 = vmatpush1.bf16.msra.mxu1 %v5949_v29  ;;  %3760 = vmatprep.mubr.bf16.mxu0 %v5955_v61  ;;  %v6054_v52 = vld [vmem:[%s6830_s27 + $0x290] ss:$8 sps:$4 sm:$0xff]   ;;  %v6059_v29 = vld [vmem:[%s6830_s27 + $0x184] ss:$8 sps:$4 sm:$0xff]   ;;  %v6057_v61 = vld [vmem:[%s6830_s27 + $0x180] ss:$8 sps:$4 sm:$0xff]  }
 0x12e   : > { %3860 = vmatprep.mubr.bf16.mxu1 %v5957_v21  ;;  %4173 = vmatpush1.bf16.msra.mxu0 %v5952_v43  ;;  %v6062_v43 = vld [vmem:[%s6830_s27 + $0x284] ss:$8 sps:$4 sm:$0xff]   ;;  %v6060_v21 = vld [vmem:[%s6830_s27 + $0x280] ss:$8 sps:$4 sm:$0xff]  }
 0x12f   : > { %3941 = vmatprep.subr.bf16.mxu1 %v5963_v57  ;;  %4174 = vmatprep.subr.bf16.mxu0 %v5966_v50  ;;  %v6037_v57 = vld [vmem:[#allocation2 + $0x240] ss:$36 sps:$4 sm:$0xff]   ;;  %v6071_v50 = vld [vmem:[%s6830_s27 + $0x374] ss:$8 sps:$4 sm:$0xff]  }
 0x131   : > { %3942 = vmatpush1.bf16.msra.mxu1 %v5961_v1  ;;  %v6074_v1 = vld [vmem:[%s6830_s27 + $0x474] ss:$8 sps:$4 sm:$0xff]  }
 0x132   : > { %4175 = vmatpush1.bf16.msra.mxu0 %v5964_v3  ;;  %3943 = vmatprep.subr.bf16.mxu1 %v5969_v60  ;;  %v6038_v3 = vld [vmem:[#allocation2 + $0x510] ss:$36 sps:$4 sm:$0xff]   ;;  %v6052_v60 = vld [vmem:[#allocation2 + $0x288] ss:$36 sps:$4 sm:$0xff]  }
 0x133   : > { %4176 = vmatprep.subr.bf16.mxu0 %v5978_v8  ;;  %v6053_v8 = vld [vmem:[#allocation2 + $0x558] ss:$36 sps:$4 sm:$0xff]  }
 0x134   : > { %3761 = vmatmul.mubr.bf16.gmra.mxu0 %v5959_v55  ;;  %3861 = vmatmul.mubr.bf16.gmra.mxu1 %v5960_v7  ;;  %v6048_v55 = vld [vmem:[#allocation2 + $0x28c] ss:$36 sps:$4 sm:$0xff]   ;;  %v6050_v7 = vld [vmem:[#allocation2 + $0x55c] ss:$36 sps:$4 sm:$0xff]  }
 0x135   : > { %3770 = vmatprep.mubr.bf16.mxu0 %v5970_v58  ;;  %3870 = vmatprep.mubr.bf16.mxu1 %v5972_v5  ;;  %v6068_v58 = vld [vmem:[#allocation2 + $0x14] ss:$36 sps:$4 sm:$0xff]   ;;  %v6063_v5 = vld [vmem:[#allocation2 + $0x8] ss:$36 sps:$4 sm:$0xff]  }
 0x136   : > { %3944 = vmatpush1.bf16.msra.mxu1 %v5967_v30  ;;  %4177 = vmatpush1.bf16.msra.mxu0 %v5976_v54  ;;  %v6065_v30 = vld [vmem:[#allocation2 + $0xc] ss:$36 sps:$4 sm:$0xff]  }
 0x137   : > { %3945 = vmatprep.subr.bf16.mxu1 %v5981_v63  ;;  %4178 = vmatprep.subr.bf16.mxu0 %v5984_v16  ;;  %v6066_v54 = vld [vmem:[#allocation2 + $0x10] ss:$36 sps:$4 sm:$0xff]  }
 0x138   : > { %v6069_v63 = vld [vmem:[%s6830_s27 + $0x370] ss:$8 sps:$4 sm:$0xff]  }
 0x139   : > { %v6072_v16 = vld [vmem:[%s6830_s27 + $0x470] ss:$8 sps:$4 sm:$0xff]  }
 0x13a   : > { %3946 = vmatpush1.bf16.msra.mxu1 %v5979_v25  ;;  %4179 = vmatpush1.bf16.msra.mxu0 %v5982_v34  ;;  %v6075_v25 = vld [vmem:[#allocation2 + $0x54] ss:$36 sps:$4 sm:$0xff]   ;;  %v6077_v34 = vld [vmem:[#allocation2 + $0x5c] ss:$36 sps:$4 sm:$0xff]  }
 0x13b   : > { %3947 = vmatprep.subr.bf16.mxu1 %v5993_v23  ;;  %4180 = vmatprep.subr.bf16.mxu0 %v5996_v9  ;;  %v6081_v23 = vld [vmem:[%s6830_s27 + $0x360] ss:$8 sps:$4 sm:$0xff]   ;;  %v6092_v9 = vld [vmem:[%s6830_s27 + $0x354] ss:$8 sps:$4 sm:$0xff]  }
 0x13c   : > { %3771 = vmatmul.mubr.bf16.gmra.mxu0 %v5974_v37  ;;  %3871 = vmatmul.mubr.bf16.gmra.mxu1 %v5975_v27  ;;  %v6083_v37 = vld [vmem:[%s6830_s27 + $0x364] ss:$8 sps:$4 sm:$0xff]  }
 0x13d   : > { %3780 = vmatprep.mubr.bf16.mxu0 %v5985_v4  ;;  %3880 = vmatprep.mubr.bf16.mxu1 %v5987_v42  ;;  %v6095_v27 = vld [vmem:[%s6830_s27 + $0x464] ss:$8 sps:$4 sm:$0xff]   ;;  %v6093_v4 = vld [vmem:[%s6830_s27 + $0x460] ss:$8 sps:$4 sm:$0xff]   ;;  %v6079_v42 = vld [vmem:[#allocation2 + $0x50] ss:$36 sps:$4 sm:$0xff]  }
 0x13e   : > { %3948 = vmatpush2.bf16.msra.mxu1 %v5991_v11  ;;  %4181 = vmatpush2.bf16.msra.mxu0 %v5994_v36  ;;  %v6122_v11 = vld [vmem:[%s6830_s27 + $0x454] ss:$8 sps:$4 sm:$0xff]  }
 0x13f   : > { %3949 = vmatprep.subr.bf16.mxu1 %v5999_v28  ;;  %4182 = vmatprep.subr.bf16.mxu0 %v6006_v12  ;;  %v6080_v36 = vld [vmem:[#allocation2 + $0x58] ss:$36 sps:$4 sm:$0xff]   ;;  %v6086_v12 = vld [vmem:[#allocation2 + $0xa4] ss:$36 sps:$4 sm:$0xff]  }
 0x140   : > { %v6084_v28 = vld [vmem:[#allocation2 + $0x9c] ss:$36 sps:$4 sm:$0xff]  }
 0x142   : > { %3950 = vmatpush2.bf16.msra.mxu1 %v5997_v48  ;;  %4183 = vmatpush2.bf16.msra.mxu0 %v6004_v39  ;;  %v6090_v48 = vld [vmem:[%s6830_s27 + $0x350] ss:$8 sps:$4 sm:$0xff]   ;;  %v6104_v39 = vld [vmem:[%s6830_s27 + $0x344] ss:$8 sps:$4 sm:$0xff]  }
 0x143   : > { %3951 = vmatprep.subr.bf16.mxu1 %v6011_v46  ;;  %4184 = vmatprep.subr.bf16.mxu0 %v6014_v19  ;;  %v6102_v46 = vld [vmem:[%s6830_s27 + $0x340] ss:$8 sps:$4 sm:$0xff]   ;;  %v6088_v19 = vld [vmem:[#allocation2 + $0x98] ss:$36 sps:$4 sm:$0xff]  }
 0x144   : > { %3781 = vmatmul.mubr.bf16.gmra.mxu0 %v5989_v41  ;;  %3881 = vmatmul.mubr.bf16.gmra.mxu1 %v5990_v62  ;;  %v6120_v41 = vld [vmem:[%s6830_s27 + $0x450] ss:$8 sps:$4 sm:$0xff]   ;;  %v6143_v62 = vld [vmem:[%s6830_s27 + $0x444] ss:$8 sps:$4 sm:$0xff]  }
 0x145   : > { %3790 = vmatprep.mubr.bf16.mxu0 %v6000_v0  ;;  %3890 = vmatprep.mubr.bf16.mxu1 %v6002_v38  ;;  %v6089_v0 = vld [vmem:[#allocation2 + $0xa0] ss:$36 sps:$4 sm:$0xff]   ;;  %v6119_v38 = vld [vmem:[%s6830_s27 + $0x334] ss:$8 sps:$4 sm:$0xff]  }
 0x146   : > { %3952 = vmatpush2.bf16.msra.mxu1 %v6009_v31  ;;  %4185 = vmatpush2.bf16.msra.mxu0 %v6012_v49  ;;  %v6141_v31 = vld [vmem:[%s6830_s27 + $0x440] ss:$8 sps:$4 sm:$0xff]   ;;  %v6170_v49 = vld [vmem:[%s6830_s27 + $0x434] ss:$8 sps:$4 sm:$0xff]  }
 0x147   : > { %3953 = vmatprep.subr.bf16.mxu1 %v6021_v17  ;;  %4186 = vmatprep.subr.bf16.mxu0 %v6026_v10  ;;  %v6096_v17 = vld [vmem:[#allocation2 + $0xe4] ss:$36 sps:$4 sm:$0xff]   ;;  %v6098_v10 = vld [vmem:[#allocation2 + $0xec] ss:$36 sps:$4 sm:$0xff]  }
 0x14a   : > { %3954 = vmatpush2.bf16.msra.mxu1 %v6019_v47  ;;  %4187 = vmatpush2.bf16.msra.mxu0 %v6024_v18  ;;  %v6117_v47 = vld [vmem:[%s6830_s27 + $0x330] ss:$8 sps:$4 sm:$0xff]   ;;  %v6131_v18 = vld [vmem:[%s6830_s27 + $0x324] ss:$8 sps:$4 sm:$0xff]  }
 0x14b   : > { %3955 = vmatprep.subr.bf16.mxu1 %v6029_v24  ;;  %4188 = vmatprep.subr.bf16.mxu0 %v6032_v51  ;;  %v6129_v24 = vld [vmem:[%s6830_s27 + $0x320] ss:$8 sps:$4 sm:$0xff]   ;;  %v6140_v51 = vld [vmem:[%s6830_s27 + $0x314] ss:$8 sps:$4 sm:$0xff]  }
 0x14c   : > { %3791 = vmatmul.mubr.bf16.gmra.mxu0 %v6007_v2  ;;  %3891 = vmatmul.mubr.bf16.gmra.mxu1 %v6008_v40  ;;  %v6168_v2 = vld [vmem:[%s6830_s27 + $0x430] ss:$8 sps:$4 sm:$0xff]   ;;  %v6191_v40 = vld [vmem:[%s6830_s27 + $0x424] ss:$8 sps:$4 sm:$0xff]  }
 0x14d   : > { %3800 = vmatprep.mubr.bf16.mxu0 %v6015_v32  ;;  %3900 = vmatprep.mubr.bf16.mxu1 %v6017_v53  ;;  %v6100_v32 = vld [vmem:[#allocation2 + $0xe0] ss:$36 sps:$4 sm:$0xff]   ;;  %v6101_v53 = vld [vmem:[#allocation2 + $0xe8] ss:$36 sps:$4 sm:$0xff]  }
 0x14e   : > { %3956 = vmatpush2.bf16.msra.mxu1 %v6027_v44  ;;  %4189 = vmatpush2.bf16.msra.mxu0 %v6030_v45  ;;  %v6189_v44 = vld [vmem:[%s6830_s27 + $0x420] ss:$8 sps:$4 sm:$0xff]   ;;  %v6218_v45 = vld [vmem:[%s6830_s27 + $0x414] ss:$8 sps:$4 sm:$0xff]  }
 0x14f   : > { %3957 = vmatprep.subr.bf16.mxu1 %v6041_v13  ;;  %4190 = vmatprep.subr.bf16.mxu0 %v6044_v26  ;;  %v6105_v13 = vld [vmem:[#allocation2 + $0x12c] ss:$36 sps:$4 sm:$0xff]   ;;  %v6107_v26 = vld [vmem:[#allocation2 + $0x134] ss:$36 sps:$4 sm:$0xff]  }
 0x152   : > { %3958 = vmatpush2.bf16.msra.mxu1 %v6039_v33  ;;  %4191 = vmatpush2.bf16.msra.mxu0 %v6042_v56  ;;  %v6138_v33 = vld [vmem:[%s6830_s27 + $0x310] ss:$8 sps:$4 sm:$0xff]   ;;  %v6152_v56 = vld [vmem:[%s6830_s27 + $0x304] ss:$8 sps:$4 sm:$0xff]  }
 0x153   : > { %3959 = vmatprep.subr.bf16.mxu1 %v6047_v22  ;;  %4192 = vmatprep.subr.bf16.mxu0 %v6056_v59  ;;  %v6150_v22 = vld [vmem:[%s6830_s27 + $0x300] ss:$8 sps:$4 sm:$0xff]  }
 0x154   : > { %3801 = vmatmul.mubr.bf16.gmra.mxu0 %v6022_v20  ;;  %3901 = vmatmul.mubr.bf16.gmra.mxu1 %v6023_v15  ;;  %v6216_v20 = vld [vmem:[%s6830_s27 + $0x410] ss:$8 sps:$4 sm:$0xff]   ;;  %v6239_v15 = vld [vmem:[%s6830_s27 + $0x404] ss:$8 sps:$4 sm:$0xff]   ;;  %v6237_v59 = vld [vmem:[%s6830_s27 + $0x400] ss:$8 sps:$4 sm:$0xff]  }
 0x155   : > { %3810 = vmatprep.mubr.bf16.mxu0 %v6033_v35  ;;  %3910 = vmatprep.mubr.bf16.mxu1 %v6035_v14  ;;  %v6167_v35 = vld [vmem:[%s6830_s27 + $0x3f4] ss:$8 sps:$4 sm:$0xff]   ;;  %v6109_v14 = vld [vmem:[#allocation2 + $0x128] ss:$36 sps:$4 sm:$0xff]  }
 0x156   : > { %3960 = vmatpush2.bf16.msra.mxu1 %v6045_v6  ;;  %4193 = vmatpush2.bf16.msra.mxu0 %v6054_v52  ;;  %v6110_v6 = vld [vmem:[#allocation2 + $0x130] ss:$36 sps:$4 sm:$0xff]  }
 0x157   : > { %3961 = vmatprep.subr.bf16.mxu1 %v6059_v29  ;;  %4194 = vmatprep.subr.bf16.mxu0 %v6062_v43  ;;  %v6111_v52 = vld [vmem:[#allocation2 + $0x174] ss:$36 sps:$4 sm:$0xff]   ;;  %v6113_v29 = vld [vmem:[#allocation2 + $0x17c] ss:$36 sps:$4 sm:$0xff]  }
 0x158   : > { %v6165_v43 = vld [vmem:[%s6830_s27 + $0x3f0] ss:$8 sps:$4 sm:$0xff]  }
 0x15a   : > { %3962 = vmatpush2.bf16.msra.mxu1 %v6057_v61  ;;  %4195 = vmatpush2.bf16.msra.mxu0 %v6060_v21  ;;  %v6179_v61 = vld [vmem:[%s6830_s27 + $0x3e4] ss:$8 sps:$4 sm:$0xff]   ;;  %v6177_v21 = vld [vmem:[%s6830_s27 + $0x3e0] ss:$8 sps:$4 sm:$0xff]  }
 0x15b   : > { %4397 = vmatprep.subr.bf16.mxu1 %v6071_v50  ;;  %4630 = vmatprep.subr.bf16.mxu0 %v6074_v1  ;;  %v6115_v50 = vld [vmem:[#allocation2 + $0x170] ss:$36 sps:$4 sm:$0xff]   ;;  %v6116_v1 = vld [vmem:[#allocation2 + $0x178] ss:$36 sps:$4 sm:$0xff]  }
 0x15c   : > { %3811 = vmatmul.mubr.bf16.gmra.mxu0 %v6037_v57  ;;  %3911 = vmatmul.mubr.bf16.gmra.mxu1 %v6038_v3  ;;  %v6188_v57 = vld [vmem:[%s6830_s27 + $0x3d4] ss:$8 sps:$4 sm:$0xff]  }
 0x15d   : > { %3820 = vmatprep.mubr.bf16.mxu0 %v6048_v55  ;;  %3920 = vmatprep.mubr.bf16.mxu1 %v6050_v7  ;;  %v6123_v3 = vld [vmem:[#allocation2 + $0x1bc] ss:$36 sps:$4 sm:$0xff]   ;;  %v6125_v55 = vld [vmem:[#allocation2 + $0x1c4] ss:$36 sps:$4 sm:$0xff]   ;;  %v6186_v7 = vld [vmem:[%s6830_s27 + $0x3d0] ss:$8 sps:$4 sm:$0xff]  }
 0x164   : > { %3821 = vmatmul.mubr.bf16.gmra.mxu0 %v6052_v60  ;;  %3921 = vmatmul.mubr.bf16.gmra.mxu1 %v6053_v8  ;;  %v6200_v60 = vld [vmem:[%s6830_s27 + $0x3c4] ss:$8 sps:$4 sm:$0xff]   ;;  %v6198_v8 = vld [vmem:[%s6830_s27 + $0x3c0] ss:$8 sps:$4 sm:$0xff]  }
 0x165   : > { %3963 = vmatprep.mubr.bf16.mxu1 %v6065_v30  ;;  %4196 = vmatprep.mubr.bf16.mxu0 %v6068_v58  ;;  %v6215_v30 = vld [vmem:[%s6830_s27 + $0x3b4] ss:$8 sps:$4 sm:$0xff]  }
 0x166   : > { %v6127_v58 = vld [vmem:[#allocation2 + $0x1b8] ss:$36 sps:$4 sm:$0xff]  }
 0x16c   : > { %3964 = vmatmul.mubr.bf16.vlgmr.msra.gmra.mxu1 %v6063_v5  ;;  %4197 = vmatmul.mubr.bf16.vlgmr.msra.gmra.mxu0 %v6066_v54  ;;  %v6128_v5 = vld [vmem:[#allocation2 + $0x1c0] ss:$36 sps:$4 sm:$0xff]  }
 0x16d   : > { %4398 = vmatpush1.bf16.msra.mxu1 %v6069_v63  ;;  %4631 = vmatpush1.bf16.msra.mxu0 %v6072_v16  ;;  %v6132_v54 = vld [vmem:[#allocation2 + $0x204] ss:$36 sps:$4 sm:$0xff]   ;;  %v6134_v63 = vld [vmem:[#allocation2 + $0x20c] ss:$36 sps:$4 sm:$0xff]  }
 0x16e   : > { %3973 = vmatprep.mubr.bf16.mxu1 %v6075_v25  ;;  %4206 = vmatprep.mubr.bf16.mxu0 %v6077_v34  ;;  %v6213_v16 = vld [vmem:[%s6830_s27 + $0x3b0] ss:$8 sps:$4 sm:$0xff]   ;;  %v6227_v25 = vld [vmem:[%s6830_s27 + $0x3a4] ss:$8 sps:$4 sm:$0xff]   ;;  %v6225_v34 = vld [vmem:[%s6830_s27 + $0x3a0] ss:$8 sps:$4 sm:$0xff]  }
 0x16f   : > { %4399 = vmatprep.subr.bf16.mxu1 %v6083_v37  ;;  %4632 = vmatprep.subr.bf16.mxu0 %v6095_v27  ;;  %v6236_v37 = vld [vmem:[%s6830_s27 + $0x394] ss:$8 sps:$4 sm:$0xff]   ;;  %v6136_v27 = vld [vmem:[#allocation2 + $0x200] ss:$36 sps:$4 sm:$0xff]  }
 0x171   : > { %4400 = vmatpush1.bf16.msra.mxu1 %v6081_v23  ;;  %4633 = vmatpush1.bf16.msra.mxu0 %v6093_v4  ;;  %v6137_v23 = vld [vmem:[#allocation2 + $0x208] ss:$36 sps:$4 sm:$0xff]   ;;  %v6146_v4 = vld [vmem:[#allocation2 + $0x254] ss:$36 sps:$4 sm:$0xff]  }
 0x172   : > { %4401 = vmatprep.subr.bf16.mxu1 %v6092_v9  ;;  %4634 = vmatprep.subr.bf16.mxu0 %v6122_v11  ;;  %v6144_v9 = vld [vmem:[#allocation2 + $0x24c] ss:$36 sps:$4 sm:$0xff]  }
 0x173   : > { %v6248_v11 = vld [vmem:[%s6830_s27 + $0x384] ss:$8 sps:$4 sm:$0xff]  }
 0x174   : > { %3974 = vmatmul.mubr.bf16.gmra.mxu1 %v6079_v42  ;;  %4207 = vmatmul.mubr.bf16.gmra.mxu0 %v6080_v36  ;;  %v6234_v42 = vld [vmem:[%s6830_s27 + $0x390] ss:$8 sps:$4 sm:$0xff]   ;;  %v6246_v36 = vld [vmem:[%s6830_s27 + $0x380] ss:$8 sps:$4 sm:$0xff]   ;;  %s5689_s27 = smul.u32 (%p6515_p9), 160, %s6397_s23 }
 0x175   : > { %3983 = vmatprep.mubr.bf16.mxu1 %v6084_v28  ;;  %4216 = vmatprep.mubr.bf16.mxu0 %v6086_v12  ;;  %v6148_v28 = vld [vmem:[#allocation2 + $0x248] ss:$36 sps:$4 sm:$0xff]   ;;  %v6149_v12 = vld [vmem:[#allocation2 + $0x250] ss:$36 sps:$4 sm:$0xff]  }
 0x176   : > { %4402 = vmatpush1.bf16.msra.mxu1 %v6090_v48  ;;  %4635 = vmatpush1.bf16.msra.mxu0 %v6120_v41  ;;  %v6153_v48 = vld [vmem:[#allocation2 + $0x294] ss:$36 sps:$4 sm:$0xff]   ;;  %s4953_s11 = sadd.s32 (%p6515_p9), %s5689_s27, %s5664_s17 }
 0x177   : > { %4403 = vmatprep.subr.bf16.mxu1 %v6104_v39  ;;  %4636 = vmatprep.subr.bf16.mxu0 %v6143_v62  ;;  %v6155_v39 = vld [vmem:[#allocation2 + $0x29c] ss:$36 sps:$4 sm:$0xff]   ;;  %v6157_v41 = vld [vmem:[#allocation2 + $0x290] ss:$36 sps:$4 sm:$0xff]   ;;  %s5666_s20 = sshll.u32 (%p6515_p9), %s4953_s11, 3 }
 0x178   : > { %v6158_v62 = vld [vmem:[#allocation2 + $0x298] ss:$36 sps:$4 sm:$0xff]   ;;  %s8378_s23 = scalar_lea.vmem (%p6515_p9), %s8560_s5, %s5666_s20 }
 0x17a   : > { %4404 = vmatpush1.bf16.msra.mxu1 %v6102_v46  ;;  %4637 = vmatpush1.bf16.msra.mxu0 %v6141_v31  ;;  %v6159_v46 = vld [vmem:[#allocation2 + $0x2dc] ss:$36 sps:$4 sm:$0xff]   ;;  %v6171_v31 = vld [vmem:[#allocation2 + $0x324] ss:$36 sps:$4 sm:$0xff]  }
 0x17b   : > { %4405 = vmatprep.subr.bf16.mxu1 %v6119_v38  ;;  %4638 = vmatprep.subr.bf16.mxu0 %v6170_v49  ;;  %v6164_v38 = vld [vmem:[#allocation2 + $0x2e0] ss:$36 sps:$4 sm:$0xff]   ;;  %v6173_v49 = vld [vmem:[#allocation2 + $0x32c] ss:$36 sps:$4 sm:$0xff]  }
 0x17c   : > { %3984 = vmatmul.mubr.bf16.gmra.mxu1 %v6088_v19  ;;  %4217 = vmatmul.mubr.bf16.gmra.mxu0 %v6089_v0  ;;  %v6161_v19 = vld [vmem:[#allocation2 + $0x2e4] ss:$36 sps:$4 sm:$0xff]   ;;  %v6163_v0 = vld [vmem:[#allocation2 + $0x2d8] ss:$36 sps:$4 sm:$0xff]  }
 0x17d   : > { %3993 = vmatprep.mubr.bf16.mxu1 %v6096_v17  ;;  %4226 = vmatprep.mubr.bf16.mxu0 %v6098_v10  ;;  %v6175_v17 = vld [vmem:[#allocation2 + $0x320] ss:$36 sps:$4 sm:$0xff]   ;;  %v6176_v10 = vld [vmem:[#allocation2 + $0x328] ss:$36 sps:$4 sm:$0xff]  }
 0x17e   : > { %4406 = vmatpush1.bf16.msra.mxu1 %v6117_v47  ;;  %4639 = vmatpush1.bf16.msra.mxu0 %v6168_v2  ;;  %v6180_v47 = vld [vmem:[#allocation2 + $0x36c] ss:$36 sps:$4 sm:$0xff]  }
 0x17f   : > { %4407 = vmatprep.subr.bf16.mxu1 %v6131_v18  ;;  %4640 = vmatprep.subr.bf16.mxu0 %v6191_v40  ;;  %v6182_v18 = vld [vmem:[#allocation2 + $0x374] ss:$36 sps:$4 sm:$0xff]   ;;  %v6184_v2 = vld [vmem:[#allocation2 + $0x368] ss:$36 sps:$4 sm:$0xff]  }
 0x180   : > { %v6185_v40 = vld [vmem:[#allocation2 + $0x370] ss:$36 sps:$4 sm:$0xff]  }
 0x182   : > { %4408 = vmatpush1.bf16.msra.mxu1 %v6129_v24  ;;  %4641 = vmatpush1.bf16.msra.mxu0 %v6189_v44  ;;  %v6192_v24 = vld [vmem:[#allocation2 + $0x3b4] ss:$36 sps:$4 sm:$0xff]   ;;  %v6201_v44 = vld [vmem:[#allocation2 + $0x3fc] ss:$36 sps:$4 sm:$0xff]  }
 0x183   : > { %4409 = vmatprep.subr.bf16.mxu1 %v6140_v51  ;;  %4642 = vmatprep.subr.bf16.mxu0 %v6218_v45  ;;  %v6194_v51 = vld [vmem:[#allocation2 + $0x3bc] ss:$36 sps:$4 sm:$0xff]   ;;  %v6203_v45 = vld [vmem:[#allocation2 + $0x404] ss:$36 sps:$4 sm:$0xff]  }
 0x184   : > { %3994 = vmatmul.mubr.bf16.gmra.mxu1 %v6100_v32  ;;  %4227 = vmatmul.mubr.bf16.gmra.mxu0 %v6101_v53  ;;  %v6196_v32 = vld [vmem:[#allocation2 + $0x3b0] ss:$36 sps:$4 sm:$0xff]   ;;  %v6197_v53 = vld [vmem:[#allocation2 + $0x3b8] ss:$36 sps:$4 sm:$0xff]  }
 0x185   : > { %4003 = vmatprep.mubr.bf16.mxu1 %v6105_v13  ;;  %4236 = vmatprep.mubr.bf16.mxu0 %v6107_v26  ;;  %v6205_v13 = vld [vmem:[#allocation2 + $0x3f8] ss:$36 sps:$4 sm:$0xff]   ;;  %v6206_v26 = vld [vmem:[#allocation2 + $0x400] ss:$36 sps:$4 sm:$0xff]  }
 0x186   : > { %4410 = vmatpush1.bf16.msra.mxu1 %v6138_v33  ;;  %4643 = vmatpush1.bf16.msra.mxu0 %v6216_v20  ;;  %v6207_v33 = vld [vmem:[#allocation2 + $0x444] ss:$36 sps:$4 sm:$0xff]  }
 0x187   : > { %4411 = vmatprep.subr.bf16.mxu1 %v6152_v56  ;;  %4644 = vmatprep.subr.bf16.mxu0 %v6239_v15  ;;  %v6209_v56 = vld [vmem:[#allocation2 + $0x44c] ss:$36 sps:$4 sm:$0xff]  }
 0x18a   : > { %4412 = vmatpush1.bf16.msra.mxu1 %v6150_v22  ;;  %4645 = vmatpush1.bf16.msra.mxu0 %v6237_v59 }
 0x18b   : > { %4413 = vmatprep.subr.bf16.mxu1 %v6167_v35 }
 0x18c   : > { %4004 = vmatmul.mubr.bf16.gmra.mxu1 %v6109_v14  ;;  %4237 = vmatmul.mubr.bf16.gmra.mxu0 %v6110_v6  ;;  %v6211_v6 = vld [vmem:[#allocation2 + $0x440] ss:$36 sps:$4 sm:$0xff]  }
 0x18d   : > { %4013 = vmatprep.mubr.bf16.mxu1 %v6111_v52  ;;  %4246 = vmatprep.mubr.bf16.mxu0 %v6113_v29  ;;  %v6212_v52 = vld [vmem:[#allocation2 + $0x448] ss:$36 sps:$4 sm:$0xff]  }
 0x18e   : > { %4414 = vmatpush2.bf16.msra.mxu1 %v6165_v43  ;;  %v6219_v29 = vld [vmem:[#allocation2 + $0x48c] ss:$36 sps:$4 sm:$0xff]   ;;  %v6221_v43 = vld [vmem:[#allocation2 + $0x494] ss:$36 sps:$4 sm:$0xff]  }
 0x18f   : > { %4415 = vmatprep.subr.bf16.mxu1 %v6179_v61 }
 0x192   : > { %4416 = vmatpush2.bf16.msra.mxu1 %v6177_v21 }
 0x193   : > { %4417 = vmatprep.subr.bf16.mxu1 %v6188_v57 }
 0x194   : > { %4014 = vmatmul.mubr.bf16.gmra.mxu1 %v6115_v50  ;;  %4247 = vmatmul.mubr.bf16.gmra.mxu0 %v6116_v1 }
 0x195   : > { %4023 = vmatprep.mubr.bf16.mxu1 %v6123_v3  ;;  %4256 = vmatprep.mubr.bf16.mxu0 %v6125_v55 }
 0x196   : > { %4418 = vmatpush2.bf16.msra.mxu1 %v6186_v7 }
 0x197   : > { %4419 = vmatprep.subr.bf16.mxu1 %v6200_v60  ;;  %v6223_v60 = vld [vmem:[#allocation2 + $0x488] ss:$36 sps:$4 sm:$0xff]  }
 0x19a   : > { %4420 = vmatpush2.bf16.msra.mxu1 %v6198_v8  ;;  %v6224_v8 = vld [vmem:[#allocation2 + $0x490] ss:$36 sps:$4 sm:$0xff]  }
 0x19b   : > { %4421 = vmatprep.subr.bf16.mxu1 %v6215_v30  ;;  %v6228_v30 = vld [vmem:[#allocation2 + $0x4d4] ss:$36 sps:$4 sm:$0xff]  }
 0x19c   : > { %4024 = vmatmul.mubr.bf16.gmra.mxu1 %v6127_v58  ;;  %4257 = vmatmul.mubr.bf16.gmra.mxu0 %v6128_v5  ;;  %v6230_v58 = vld [vmem:[#allocation2 + $0x4dc] ss:$36 sps:$4 sm:$0xff]  }
 0x19d   : > { %4033 = vmatprep.mubr.bf16.mxu1 %v6132_v54  ;;  %4266 = vmatprep.mubr.bf16.mxu0 %v6134_v63 }
 0x19e   : > { %4422 = vmatpush2.bf16.msra.mxu1 %v6213_v16 }
 0x19f   : > { %4423 = vmatprep.subr.bf16.mxu1 %v6227_v25 }
 0x1a2   : > { %4424 = vmatpush2.bf16.msra.mxu1 %v6225_v34 }
 0x1a3   : > { %4425 = vmatprep.subr.bf16.mxu1 %v6236_v37 }
 0x1a4   : > { %4034 = vmatmul.mubr.bf16.gmra.mxu1 %v6136_v27  ;;  %4267 = vmatmul.mubr.bf16.gmra.mxu0 %v6137_v23  ;;  %v6232_v23 = vld [vmem:[#allocation2 + $0x4d0] ss:$36 sps:$4 sm:$0xff]  }
 0x1a5   : > { %4043 = vmatprep.mubr.bf16.mxu1 %v6144_v9  ;;  %4276 = vmatprep.mubr.bf16.mxu0 %v6146_v4  ;;  %v6233_v9 = vld [vmem:[#allocation2 + $0x4d8] ss:$36 sps:$4 sm:$0xff]  }
 0x1a6   : > { %4426 = vmatpush2.bf16.msra.mxu1 %v6234_v42  ;;  %v6242_v4 = vld [vmem:[#allocation2 + $0x51c] ss:$36 sps:$4 sm:$0xff]   ;;  %v6245_v42 = vld [vmem:[#allocation2 + $0x524] ss:$36 sps:$4 sm:$0xff]  }
 0x1a7   : > { %4427 = vmatprep.subr.bf16.mxu1 %v6248_v11 }
 0x1aa   : > { %4428 = vmatpush2.bf16.msra.mxu1 %v6246_v36 }
 0x1ac   : > { %4044 = vmatmul.mubr.bf16.gmra.mxu1 %v6148_v28  ;;  %4277 = vmatmul.mubr.bf16.gmra.mxu0 %v6149_v12 }
 0x1ad   : > { %4053 = vmatprep.mubr.bf16.mxu1 %v6153_v48  ;;  %4286 = vmatprep.mubr.bf16.mxu0 %v6155_v39 }
 0x1b4   : > { %4054 = vmatmul.mubr.bf16.gmra.mxu1 %v6157_v41  ;;  %4287 = vmatmul.mubr.bf16.gmra.mxu0 %v6158_v62 }
 0x1b5   : > { %4063 = vmatprep.mubr.bf16.mxu1 %v6159_v46  ;;  %4296 = vmatprep.mubr.bf16.mxu0 %v6161_v19  ;;  %v6240_v46 = vld [vmem:[#allocation2 + $0x518] ss:$36 sps:$4 sm:$0xff]   ;;  %v6243_v19 = vld [vmem:[#allocation2 + $0x520] ss:$36 sps:$4 sm:$0xff]  }
 0x1bc   : > { %4064 = vmatmul.mubr.bf16.gmra.mxu1 %v6163_v0  ;;  %4297 = vmatmul.mubr.bf16.gmra.mxu0 %v6164_v38  ;;  %v6251_v0 = vld [vmem:[#allocation2 + $0x564] ss:$36 sps:$4 sm:$0xff]   ;;  %v6254_v38 = vld [vmem:[#allocation2 + $0x56c] ss:$36 sps:$4 sm:$0xff]  }
 0x1bd   : > { %4073 = vmatprep.mubr.bf16.mxu1 %v6171_v31  ;;  %4306 = vmatprep.mubr.bf16.mxu0 %v6173_v49 }
 0x1c4   : > { %4074 = vmatmul.mubr.bf16.gmra.mxu1 %v6175_v17  ;;  %4307 = vmatmul.mubr.bf16.gmra.mxu0 %v6176_v10 }
 0x1c5   : > { %4083 = vmatprep.mubr.bf16.mxu1 %v6180_v47  ;;  %4316 = vmatprep.mubr.bf16.mxu0 %v6182_v18 }
 0x1cc   : > { %4084 = vmatmul.mubr.bf16.gmra.mxu1 %v6184_v2  ;;  %4317 = vmatmul.mubr.bf16.gmra.mxu0 %v6185_v40 }
 0x1cd   : > { %4093 = vmatprep.mubr.bf16.mxu1 %v6192_v24  ;;  %4326 = vmatprep.mubr.bf16.mxu0 %v6194_v51  ;;  %v6249_v24 = vld [vmem:[#allocation2 + $0x560] ss:$36 sps:$4 sm:$0xff]   ;;  %v6252_v51 = vld [vmem:[#allocation2 + $0x568] ss:$36 sps:$4 sm:$0xff]  }
 0x1d4   : > { %4094 = vmatmul.mubr.bf16.gmra.mxu1 %v6196_v32  ;;  %4327 = vmatmul.mubr.bf16.gmra.mxu0 %v6197_v53  ;;  %v6257_v32 = vld [vmem:[#allocation2 + $0x1c] ss:$36 sps:$4 sm:$0xff]  }
 0x1d5   : > { %4103 = vmatprep.mubr.bf16.mxu1 %v6201_v44  ;;  %4336 = vmatprep.mubr.bf16.mxu0 %v6203_v45 }
 0x1dc   : > { %v7779_v20 = vpop.f32.mrf.mxu0  ;;  %v7781_v15 = vpop.f32.mrf.mxu1  ;;  %4104 = vmatmul.mubr.bf16.gmra.mxu1 %v6205_v13  ;;  %4337 = vmatmul.mubr.bf16.gmra.mxu0 %v6206_v26  ;;  %v8561_v26 = vmov 0  }
 0x1dd   : > { %4113 = vmatprep.mubr.bf16.mxu1 %v6207_v33  ;;  %4346 = vmatprep.mubr.bf16.mxu0 %v6209_v56 }
 0x1de   : > { %v7783_v22 = vpop.f32.mrf.mxu0  ;;  %v7785_v59 = vpop.f32.mrf.mxu1 }
 0x1e0   : > { %v7787_v35 = vpop.f32.mrf.mxu0  ;;  %v7789_v14 = vpop.f32.mrf.mxu1 }
 0x1e2   : > { %v7791_v61 = vpop.f32.mrf.mxu0  ;;  %v7793_v21 = vpop.f32.mrf.mxu1 }
 0x1e4   : > { %v7795_v57 = vpop.f32.mrf.mxu0  ;;  %v7797_v50 = vpop.f32.mrf.mxu1  ;;  %4114 = vmatmul.mubr.bf16.gmra.mxu1 %v6211_v6  ;;  %4347 = vmatmul.mubr.bf16.gmra.mxu0 %v6212_v52 }
 0x1e5   : > { %4123 = vmatprep.mubr.bf16.mxu1 %v6219_v29  ;;  %4356 = vmatprep.mubr.bf16.mxu0 %v6221_v43  ;;  %v6255_v29 = vld [vmem:[#allocation2 + $0x18] ss:$36 sps:$4 sm:$0xff]   ;;  %v6258_v43 = vld [vmem:[#allocation2 + $0x20] ss:$36 sps:$4 sm:$0xff]  }
 0x1e6   : > { %v7799_v1 = vpop.f32.mrf.mxu0  ;;  %v7801_v3 = vpop.f32.mrf.mxu1 }
 0x1e8   : > { %v7803_v55 = vpop.f32.mrf.mxu0  ;;  %v7805_v7 = vpop.f32.mrf.mxu1 }
 0x1ea   : > { %v7807_v5 = vpop.f32.mrf.mxu0  ;;  %v7809_v54 = vpop.f32.mrf.mxu1 }
 0x1eb   : > { %8566 = vst [vmem:[#allocation5_spill] sm:$0xff] %v7809_v54 }
 0x1ec   : > { %v7811_v63 = vpop.f32.mrf.mxu0  ;;  %v7813_v16 = vpop.f32.mrf.mxu1  ;;  %4124 = vmatmul.mubr.bf16.gmra.mxu1 %v6223_v60  ;;  %4357 = vmatmul.mubr.bf16.gmra.mxu0 %v6224_v8  ;;  %v6261_v60 = vld [vmem:[#allocation2 + $0x64] ss:$36 sps:$4 sm:$0xff]  }
 0x1ed   : > { %8567 = vst [vmem:[#allocation6_spill] sm:$0xff] %v7813_v16  ;;  %4133 = vmatprep.mubr.bf16.mxu1 %v6228_v30  ;;  %4366 = vmatprep.mubr.bf16.mxu0 %v6230_v58  ;;  %v6278_v16 = vld [vmem:[#allocation2 + $0x188] ss:$36 sps:$4 sm:$0xff]  }
 0x1ee   : > { %v7815_v25 = vpop.f32.mrf.mxu0  ;;  %v7817_v34 = vpop.f32.mrf.mxu1 }
 0x1ef   : > { %8568 = vst [vmem:[#allocation7_spill] sm:$0xff] %v7817_v34  ;;  %v6275_v34 = vld [vmem:[#allocation2 + $0x180] ss:$36 sps:$4 sm:$0xff]  }
 0x1f0   : > { %v7819_v37 = vpop.f32.mrf.mxu0  ;;  %v7821_v27 = vpop.f32.mrf.mxu1 }
 0x1f1   : > { %8569 = vst [vmem:[#allocation8_spill] sm:$0xff] %v7821_v27 }
 0x1f2   : > { %v7823_v11 = vpop.f32.mrf.mxu0  ;;  %v7825_v36 = vpop.f32.mrf.mxu1 }
 0x1f3   : > { %8570 = vst [vmem:[#allocation9_spill] sm:$0xff] %v7825_v36 }
 0x1f4   : > { %v7827_v28 = vpop.f32.mrf.mxu0  ;;  %v7829_v12 = vpop.f32.mrf.mxu1  ;;  %4134 = vmatmul.mubr.bf16.gmra.mxu1 %v6232_v23  ;;  %4367 = vmatmul.mubr.bf16.gmra.mxu0 %v6233_v9 }
 0x1f5   : > { %8571 = vst [vmem:[#allocation10_spill] sm:$0xff] %v7829_v12  ;;  %4143 = vmatprep.mubr.bf16.mxu1 %v6242_v4  ;;  %4376 = vmatprep.mubr.bf16.mxu0 %v6245_v42 }
 0x1f6   : > { %v7831_v48 = vpop.f32.mrf.mxu0  ;;  %v7833_v39 = vpop.f32.mrf.mxu1 }
 0x1f7   : > { %8572 = vst [vmem:[#allocation11_spill] sm:$0xff] %v7833_v39 }
 0x1f8   : > { %v7835_v41 = vpop.f32.mrf.mxu0  ;;  %v7837_v62 = vpop.f32.mrf.mxu1 }
 0x1f9   : > { %8573 = vst [vmem:[#allocation12_spill] sm:$0xff] %v7837_v62 }
 0x1fa   : > { %v7839_v31 = vpop.f32.mrf.mxu0  ;;  %v7841_v49 = vpop.f32.mrf.mxu1 }
 0x1fb   : > { %8574 = vst [vmem:[#allocation13_spill] sm:$0xff] %v7841_v49  ;;  %v6274_v49 = vld [vmem:[#allocation2 + $0x140] ss:$36 sps:$4 sm:$0xff]  }
 0x1fc   : > { %v7843_v17 = vpop.f32.mrf.mxu0  ;;  %v7845_v10 = vpop.f32.mrf.mxu1  ;;  %4144 = vmatmul.mubr.bf16.gmra.mxu1 %v6240_v46  ;;  %4377 = vmatmul.mubr.bf16.gmra.mxu0 %v6243_v19  ;;  %v6259_v19 = vld [vmem:[#allocation2 + $0x60] ss:$36 sps:$4 sm:$0xff]  }
 0x1fd   : > { %8575 = vst [vmem:[#allocation14_spill] sm:$0xff] %v7845_v10  ;;  %4153 = vmatprep.mubr.bf16.mxu1 %v6251_v0  ;;  %4386 = vmatprep.mubr.bf16.mxu0 %v6254_v38  ;;  %v6262_v0 = vld [vmem:[#allocation2 + $0x68] ss:$36 sps:$4 sm:$0xff]   ;;  %v6271_v10 = vld [vmem:[#allocation2 + $0x138] ss:$36 sps:$4 sm:$0xff]  }
 0x1fe   : > { %v7847_v47 = vpop.f32.mrf.mxu0  ;;  %v7849_v18 = vpop.f32.mrf.mxu1  ;;  %v6265_v38 = vld [vmem:[#allocation2 + $0xac] ss:$36 sps:$4 sm:$0xff]  }
 0x1ff   : > { %8576 = vst [vmem:[#allocation15_spill] sm:$0xff] %v7849_v18 }
 0x200   : > { %v7851_v2 = vpop.f32.mrf.mxu0  ;;  %v7853_v40 = vpop.f32.mrf.mxu1 }
 0x201   : > { %8577 = vst [vmem:[#allocation16_spill] sm:$0xff] %v7853_v40 }
 0x202   : > { %v7855_v53 = vpop.f32.mrf.mxu0  ;;  %v7857_v44 = vpop.f32.mrf.mxu1 }
 0x203   : > { %8578 = vst [vmem:[#allocation17_spill] sm:$0xff] %v7857_v44  ;;  %v6270_v44 = vld [vmem:[#allocation2 + $0xf8] ss:$36 sps:$4 sm:$0xff]  }
 0x204   : > { %v7859_v45 = vpop.f32.mrf.mxu0  ;;  %v7861_v13 = vpop.f32.mrf.mxu1  ;;  %4154 = vmatmul.mubr.bf16.gmra.mxu1 %v6249_v24  ;;  %4387 = vmatmul.mubr.bf16.gmra.mxu0 %v6252_v51 }
 0x205   : > { %8579 = vst [vmem:[#allocation18_spill] sm:$0xff] %v7861_v13  ;;  %4429 = vmatprep.mubr.bf16.mxu1 %v6257_v32  ;;  %4662 = vmatprep.mubr.bf16.mxu0 %v8561_v26  ;;  %v6267_v13 = vld [vmem:[#allocation2 + $0xf0] ss:$36 sps:$4 sm:$0xff]  }
 0x206   : > { %v7864_v33 = vpop.f32.mrf.mxu0  ;;  %v7866_v56 = vpop.f32.mrf.mxu1 }
 0x207   : > { %8580 = vst [vmem:[#allocation19_spill] sm:$0xff] %v7866_v56 }
 0x208   : > { %v7868_v6 = vpop.f32.mrf.mxu0  ;;  %v7870_v52 = vpop.f32.mrf.mxu1 }
 0x209   : > { %8581 = vst [vmem:[#allocation20_spill] sm:$0xff] %v7870_v52 }
 0x20a   : > { %v7872_v8 = vpop.f32.mrf.mxu0  ;;  %v7874_v30 = vpop.f32.mrf.mxu1 }
 0x20b   : > { %8582 = vst [vmem:[#allocation21_spill] sm:$0xff] %v7874_v30  ;;  %v6266_v30 = vld [vmem:[#allocation2 + $0xb0] ss:$36 sps:$4 sm:$0xff]  }
 0x20c   : > { %v7876_v58 = vpop.f32.mrf.mxu0  ;;  %v7878_v23 = vpop.f32.mrf.mxu1  ;;  %4430 = vmatmul.mubr.bf16.vlgmr.msra.gmra.mxu1 %v6255_v29  ;;  %4663 = vmatmul.mubr.bf16.vlgmr.msra.gmra.mxu0 %v6258_v43 }
 0x20d   : > { %8583 = vst [vmem:[#allocation22_spill] sm:$0xff] %v7878_v23  ;;  %4439 = vmatprep.mubr.bf16.mxu1 %v6261_v60  ;;  %4672 = vmatprep.mubr.bf16.mxu0 %v8561_v26  ;;  %v6263_v23 = vld [vmem:[#allocation2 + $0xa8] ss:$36 sps:$4 sm:$0xff]  }
 0x20e   : > { %v7881_v9 = vpop.f32.mrf.mxu0  ;;  %v7883_v4 = vpop.f32.mrf.mxu1 }
 0x20f   : > { %8584 = vst [vmem:[#allocation23_spill] sm:$0xff] %v7883_v4 }
 0x210   : > { %v7885_v42 = vpop.f32.mrf.mxu0  ;;  %v7887_v46 = vpop.f32.mrf.mxu1 }
 0x211   : > { %8585 = vst [vmem:[#allocation24_spill] sm:$0xff] %v7887_v46 }
 0x212   : > { %v7889_v24 = vpop.f32.mrf.mxu0  ;;  %v7891_v51 = vpop.f32.mrf.mxu1 }
 0x213   : > { %8586 = vst [vmem:[#allocation25_spill] sm:$0xff] %v7891_v51  ;;  %v6269_v51 = vld [vmem:[#allocation2 + $0xf4] ss:$36 sps:$4 sm:$0xff]  }
 0x214   : > { %v7893_v32 = vpop.f32.mrf.mxu0  ;;  %v7895_v29 = vpop.f32.mrf.mxu1  ;;  %4440 = vmatmul.mubr.bf16.gmra.mxu1 %v6259_v19  ;;  %4673 = vmatmul.mubr.bf16.gmra.mxu0 %v6262_v0 }
 0x215   : > { %8587 = vst [vmem:[#allocation26_spill] sm:$0xff] %v7895_v29  ;;  %4449 = vmatprep.mubr.bf16.mxu1 %v6265_v38  ;;  %4682 = vmatprep.mubr.bf16.mxu0 %v8561_v26 }
 0x216   : > { %v7898_v43 = vpop.f32.mrf.mxu0  ;;  %v7900_v60 = vpop.f32.mrf.mxu1 }
 0x217   : > { %8588 = vst [vmem:[#allocation27_spill] sm:$0xff] %v7900_v60 }
 0x218   : > { %v7902_v46 = vpop.f32.mrf.mxu0  ;;  %v7904_v4 = vpop.f32.mrf.mxu1 }
 0x219   : > { %8589 = vst [vmem:[#allocation28_spill] sm:$0xff] %v7904_v4 }
 0x21a   : > { %v7906_v52 = vpop.f32.mrf.mxu0  ;;  %v7908_v56 = vpop.f32.mrf.mxu1 }
 0x21b   : > { %8590 = vst [vmem:[#allocation29_spill] sm:$0xff] %v7908_v56  ;;  %v6273_v56 = vld [vmem:[#allocation2 + $0x13c] ss:$36 sps:$4 sm:$0xff]  }
 0x21c   : > { %v7910_v19 = vpop.f32.mrf.mxu0  ;;  %v7912_v0 = vpop.f32.mrf.mxu1  ;;  %4450 = vmatmul.mubr.bf16.gmra.mxu1 %v6263_v23  ;;  %4683 = vmatmul.mubr.bf16.gmra.mxu0 %v6266_v30 }
 0x21d   : > { %8591 = vst [vmem:[#allocation30_spill] sm:$0xff] %v7912_v0  ;;  %4459 = vmatprep.mubr.bf16.mxu1 %v6269_v51  ;;  %4692 = vmatprep.mubr.bf16.mxu0 %v8561_v26 }
 0x21e   : > { %v7915_v38 = vpop.f32.mrf.mxu0  ;;  %v7917_v60 = vpop.f32.mrf.mxu1 }
 0x21f   : > { %8592 = vst [vmem:[#allocation31_spill] sm:$0xff] %v7917_v60 }
 0x220   : > { %v7919_v4 = vpop.f32.mrf.mxu0  ;;  %v7921_v29 = vpop.f32.mrf.mxu1 }
 0x221   : > { %8593 = vst [vmem:[#allocation32_spill] sm:$0xff] %v7921_v29 }
 0x222   : > { %v7923_v40 = vpop.f32.mrf.mxu0  ;;  %v7925_v18 = vpop.f32.mrf.mxu1 }
 0x223   : > { %8594 = vst [vmem:[#allocation33_spill] sm:$0xff] %v7925_v18  ;;  %v6277_v18 = vld [vmem:[#allocation2 + $0x184] ss:$36 sps:$4 sm:$0xff]  }
 0x224   : > { %v7927_v23 = vpop.f32.mrf.mxu0  ;;  %v7929_v30 = vpop.f32.mrf.mxu1  ;;  %4460 = vmatmul.mubr.bf16.gmra.mxu1 %v6267_v13  ;;  %4693 = vmatmul.mubr.bf16.gmra.mxu0 %v6270_v44 }
 0x225   : > { %8595 = vst [vmem:[#allocation34_spill] sm:$0xff] %v7929_v30  ;;  %4469 = vmatprep.mubr.bf16.mxu1 %v6273_v56  ;;  %4702 = vmatprep.mubr.bf16.mxu0 %v8561_v26 }
 0x226   : > { %v7932_v51 = vpop.f32.mrf.mxu0  ;;  %v7934_v60 = vpop.f32.mrf.mxu1 }
 0x227   : > { %8596 = vst [vmem:[#allocation35_spill] sm:$0xff] %v7934_v60 }
 0x228   : > { %v7936_v29 = vpop.f32.mrf.mxu0  ;;  %v7938_v0 = vpop.f32.mrf.mxu1 }
 0x229   : > { %8597 = vst [vmem:[#allocation36_spill] sm:$0xff] %v7938_v0 }
 0x22a   : > { %v7940_v62 = vpop.f32.mrf.mxu0  ;;  %v7942_v39 = vpop.f32.mrf.mxu1 }
 0x22b   : > { %8598 = vst [vmem:[#allocation37_spill] sm:$0xff] %v7942_v39 }
 0x22c   : > { %v3965_v13 = vpop.f32.mrf.mxu1  ;;  %v4198_v44 = vpop.f32.mrf.mxu0  ;;  %4470 = vmatmul.mubr.bf16.gmra.mxu1 %v6271_v10  ;;  %4703 = vmatmul.mubr.bf16.gmra.mxu0 %v6274_v49  ;;  %v6281_v49 = vld [vmem:[#allocation2 + $0x1cc] ss:$36 sps:$4 sm:$0xff]  }
 0x22d   : > { %v3966_v56 = vadd.f32 %v3965_v13, %v7779_v20  ;;  %4479 = vmatprep.mubr.bf16.mxu1 %v6277_v18  ;;  %4712 = vmatprep.mubr.bf16.mxu0 %v8561_v26 }
 0x22e   : > { %v3967_v60 = vpop.f32.mrf.mxu1  ;;  %v4200_v30 = vpop.f32.mrf.mxu0 }
 0x22f   : > { %v7946_v12 = vadd.f32 %v4198_v44, %v3966_v56  ;;  %v3968_v0 = vadd.f32 %v3967_v60, %v7783_v22 }
 0x230   : > { %v3969_v36 = vpop.f32.mrf.mxu1  ;;  %v4202_v27 = vpop.f32.mrf.mxu0 }
 0x231   : > { %v7949_v39 = vadd.f32 %v4200_v30, %v3968_v0  ;;  %v3970_v10 = vadd.f32 %v3969_v36, %v7787_v35  ;;  %v8600_v0 = vmov 0  }
 0x232   : > { %v3971_v54 = vpop.f32.mrf.mxu1  ;;  %v4204_v20 = vpop.f32.mrf.mxu0 }
 0x233   : > { %v7952_v18 = vadd.f32 %v4202_v27, %v3970_v10  ;;  %v3972_v13 = vadd.f32 %v3971_v54, %v7791_v61  ;;  %v6279_v61 = vld [vmem:[#allocation2 + $0x1c8] ss:$36 sps:$4 sm:$0xff]   ;;  %v6282_v54 = vld [vmem:[#allocation2 + $0x1d0] ss:$36 sps:$4 sm:$0xff]  }
 0x234   : > { %v3975_v26 = vpop.f32.mrf.mxu1  ;;  %v4208_v44 = vpop.f32.mrf.mxu0  ;;  %4480 = vmatmul.mubr.bf16.gmra.mxu1 %v6275_v34  ;;  %4713 = vmatmul.mubr.bf16.gmra.mxu0 %v6278_v16  ;;  %v6285_v34 = vld [vmem:[#allocation2 + $0x214] ss:$36 sps:$4 sm:$0xff]  }
 0x235   : > { %8599 = vst [vmem:[#allocation38_spill] sm:$0xff] %v7952_v18  ;;  %v7955_v22 = vadd.f32 %v4204_v20, %v3972_v13  ;;  %v3976_v60 = vadd.f32 %v3975_v26, %v7795_v57  ;;  %4489 = vmatprep.mubr.bf16.mxu1 %v6281_v49  ;;  %4722 = vmatprep.mubr.bf16.mxu0 %v8600_v0 }
 0x236   : > { %v3977_v30 = vpop.f32.mrf.mxu1  ;;  %v4210_v35 = vpop.f32.mrf.mxu0 }
 0x237   : > { %v7959_v36 = vadd.f32 %v4208_v44, %v3976_v60  ;;  %v3978_v27 = vadd.f32 %v3977_v30, %v7799_v1 }
 0x238   : > { %v3979_v56 = vpop.f32.mrf.mxu1  ;;  %v4212_v10 = vpop.f32.mrf.mxu0 }
 0x239   : > { %v7962_v18 = vadd.f32 %v4210_v35, %v3978_v27  ;;  %v3980_v16 = vadd.f32 %v3979_v56, %v7803_v55 }
 0x23a   : > { %v3981_v20 = vpop.f32.mrf.mxu1  ;;  %v4214_v57 = vpop.f32.mrf.mxu0 }
 0x23b   : > { %v7965_v26 = vadd.f32 %v4212_v10, %v3980_v16  ;;  %v3982_v49 = vadd.f32 %v3981_v20, %v7807_v5  ;;  %v6283_v5 = vld [vmem:[#allocation2 + $0x210] ss:$36 sps:$4 sm:$0xff]   ;;  %v6286_v16 = vld [vmem:[#allocation2 + $0x218] ss:$36 sps:$4 sm:$0xff]  }
 0x23c   : > { %v3985_v13 = vpop.f32.mrf.mxu1  ;;  %v4218_v44 = vpop.f32.mrf.mxu0  ;;  %4490 = vmatmul.mubr.bf16.gmra.mxu1 %v6279_v61  ;;  %4723 = vmatmul.mubr.bf16.gmra.mxu0 %v6282_v54  ;;  %v6289_v54 = vld [vmem:[#allocation2 + $0x25c] ss:$36 sps:$4 sm:$0xff]  }
 0x23d   : > { %v7968_v1 = vadd.f32 %v4214_v57, %v3982_v49  ;;  %v3986_v60 = vadd.f32 %v3985_v13, %v7811_v63  ;;  %4499 = vmatprep.mubr.bf16.mxu1 %v6285_v34  ;;  %4732 = vmatprep.mubr.bf16.mxu0 %v8600_v0 }
 0x23e   : > { %v3987_v30 = vpop.f32.mrf.mxu1  ;;  %v4220_v55 = vpop.f32.mrf.mxu0 }
 0x23f   : > { %v7972_v35 = vadd.f32 %v4218_v44, %v3986_v60  ;;  %v3988_v27 = vadd.f32 %v3987_v30, %v7815_v25 }
 0x240   : > { %v3989_v56 = vpop.f32.mrf.mxu1  ;;  %v4222_v10 = vpop.f32.mrf.mxu0 }
 0x241   : > { %v7975_v20 = vadd.f32 %v4220_v55, %v3988_v27  ;;  %v3990_v61 = vadd.f32 %v3989_v56, %v7819_v37 }
 0x242   : > { %v3991_v57 = vpop.f32.mrf.mxu1  ;;  %v4224_v63 = vpop.f32.mrf.mxu0 }
 0x243   : > { %v7978_v34 = vadd.f32 %v4222_v10, %v3990_v61  ;;  %v3992_v49 = vadd.f32 %v3991_v57, %v7823_v11  ;;  %v6287_v11 = vld [vmem:[#allocation2 + $0x258] ss:$36 sps:$4 sm:$0xff]   ;;  %v6290_v61 = vld [vmem:[#allocation2 + $0x260] ss:$36 sps:$4 sm:$0xff]  }
 0x244   : > { %v3995_v13 = vpop.f32.mrf.mxu1  ;;  %v4228_v44 = vpop.f32.mrf.mxu0  ;;  %4500 = vmatmul.mubr.bf16.gmra.mxu1 %v6283_v5  ;;  %4733 = vmatmul.mubr.bf16.gmra.mxu0 %v6286_v16  ;;  %v6293_v16 = vld [vmem:[#allocation2 + $0x2a4] ss:$36 sps:$4 sm:$0xff]  }
 0x245   : > { %v7981_v25 = vadd.f32 %v4224_v63, %v3992_v49  ;;  %v3996_v60 = vadd.f32 %v3995_v13, %v7827_v28  ;;  %4509 = vmatprep.mubr.bf16.mxu1 %v6289_v54  ;;  %4742 = vmatprep.mubr.bf16.mxu0 %v8600_v0 }
 0x246   : > { %v3997_v30 = vpop.f32.mrf.mxu1  ;;  %v4230_v37 = vpop.f32.mrf.mxu0 }
 0x247   : > { %v7985_v55 = vadd.f32 %v4228_v44, %v3996_v60  ;;  %v3998_v27 = vadd.f32 %v3997_v30, %v7831_v48 }
 0x248   : > { %v3999_v56 = vpop.f32.mrf.mxu1  ;;  %v4232_v10 = vpop.f32.mrf.mxu0 }
 0x249   : > { %v7988_v57 = vadd.f32 %v4230_v37, %v3998_v27  ;;  %v4000_v5 = vadd.f32 %v3999_v56, %v7835_v41 }
 0x24a   : > { %v4001_v63 = vpop.f32.mrf.mxu1  ;;  %v4234_v28 = vpop.f32.mrf.mxu0 }
 0x24b   : > { %v7991_v54 = vadd.f32 %v4232_v10, %v4000_v5  ;;  %v4002_v49 = vadd.f32 %v4001_v63, %v7839_v31  ;;  %v6291_v31 = vld [vmem:[#allocation2 + $0x2a0] ss:$36 sps:$4 sm:$0xff]   ;;  %v6294_v5 = vld [vmem:[#allocation2 + $0x2a8] ss:$36 sps:$4 sm:$0xff]  }
 0x24c   : > { %v4005_v13 = vpop.f32.mrf.mxu1  ;;  %v4238_v44 = vpop.f32.mrf.mxu0  ;;  %4510 = vmatmul.mubr.bf16.gmra.mxu1 %v6287_v11  ;;  %4743 = vmatmul.mubr.bf16.gmra.mxu0 %v6290_v61  ;;  %v6297_v61 = vld [vmem:[#allocation2 + $0x2ec] ss:$36 sps:$4 sm:$0xff]  }
 0x24d   : > { %v7994_v48 = vadd.f32 %v4234_v28, %v4002_v49  ;;  %v4006_v60 = vadd.f32 %v4005_v13, %v7843_v17  ;;  %4519 = vmatprep.mubr.bf16.mxu1 %v6293_v16  ;;  %4752 = vmatprep.mubr.bf16.mxu0 %v8600_v0 }
 0x24e   : > { %v4007_v30 = vpop.f32.mrf.mxu1  ;;  %v4240_v41 = vpop.f32.mrf.mxu0 }
 0x24f   : > { %v7998_v37 = vadd.f32 %v4238_v44, %v4006_v60  ;;  %v4008_v27 = vadd.f32 %v4007_v30, %v7847_v47 }
 0x250   : > { %v4009_v56 = vpop.f32.mrf.mxu1  ;;  %v4242_v10 = vpop.f32.mrf.mxu0 }
 0x251   : > { %v8001_v63 = vadd.f32 %v4240_v41, %v4008_v27  ;;  %v4010_v11 = vadd.f32 %v4009_v56, %v7851_v2 }
 0x252   : > { %v4011_v28 = vpop.f32.mrf.mxu1  ;;  %v4244_v17 = vpop.f32.mrf.mxu0 }
 0x253   : > { %v8004_v16 = vadd.f32 %v4242_v10, %v4010_v11  ;;  %v4012_v49 = vadd.f32 %v4011_v28, %v7855_v53  ;;  %v6295_v53 = vld [vmem:[#allocation2 + $0x2e8] ss:$36 sps:$4 sm:$0xff]   ;;  %v6298_v11 = vld [vmem:[#allocation2 + $0x2f0] ss:$36 sps:$4 sm:$0xff]  }
 0x254   : > { %v4015_v13 = vpop.f32.mrf.mxu1  ;;  %v4248_v44 = vpop.f32.mrf.mxu0  ;;  %4520 = vmatmul.mubr.bf16.gmra.mxu1 %v6291_v31  ;;  %4753 = vmatmul.mubr.bf16.gmra.mxu0 %v6294_v5  ;;  %v6301_v5 = vld [vmem:[#allocation2 + $0x334] ss:$36 sps:$4 sm:$0xff]  }
 0x255   : > { %v8007_v47 = vadd.f32 %v4244_v17, %v4012_v49  ;;  %v4016_v60 = vadd.f32 %v4015_v13, %v7859_v45  ;;  %4529 = vmatprep.mubr.bf16.mxu1 %v6297_v61  ;;  %4762 = vmatprep.mubr.bf16.mxu0 %v8600_v0 }
 0x256   : > { %v4017_v30 = vpop.f32.mrf.mxu1  ;;  %v4250_v2 = vpop.f32.mrf.mxu0 }
 0x257   : > { %v8011_v41 = vadd.f32 %v4248_v44, %v4016_v60  ;;  %v4018_v27 = vadd.f32 %v4017_v30, %v7864_v33 }
 0x258   : > { %v4019_v56 = vpop.f32.mrf.mxu1  ;;  %v4252_v10 = vpop.f32.mrf.mxu0 }
 0x259   : > { %v8014_v28 = vadd.f32 %v4250_v2, %v4018_v27  ;;  %v4020_v31 = vadd.f32 %v4019_v56, %v7868_v6 }
 0x25a   : > { %v4021_v17 = vpop.f32.mrf.mxu1  ;;  %v4254_v45 = vpop.f32.mrf.mxu0 }
 0x25b   : > { %v8017_v61 = vadd.f32 %v4252_v10, %v4020_v31  ;;  %v4022_v49 = vadd.f32 %v4021_v17, %v7872_v8  ;;  %v6299_v8 = vld [vmem:[#allocation2 + $0x330] ss:$36 sps:$4 sm:$0xff]   ;;  %v6302_v31 = vld [vmem:[#allocation2 + $0x338] ss:$36 sps:$4 sm:$0xff]  }
 0x25c   : > { %v4025_v13 = vpop.f32.mrf.mxu1  ;;  %v4258_v44 = vpop.f32.mrf.mxu0  ;;  %4530 = vmatmul.mubr.bf16.gmra.mxu1 %v6295_v53  ;;  %4763 = vmatmul.mubr.bf16.gmra.mxu0 %v6298_v11  ;;  %v6305_v11 = vld [vmem:[#allocation2 + $0x37c] ss:$36 sps:$4 sm:$0xff]  }
 0x25d   : > { %v8020_v33 = vadd.f32 %v4254_v45, %v4022_v49  ;;  %v4026_v60 = vadd.f32 %v4025_v13, %v7876_v58  ;;  %4539 = vmatprep.mubr.bf16.mxu1 %v6301_v5  ;;  %4772 = vmatprep.mubr.bf16.mxu0 %v8600_v0 }
 0x25e   : > { %v4027_v30 = vpop.f32.mrf.mxu1  ;;  %v4260_v6 = vpop.f32.mrf.mxu0 }
 0x25f   : > { %v8024_v2 = vadd.f32 %v4258_v44, %v4026_v60  ;;  %v4028_v27 = vadd.f32 %v4027_v30, %v7881_v9 }
 0x260   : > { %v4029_v56 = vpop.f32.mrf.mxu1  ;;  %v4262_v10 = vpop.f32.mrf.mxu0 }
 0x261   : > { %v8027_v17 = vadd.f32 %v4260_v6, %v4028_v27  ;;  %v4030_v53 = vadd.f32 %v4029_v56, %v7885_v42 }
 0x262   : > { %v4031_v45 = vpop.f32.mrf.mxu1  ;;  %v4264_v58 = vpop.f32.mrf.mxu0 }
 0x263   : > { %v8030_v5 = vadd.f32 %v4262_v10, %v4030_v53  ;;  %v4032_v49 = vadd.f32 %v4031_v45, %v7889_v24  ;;  %v6303_v24 = vld [vmem:[#allocation2 + $0x378] ss:$36 sps:$4 sm:$0xff]   ;;  %v6306_v53 = vld [vmem:[#allocation2 + $0x380] ss:$36 sps:$4 sm:$0xff]  }
 0x264   : > { %v4035_v13 = vpop.f32.mrf.mxu1  ;;  %v4268_v44 = vpop.f32.mrf.mxu0  ;;  %4540 = vmatmul.mubr.bf16.gmra.mxu1 %v6299_v8  ;;  %4773 = vmatmul.mubr.bf16.gmra.mxu0 %v6302_v31  ;;  %v6309_v31 = vld [vmem:[#allocation2 + $0x3c4] ss:$36 sps:$4 sm:$0xff]  }
 0x265   : > { %v8033_v9 = vadd.f32 %v4264_v58, %v4032_v49  ;;  %v4036_v60 = vadd.f32 %v4035_v13, %v7893_v32  ;;  %4549 = vmatprep.mubr.bf16.mxu1 %v6305_v11  ;;  %4782 = vmatprep.mubr.bf16.mxu0 %v8600_v0 }
 0x266   : > { %v4037_v30 = vpop.f32.mrf.mxu1  ;;  %v4270_v42 = vpop.f32.mrf.mxu0 }
 0x267   : > { %v8037_v6 = vadd.f32 %v4268_v44, %v4036_v60  ;;  %v4038_v27 = vadd.f32 %v4037_v30, %v7898_v43 }
 0x268   : > { %v4039_v56 = vpop.f32.mrf.mxu1  ;;  %v4272_v10 = vpop.f32.mrf.mxu0 }
 0x269   : > { %v8040_v45 = vadd.f32 %v4270_v42, %v4038_v27  ;;  %v4040_v8 = vadd.f32 %v4039_v56, %v7902_v46 }
 0x26a   : > { %v4041_v58 = vpop.f32.mrf.mxu1  ;;  %v4274_v32 = vpop.f32.mrf.mxu0 }
 0x26b   : > { %v8043_v11 = vadd.f32 %v4272_v10, %v4040_v8  ;;  %v4042_v49 = vadd.f32 %v4041_v58, %v7906_v52  ;;  %v6307_v52 = vld [vmem:[#allocation2 + $0x3c0] ss:$36 sps:$4 sm:$0xff]   ;;  %v6310_v8 = vld [vmem:[#allocation2 + $0x3c8] ss:$36 sps:$4 sm:$0xff]  }
 0x26c   : > { %v4045_v13 = vpop.f32.mrf.mxu1  ;;  %v4278_v44 = vpop.f32.mrf.mxu0  ;;  %4550 = vmatmul.mubr.bf16.gmra.mxu1 %v6303_v24  ;;  %4783 = vmatmul.mubr.bf16.gmra.mxu0 %v6306_v53  ;;  %v6313_v53 = vld [vmem:[#allocation2 + $0x40c] ss:$36 sps:$4 sm:$0xff]  }
 0x26d   : > { %v8046_v43 = vadd.f32 %v4274_v32, %v4042_v49  ;;  %v4046_v60 = vadd.f32 %v4045_v13, %v7910_v19  ;;  %4559 = vmatprep.mubr.bf16.mxu1 %v6309_v31  ;;  %4792 = vmatprep.mubr.bf16.mxu0 %v8600_v0 }
 0x26e   : > { %v4047_v30 = vpop.f32.mrf.mxu1  ;;  %v4280_v46 = vpop.f32.mrf.mxu0 }
 0x26f   : > { %v8050_v42 = vadd.f32 %v4278_v44, %v4046_v60  ;;  %v4048_v27 = vadd.f32 %v4047_v30, %v7915_v38 }
 0x270   : > { %v4049_v56 = vpop.f32.mrf.mxu1  ;;  %v4282_v10 = vpop.f32.mrf.mxu0 }
 0x271   : > { %v8053_v58 = vadd.f32 %v4280_v46, %v4048_v27  ;;  %v4050_v24 = vadd.f32 %v4049_v56, %v7919_v4 }
 0x272   : > { %v4051_v32 = vpop.f32.mrf.mxu1  ;;  %v4284_v19 = vpop.f32.mrf.mxu0 }
 0x273   : > { %v8056_v31 = vadd.f32 %v4282_v10, %v4050_v24  ;;  %v4052_v49 = vadd.f32 %v4051_v32, %v7923_v40  ;;  %v6311_v40 = vld [vmem:[#allocation2 + $0x408] ss:$36 sps:$4 sm:$0xff]   ;;  %v6314_v24 = vld [vmem:[#allocation2 + $0x410] ss:$36 sps:$4 sm:$0xff]  }
 0x274   : > { %v4055_v13 = vpop.f32.mrf.mxu1  ;;  %v4288_v44 = vpop.f32.mrf.mxu0  ;;  %4560 = vmatmul.mubr.bf16.gmra.mxu1 %v6307_v52  ;;  %4793 = vmatmul.mubr.bf16.gmra.mxu0 %v6310_v8  ;;  %v6317_v8 = vld [vmem:[#allocation2 + $0x454] ss:$36 sps:$4 sm:$0xff]  }
 0x275   : > { %v8059_v38 = vadd.f32 %v4284_v19, %v4052_v49  ;;  %v4056_v60 = vadd.f32 %v4055_v13, %v7927_v23  ;;  %4569 = vmatprep.mubr.bf16.mxu1 %v6313_v53  ;;  %4802 = vmatprep.mubr.bf16.mxu0 %v8600_v0 }
 0x276   : > { %v4057_v30 = vpop.f32.mrf.mxu1  ;;  %v4290_v4 = vpop.f32.mrf.mxu0 }
 0x277   : > { %v8063_v46 = vadd.f32 %v4288_v44, %v4056_v60  ;;  %v4058_v27 = vadd.f32 %v4057_v30, %v7932_v51 }
 0x278   : > { %v4059_v56 = vpop.f32.mrf.mxu1  ;;  %v4292_v10 = vpop.f32.mrf.mxu0 }
 0x279   : > { %v8066_v32 = vadd.f32 %v4290_v4, %v4058_v27  ;;  %v4060_v52 = vadd.f32 %v4059_v56, %v7936_v29 }
 0x27a   : > { %v4061_v19 = vpop.f32.mrf.mxu1  ;;  %v4294_v23 = vpop.f32.mrf.mxu0 }
 0x27b   : > { %v8069_v53 = vadd.f32 %v4292_v10, %v4060_v52  ;;  %v4062_v49 = vadd.f32 %v4061_v19, %v7940_v62  ;;  %v6315_v62 = vld [vmem:[#allocation2 + $0x450] ss:$36 sps:$4 sm:$0xff]   ;;  %v6318_v52 = vld [vmem:[#allocation2 + $0x458] ss:$36 sps:$4 sm:$0xff]  }
 0x27c   : > { %v4065_v13 = vpop.f32.mrf.mxu1  ;;  %v4298_v44 = vpop.f32.mrf.mxu0  ;;  %4570 = vmatmul.mubr.bf16.gmra.mxu1 %v6311_v40  ;;  %4803 = vmatmul.mubr.bf16.gmra.mxu0 %v6314_v24  ;;  %v6321_v24 = vld [vmem:[#allocation2 + $0x49c] ss:$36 sps:$4 sm:$0xff]  }
 0x27d   : > { %v8072_v51 = vadd.f32 %v4294_v23, %v4062_v49  ;;  %v4066_v60 = vadd.f32 %v4065_v13, %v7781_v15  ;;  %4579 = vmatprep.mubr.bf16.mxu1 %v6317_v8  ;;  %4812 = vmatprep.mubr.bf16.mxu0 %v8600_v0 }
 0x27e   : > { %v4067_v30 = vpop.f32.mrf.mxu1  ;;  %v4300_v29 = vpop.f32.mrf.mxu0 }
 0x27f   : > { %v8076_v4 = vadd.f32 %v4298_v44, %v4066_v60  ;;  %v4068_v27 = vadd.f32 %v4067_v30, %v7785_v59 }
 0x280   : > { %v4069_v56 = vpop.f32.mrf.mxu1  ;;  %v4302_v10 = vpop.f32.mrf.mxu0 }
 0x281   : > { %v8079_v19 = vadd.f32 %v4300_v29, %v4068_v27  ;;  %v4070_v40 = vadd.f32 %v4069_v56, %v7789_v14 }
 0x282   : > { %v4071_v23 = vpop.f32.mrf.mxu1  ;;  %v4304_v15 = vpop.f32.mrf.mxu0 }
 0x283   : > { %v8082_v8 = vadd.f32 %v4302_v10, %v4070_v40  ;;  %v4072_v49 = vadd.f32 %v4071_v23, %v7793_v21  ;;  %v6319_v21 = vld [vmem:[#allocation2 + $0x498] ss:$36 sps:$4 sm:$0xff]   ;;  %v6322_v40 = vld [vmem:[#allocation2 + $0x4a0] ss:$36 sps:$4 sm:$0xff]  }
 0x284   : > { %v4075_v13 = vpop.f32.mrf.mxu1  ;;  %v4308_v44 = vpop.f32.mrf.mxu0  ;;  %4580 = vmatmul.mubr.bf16.gmra.mxu1 %v6315_v62  ;;  %4813 = vmatmul.mubr.bf16.gmra.mxu0 %v6318_v52  ;;  %v6325_v52 = vld [vmem:[#allocation2 + $0x4e4] ss:$36 sps:$4 sm:$0xff]  }
 0x285   : > { %v8085_v59 = vadd.f32 %v4304_v15, %v4072_v49  ;;  %v4076_v60 = vadd.f32 %v4075_v13, %v7797_v50  ;;  %4589 = vmatprep.mubr.bf16.mxu1 %v6321_v24  ;;  %4822 = vmatprep.mubr.bf16.mxu0 %v8600_v0  ;;  %v8605_v49 = vld [vmem:[#allocation5_spill] sm:$0xff] }
 0x286   : > { %v4077_v30 = vpop.f32.mrf.mxu1  ;;  %v4310_v14 = vpop.f32.mrf.mxu0 }
 0x287   : > { %8601 = vst [vmem:[#allocation39_spill] sm:$0xff] %v8085_v59  ;;  %v8089_v29 = vadd.f32 %v4308_v44, %v4076_v60  ;;  %v4078_v27 = vadd.f32 %v4077_v30, %v7801_v3  ;;  %v8607_v60 = vld [vmem:[#allocation6_spill] sm:$0xff] }
 0x288   : > { %v4079_v56 = vpop.f32.mrf.mxu1  ;;  %v4312_v10 = vpop.f32.mrf.mxu0 }
 0x289   : > { %8602 = vst [vmem:[#allocation40_spill] sm:$0xff] %v8089_v29  ;;  %v8092_v23 = vadd.f32 %v4310_v14, %v4078_v27  ;;  %v4080_v62 = vadd.f32 %v4079_v56, %v7805_v7  ;;  %v8609_v56 = vld [vmem:[#allocation7_spill] sm:$0xff] }
 0x28a   : > { %v4081_v15 = vpop.f32.mrf.mxu1  ;;  %v4314_v50 = vpop.f32.mrf.mxu0 }
 0x28b   : > { %8603 = vst [vmem:[#allocation41_spill] sm:$0xff] %v8092_v23  ;;  %v8095_v24 = vadd.f32 %v4312_v10, %v4080_v62  ;;  %v4082_v13 = vadd.f32 %v4081_v15, %v8605_v49  ;;  %v6323_v15 = vld [vmem:[#allocation2 + $0x4e0] ss:$36 sps:$4 sm:$0xff]   ;;  %v6326_v49 = vld [vmem:[#allocation2 + $0x4e8] ss:$36 sps:$4 sm:$0xff]  }
 0x28c   : > { %v4085_v59 = vpop.f32.mrf.mxu1  ;;  %v4318_v44 = vpop.f32.mrf.mxu0  ;;  %4590 = vmatmul.mubr.bf16.gmra.mxu1 %v6319_v21  ;;  %4823 = vmatmul.mubr.bf16.gmra.mxu0 %v6322_v40  ;;  %v8611_v21 = vld [vmem:[#allocation8_spill] sm:$0xff] }
 0x28d   : > { %8604 = vst [vmem:[#allocation42_spill] sm:$0xff] %v8095_v24  ;;  %v8098_v3 = vadd.f32 %v4314_v50, %v4082_v13  ;;  %v4086_v30 = vadd.f32 %v4085_v59, %v8607_v60  ;;  %4599 = vmatprep.mubr.bf16.mxu1 %v6325_v52  ;;  %4832 = vmatprep.mubr.bf16.mxu0 %v8600_v0  ;;  %v6329_v50 = vld [vmem:[#allocation2 + $0x52c] ss:$36 sps:$4 sm:$0xff]   ;;  %v8613_v60 = vld [vmem:[#allocation9_spill] sm:$0xff] }
 0x28e   : > { %v4087_v14 = vpop.f32.mrf.mxu1  ;;  %v4320_v7 = vpop.f32.mrf.mxu0 }
 0x28f   : > { %8606 = vst [vmem:[#allocation5_spill] sm:$0xff] %v8098_v3  ;;  %v8102_v27 = vadd.f32 %v4318_v44, %v4086_v30  ;;  %v4088_v10 = vadd.f32 %v4087_v14, %v8609_v56  ;;  %v8615_v14 = vld [vmem:[#allocation10_spill] sm:$0xff] }
 0x290   : > { %v4089_v62 = vpop.f32.mrf.mxu1  ;;  %v4322_v24 = vpop.f32.mrf.mxu0 }
 0x291   : > { %8608 = vst [vmem:[#allocation6_spill] sm:$0xff] %v8102_v27  ;;  %v8105_v23 = vadd.f32 %v4320_v7, %v4088_v10  ;;  %v4090_v40 = vadd.f32 %v4089_v62, %v8611_v21  ;;  %v8616_v21 = vld [vmem:[#allocation11_spill] sm:$0xff] }
 0x292   : > { %v4091_v13 = vpop.f32.mrf.mxu1  ;;  %v4324_v59 = vpop.f32.mrf.mxu0 }
 0x293   : > { %8610 = vst [vmem:[#allocation7_spill] sm:$0xff] %v8105_v23  ;;  %v8108_v52 = vadd.f32 %v4322_v24, %v4090_v40  ;;  %v4092_v3 = vadd.f32 %v4091_v13, %v8613_v60  ;;  %v6327_v13 = vld [vmem:[#allocation2 + $0x528] ss:$36 sps:$4 sm:$0xff]   ;;  %v6330_v60 = vld [vmem:[#allocation2 + $0x530] ss:$36 sps:$4 sm:$0xff]  }
 0x294   : > { %v4095_v29 = vpop.f32.mrf.mxu1  ;;  %v4328_v44 = vpop.f32.mrf.mxu0  ;;  %4600 = vmatmul.mubr.bf16.gmra.mxu1 %v6323_v15  ;;  %4833 = vmatmul.mubr.bf16.gmra.mxu0 %v6326_v49  ;;  %v8618_v15 = vld [vmem:[#allocation12_spill] sm:$0xff] }
 0x295   : > { %8612 = vst [vmem:[#allocation8_spill] sm:$0xff] %v8108_v52  ;;  %v8111_v30 = vadd.f32 %v4324_v59, %v4092_v3  ;;  %v4096_v56 = vadd.f32 %v4095_v29, %v8615_v14  ;;  %4609 = vmatprep.mubr.bf16.mxu1 %v6329_v50  ;;  %4842 = vmatprep.mubr.bf16.mxu0 %v8600_v0  ;;  %v6333_v49 = vld [vmem:[#allocation2 + $0x574] ss:$36 sps:$4 sm:$0xff]   ;;  %v8620_v14 = vld [vmem:[#allocation13_spill] sm:$0xff] }
 0x296   : > { %v4097_v7 = vpop.f32.mrf.mxu1  ;;  %v4330_v10 = vpop.f32.mrf.mxu0 }
 0x297   : > { %8614 = vst [vmem:[#allocation9_spill] sm:$0xff] %v8111_v30  ;;  %v8115_v62 = vadd.f32 %v4328_v44, %v4096_v56  ;;  %v4098_v24 = vadd.f32 %v4097_v7, %v8616_v21  ;;  %v8622_v7 = vld [vmem:[#allocation14_spill] sm:$0xff] }
 0x298   : > { %v4099_v40 = vpop.f32.mrf.mxu1  ;;  %v4332_v52 = vpop.f32.mrf.mxu0 }
 0x299   : > { %v8118_v23 = vadd.f32 %v4330_v10, %v4098_v24  ;;  %v4100_v3 = vadd.f32 %v4099_v40, %v8618_v15  ;;  %v8624_v15 = vld [vmem:[#allocation15_spill] sm:$0xff] }
 0x29a   : > { %v4101_v59 = vpop.f32.mrf.mxu1  ;;  %v4334_v29 = vpop.f32.mrf.mxu0 }
 0x29b   : > { %8617 = vst [vmem:[#allocation10_spill] sm:$0xff] %v8118_v23  ;;  %v8121_v50 = vadd.f32 %v4332_v52, %v4100_v3  ;;  %v4102_v30 = vadd.f32 %v4101_v59, %v8620_v14  ;;  %v6331_v59 = vld [vmem:[#allocation2 + $0x570] ss:$36 sps:$4 sm:$0xff]   ;;  %v6334_v14 = vld [vmem:[#allocation2 + $0x578] ss:$36 sps:$4 sm:$0xff]  }
 0x29c   : > { %v4105_v27 = vpop.f32.mrf.mxu1  ;;  %v4338_v44 = vpop.f32.mrf.mxu0  ;;  %4610 = vmatmul.mubr.bf16.gmra.mxu1 %v6327_v13  ;;  %4843 = vmatmul.mubr.bf16.gmra.mxu0 %v6330_v60  ;;  %v8626_v13 = vld [vmem:[#allocation16_spill] sm:$0xff] }
 0x29d   : > { %8619 = vst [vmem:[#allocation11_spill] sm:$0xff] %v8121_v50  ;;  %v8124_v56 = vadd.f32 %v4334_v29, %v4102_v30  ;;  %v4106_v21 = vadd.f32 %v4105_v27, %v8622_v7  ;;  %4619 = vmatprep.mubr.bf16.mxu1 %v6333_v49  ;;  %4852 = vmatprep.mubr.bf16.mxu0 %v8600_v0  ;;  %v8628_v49 = vld [vmem:[#allocation17_spill] sm:$0xff] }
 0x29e   : > { %v4107_v10 = vpop.f32.mrf.mxu1  ;;  %v4340_v24 = vpop.f32.mrf.mxu0 }
 0x29f   : > { %8621 = vst [vmem:[#allocation12_spill] sm:$0xff] %v8124_v56  ;;  %v8128_v40 = vadd.f32 %v4338_v44, %v4106_v21  ;;  %v4108_v52 = vadd.f32 %v4107_v10, %v8624_v15  ;;  %v8629_v21 = vld [vmem:[#allocation18_spill] sm:$0xff] }
 0x2a0   : > { %v4109_v3 = vpop.f32.mrf.mxu1  ;;  %v4342_v50 = vpop.f32.mrf.mxu0 }
 0x2a1   : > { %8623 = vst [vmem:[#allocation13_spill] sm:$0xff] %v8128_v40  ;;  %v8131_v23 = vadd.f32 %v4340_v24, %v4108_v52  ;;  %v4110_v30 = vadd.f32 %v4109_v3, %v8626_v13  ;;  %v8631_v52 = vld [vmem:[#allocation19_spill] sm:$0xff] }
 0x2a2   : > { %v4111_v60 = vpop.f32.mrf.mxu1  ;;  %v4344_v29 = vpop.f32.mrf.mxu0 }
 0x2a3   : > { %8625 = vst [vmem:[#allocation14_spill] sm:$0xff] %v8131_v23  ;;  %v8134_v27 = vadd.f32 %v4342_v50, %v4110_v30  ;;  %v4112_v0 = vadd.f32 %v4111_v60, %v8628_v49  ;;  %v8633_v30 = vld [vmem:[#allocation20_spill] sm:$0xff] }
 0x2a4   : > { %v4115_v7 = vpop.f32.mrf.mxu1  ;;  %v4348_v56 = vpop.f32.mrf.mxu0  ;;  %4620 = vmatmul.mubr.bf16.gmra.mxu1 %v6331_v59  ;;  %4853 = vmatmul.mubr.bf16.gmra.mxu0 %v6334_v14  ;;  %v8635_v14 = vld [vmem:[#allocation21_spill] sm:$0xff] }
 0x2a5   : > { %8627 = vst [vmem:[#allocation15_spill] sm:$0xff] %v8134_v27  ;;  %v8137_v44 = vadd.f32 %v4344_v29, %v4112_v0  ;;  %v4116_v10 = vadd.f32 %v4115_v7, %v8629_v21 }
 0x2a6   : > { %v4117_v15 = vpop.f32.mrf.mxu1  ;;  %v4350_v40 = vpop.f32.mrf.mxu0 }
 0x2a7   : > { %v8140_v24 = vadd.f32 %v4348_v56, %v4116_v10  ;;  %v4118_v3 = vadd.f32 %v4117_v15, %v8631_v52  ;;  %v8637_v56 = vld [vmem:[#allocation22_spill] sm:$0xff] }
 0x2a8   : > { %v4119_v13 = vpop.f32.mrf.mxu1  ;;  %v4352_v23 = vpop.f32.mrf.mxu0 }
 0x2a9   : > { %8630 = vst [vmem:[#allocation16_spill] sm:$0xff] %v8140_v24  ;;  %v8143_v50 = vadd.f32 %v4350_v40, %v4118_v3  ;;  %v4120_v60 = vadd.f32 %v4119_v13, %v8633_v30  ;;  %v8639_v40 = vld [vmem:[#allocation23_spill] sm:$0xff] }
 0x2aa   : > { %v4121_v49 = vpop.f32.mrf.mxu1  ;;  %v4354_v27 = vpop.f32.mrf.mxu0 }
 0x2ab   : > { %8632 = vst [vmem:[#allocation17_spill] sm:$0xff] %v8143_v50  ;;  %v8146_v59 = vadd.f32 %v4352_v23, %v4120_v60  ;;  %v4122_v29 = vadd.f32 %v4121_v49, %v8635_v14  ;;  %v8641_v23 = vld [vmem:[#allocation24_spill] sm:$0xff] }
 0x2ac   : > { %v4125_v0 = vpop.f32.mrf.mxu1  ;;  %v4358_v7 = vpop.f32.mrf.mxu0 }
 0x2ad   : > { %8634 = vst [vmem:[#allocation18_spill] sm:$0xff] %v8146_v59  ;;  %v8149_v21 = vadd.f32 %v4354_v27, %v4122_v29  ;;  %v4126_v10 = vadd.f32 %v4125_v0, %v8637_v56  ;;  %v8643_v27 = vld [vmem:[#allocation25_spill] sm:$0xff] }
 0x2ae   : > { %v4127_v24 = vpop.f32.mrf.mxu1  ;;  %v4360_v15 = vpop.f32.mrf.mxu0 }
 0x2af   : > { %8636 = vst [vmem:[#allocation19_spill] sm:$0xff] %v8149_v21  ;;  %v8152_v52 = vadd.f32 %v4358_v7, %v4126_v10  ;;  %v4128_v3 = vadd.f32 %v4127_v24, %v8639_v40  ;;  %v8645_v7 = vld [vmem:[#allocation26_spill] sm:$0xff] }
 0x2b0   : > { %v4129_v50 = vpop.f32.mrf.mxu1  ;;  %v4362_v13 = vpop.f32.mrf.mxu0 }
 0x2b1   : > { %8638 = vst [vmem:[#allocation20_spill] sm:$0xff] %v8152_v52  ;;  %v8155_v30 = vadd.f32 %v4360_v15, %v4128_v3  ;;  %v4130_v60 = vadd.f32 %v4129_v50, %v8641_v23  ;;  %v8647_v15 = vld [vmem:[#allocation27_spill] sm:$0xff] }
 0x2b2   : > { %v4131_v59 = vpop.f32.mrf.mxu1  ;;  %v4364_v49 = vpop.f32.mrf.mxu0 }
 0x2b3   : > { %8640 = vst [vmem:[#allocation21_spill] sm:$0xff] %v8155_v30  ;;  %v8158_v14 = vadd.f32 %v4362_v13, %v4130_v60  ;;  %v4132_v29 = vadd.f32 %v4131_v59, %v8643_v27  ;;  %v8649_v13 = vld [vmem:[#allocation28_spill] sm:$0xff] }
 0x2b4   : > { %v4135_v21 = vpop.f32.mrf.mxu1  ;;  %v4368_v0 = vpop.f32.mrf.mxu0 }
 0x2b5   : > { %8642 = vst [vmem:[#allocation22_spill] sm:$0xff] %v8158_v14  ;;  %v8161_v56 = vadd.f32 %v4364_v49, %v4132_v29  ;;  %v4136_v10 = vadd.f32 %v4135_v21, %v8645_v7  ;;  %v8651_v49 = vld [vmem:[#allocation29_spill] sm:$0xff] }
 0x2b6   : > { %v4137_v52 = vpop.f32.mrf.mxu1  ;;  %v4370_v24 = vpop.f32.mrf.mxu0 }
 0x2b7   : > { %8644 = vst [vmem:[#allocation23_spill] sm:$0xff] %v8161_v56  ;;  %v8164_v40 = vadd.f32 %v4368_v0, %v4136_v10  ;;  %v4138_v3 = vadd.f32 %v4137_v52, %v8647_v15  ;;  %v8653_v0 = vld [vmem:[#allocation30_spill] sm:$0xff] }
 0x2b8   : > { %v4139_v30 = vpop.f32.mrf.mxu1  ;;  %v4372_v50 = vpop.f32.mrf.mxu0 }
 0x2b9   : > { %8646 = vst [vmem:[#allocation24_spill] sm:$0xff] %v8164_v40  ;;  %v8167_v23 = vadd.f32 %v4370_v24, %v4138_v3  ;;  %v4140_v60 = vadd.f32 %v4139_v30, %v8649_v13  ;;  %v8655_v24 = vld [vmem:[#allocation31_spill] sm:$0xff] }
 0x2ba   : > { %v4141_v14 = vpop.f32.mrf.mxu1  ;;  %v4374_v59 = vpop.f32.mrf.mxu0 }
 0x2bb   : > { %8648 = vst [vmem:[#allocation25_spill] sm:$0xff] %v8167_v23  ;;  %v8170_v27 = vadd.f32 %v4372_v50, %v4140_v60  ;;  %v4142_v29 = vadd.f32 %v4141_v14, %v8651_v49  ;;  %v8657_v50 = vld [vmem:[#allocation32_spill] sm:$0xff] }
 0x2bc   : > { %v4145_v56 = vpop.f32.mrf.mxu1  ;;  %v4378_v21 = vpop.f32.mrf.mxu0 }
 0x2bd   : > { %8650 = vst [vmem:[#allocation26_spill] sm:$0xff] %v8170_v27  ;;  %v8173_v7 = vadd.f32 %v4374_v59, %v4142_v29  ;;  %v4146_v10 = vadd.f32 %v4145_v56, %v8653_v0  ;;  %v8659_v59 = vld [vmem:[#allocation33_spill] sm:$0xff] }
 0x2be   : > { %v4147_v40 = vpop.f32.mrf.mxu1  ;;  %v4380_v52 = vpop.f32.mrf.mxu0 }
 0x2bf   : > { %8652 = vst [vmem:[#allocation27_spill] sm:$0xff] %v8173_v7  ;;  %v8176_v15 = vadd.f32 %v4378_v21, %v4146_v10  ;;  %v4148_v3 = vadd.f32 %v4147_v40, %v8655_v24  ;;  %v8660_v21 = vld [vmem:[#allocation34_spill] sm:$0xff] }
 0x2c0   : > { %v4149_v23 = vpop.f32.mrf.mxu1  ;;  %v4382_v30 = vpop.f32.mrf.mxu0 }
 0x2c1   : > { %8654 = vst [vmem:[#allocation28_spill] sm:$0xff] %v8176_v15  ;;  %v8179_v13 = vadd.f32 %v4380_v52, %v4148_v3  ;;  %v4150_v60 = vadd.f32 %v4149_v23, %v8657_v50  ;;  %v8661_v52 = vld [vmem:[#allocation35_spill] sm:$0xff] }
 0x2c2   : > { %v4151_v27 = vpop.f32.mrf.mxu1  ;;  %v4384_v14 = vpop.f32.mrf.mxu0 }
 0x2c3   : > { %8656 = vst [vmem:[#allocation29_spill] sm:$0xff] %v8179_v13  ;;  %v8182_v49 = vadd.f32 %v4382_v30, %v4150_v60  ;;  %v4152_v29 = vadd.f32 %v4151_v27, %v8659_v59  ;;  %v8662_v30 = vld [vmem:[#allocation36_spill] sm:$0xff] }
 0x2c4   : > { %v4155_v7 = vpop.f32.mrf.mxu1  ;;  %v4388_v56 = vpop.f32.mrf.mxu0 }
 0x2c5   : > { %8658 = vst [vmem:[#allocation30_spill] sm:$0xff] %v8182_v49  ;;  %v8185_v0 = vadd.f32 %v4384_v14, %v4152_v29  ;;  %v4156_v10 = vadd.f32 %v4155_v7, %v8660_v21  ;;  %v8664_v14 = vld [vmem:[#allocation37_spill] sm:$0xff] }
 0x2c6   : > { %v4157_v15 = vpop.f32.mrf.mxu1  ;;  %v4390_v40 = vpop.f32.mrf.mxu0 }
 0x2c7   : > { %v8188_v24 = vadd.f32 %v4388_v56, %v4156_v10  ;;  %v4158_v3 = vadd.f32 %v4157_v15, %v8661_v52 }
 0x2c8   : > { %v4159_v13 = vpop.f32.mrf.mxu1  ;;  %v4392_v23 = vpop.f32.mrf.mxu0 }
 0x2c9   : > { %v8191_v50 = vadd.f32 %v4390_v40, %v4158_v3  ;;  %v4160_v60 = vadd.f32 %v4159_v13, %v8662_v30 }
 0x2ca   : > { %v4161_v27 = vpop.f32.mrf.mxu1  ;;  %v4394_v59 = vpop.f32.mrf.mxu0 }
 0x2cb   : > { %v8194_v49 = vadd.f32 %v4392_v23, %v4160_v60  ;;  %v4162_v29 = vadd.f32 %v4161_v27, %v8664_v14  ;;  %v8665_v60 = vld [vmem:[#allocation38_spill] sm:$0xff] }
 0x2cc   : > { %v4431_v7 = vpop.f32.mrf.mxu1  ;;  %v4664_v21 = vpop.f32.mrf.mxu0 }
 0x2cd   : > { %8663 = vst [vmem:[#allocation31_spill] sm:$0xff] %v8194_v49  ;;  %v8197_v56 = vadd.f32 %v4394_v59, %v4162_v29  ;;  %v4432_v15 = vadd.f32 %v4431_v7, %v7946_v12 }
 0x2ce   : > { %v4433_v10 = vpop.f32.mrf.mxu1  ;;  %v4666_v40 = vpop.f32.mrf.mxu0 }
 0x2cf   : > { %v4665_v52 = vadd.f32 %v4664_v21, %v4432_v15  ;;  %v4434_v3 = vadd.f32 %v4433_v10, %v7949_v39 }
 0x2d0   : > { %v4435_v13 = vpop.f32.mrf.mxu1  ;;  %v4668_v30 = vpop.f32.mrf.mxu0 }
 0x2d1   : > { %4863 = vst [vmem:[%s6832_s30] sm:$0xff] %v4665_v52  ;;  %v4667_v23 = vadd.f32 %v4666_v40, %v4434_v3  ;;  %v4436_v27 = vadd.f32 %v4435_v13, %v8665_v60 }
 0x2d2   : > { %v4437_v14 = vpop.f32.mrf.mxu1  ;;  %v4670_v49 = vpop.f32.mrf.mxu0 }
 0x2d3   : > { %4864 = vst [vmem:[%s6832_s30 + $0x8] sm:$0xff] %v4667_v23  ;;  %v4669_v59 = vadd.f32 %v4668_v30, %v4436_v27  ;;  %v4438_v12 = vadd.f32 %v4437_v14, %v7955_v22 }
 0x2d4   : > { %v4441_v29 = vpop.f32.mrf.mxu1  ;;  %v4674_v7 = vpop.f32.mrf.mxu0 }
 0x2d5   : > { %4865 = vst [vmem:[%s6832_s30 + $0x10] sm:$0xff] %v4669_v59  ;;  %v4671_v21 = vadd.f32 %v4670_v49, %v4438_v12  ;;  %v4442_v39 = vadd.f32 %v4441_v29, %v7959_v36 }
 0x2d6   : > { %v4443_v15 = vpop.f32.mrf.mxu1  ;;  %v4676_v10 = vpop.f32.mrf.mxu0 }
 0x2d7   : > { %4866 = vst [vmem:[%s6832_s30 + $0x18] sm:$0xff] %v4671_v21  ;;  %v4675_v40 = vadd.f32 %v4674_v7, %v4442_v39  ;;  %v4444_v52 = vadd.f32 %v4443_v15, %v7962_v18 }
 0x2d8   : > { %v4445_v3 = vpop.f32.mrf.mxu1  ;;  %v4678_v13 = vpop.f32.mrf.mxu0 }
 0x2d9   : > { %4867 = vst [vmem:[%s6832_s30 + $0x20] sm:$0xff] %v4675_v40  ;;  %v4677_v30 = vadd.f32 %v4676_v10, %v4444_v52  ;;  %v4446_v22 = vadd.f32 %v4445_v3, %v7965_v26 }
 0x2da   : > { %v4447_v23 = vpop.f32.mrf.mxu1  ;;  %v4680_v60 = vpop.f32.mrf.mxu0 }
 0x2db   : > { %4868 = vst [vmem:[%s6832_s30 + $0x28] sm:$0xff] %v4677_v30  ;;  %v4679_v49 = vadd.f32 %v4678_v13, %v4446_v22  ;;  %v4448_v36 = vadd.f32 %v4447_v23, %v7968_v1 }
 0x2dc   : > { %v4451_v27 = vpop.f32.mrf.mxu1  ;;  %v4684_v14 = vpop.f32.mrf.mxu0 }
 0x2dd   : > { %4869 = vst [vmem:[%s6832_s30 + $0x30] sm:$0xff] %v4679_v49  ;;  %v4681_v59 = vadd.f32 %v4680_v60, %v4448_v36  ;;  %v4452_v18 = vadd.f32 %v4451_v27, %v7972_v35 }
 0x2de   : > { %v4453_v12 = vpop.f32.mrf.mxu1  ;;  %v4686_v29 = vpop.f32.mrf.mxu0 }
 0x2df   : > { %4870 = vst [vmem:[%s6832_s30 + $0x38] sm:$0xff] %v4681_v59  ;;  %v4685_v7 = vadd.f32 %v4684_v14, %v4452_v18  ;;  %v4454_v26 = vadd.f32 %v4453_v12, %v7975_v20 }
 0x2e0   : > { %v4455_v21 = vpop.f32.mrf.mxu1  ;;  %v4688_v39 = vpop.f32.mrf.mxu0 }
 0x2e1   : > { %4871 = vst [vmem:[%s6832_s30 + $0x40] sm:$0xff] %v4685_v7  ;;  %v4687_v15 = vadd.f32 %v4686_v29, %v4454_v26  ;;  %v4456_v1 = vadd.f32 %v4455_v21, %v7978_v34 }
 0x2e2   : > { %v4457_v10 = vpop.f32.mrf.mxu1  ;;  %v4690_v40 = vpop.f32.mrf.mxu0 }
 0x2e3   : > { %4872 = vst [vmem:[%s6832_s30 + $0x48] sm:$0xff] %v4687_v15  ;;  %v4689_v52 = vadd.f32 %v4688_v39, %v4456_v1  ;;  %v4458_v35 = vadd.f32 %v4457_v10, %v7981_v25 }
 0x2e4   : > { %v4461_v3 = vpop.f32.mrf.mxu1  ;;  %v4694_v13 = vpop.f32.mrf.mxu0 }
 0x2e5   : > { %4873 = vst [vmem:[%s6832_s30 + $0x50] sm:$0xff] %v4689_v52  ;;  %v4691_v30 = vadd.f32 %v4690_v40, %v4458_v35  ;;  %v4462_v20 = vadd.f32 %v4461_v3, %v7985_v55 }
 0x2e6   : > { %v4463_v22 = vpop.f32.mrf.mxu1  ;;  %v4696_v23 = vpop.f32.mrf.mxu0 }
 0x2e7   : > { %4874 = vst [vmem:[%s6832_s30 + $0x58] sm:$0xff] %v4691_v30  ;;  %v4695_v60 = vadd.f32 %v4694_v13, %v4462_v20  ;;  %v4464_v34 = vadd.f32 %v4463_v22, %v7988_v57 }
 0x2e8   : > { %v4465_v49 = vpop.f32.mrf.mxu1  ;;  %v4698_v36 = vpop.f32.mrf.mxu0 }
 0x2e9   : > { %4875 = vst [vmem:[%s6832_s30 + $0x60] sm:$0xff] %v4695_v60  ;;  %v4697_v27 = vadd.f32 %v4696_v23, %v4464_v34  ;;  %v4466_v25 = vadd.f32 %v4465_v49, %v7991_v54 }
 0x2ea   : > { %v4467_v14 = vpop.f32.mrf.mxu1  ;;  %v4700_v59 = vpop.f32.mrf.mxu0 }
 0x2eb   : > { %4876 = vst [vmem:[%s6832_s30 + $0x68] sm:$0xff] %v4697_v27  ;;  %v4699_v18 = vadd.f32 %v4698_v36, %v4466_v25  ;;  %v4468_v55 = vadd.f32 %v4467_v14, %v7994_v48 }
 0x2ec   : > { %v4471_v12 = vpop.f32.mrf.mxu1  ;;  %v4704_v29 = vpop.f32.mrf.mxu0 }
 0x2ed   : > { %4877 = vst [vmem:[%s6832_s30 + $0x70] sm:$0xff] %v4699_v18  ;;  %v4701_v7 = vadd.f32 %v4700_v59, %v4468_v55  ;;  %v4472_v57 = vadd.f32 %v4471_v12, %v7998_v37 }
 0x2ee   : > { %v4473_v26 = vpop.f32.mrf.mxu1  ;;  %v4706_v21 = vpop.f32.mrf.mxu0 }
 0x2ef   : > { %4878 = vst [vmem:[%s6832_s30 + $0x78] sm:$0xff] %v4701_v7  ;;  %v4705_v39 = vadd.f32 %v4704_v29, %v4472_v57  ;;  %v4474_v54 = vadd.f32 %v4473_v26, %v8001_v63 }
 0x2f0   : > { %v4475_v15 = vpop.f32.mrf.mxu1  ;;  %v4708_v1 = vpop.f32.mrf.mxu0 }
 0x2f1   : > { %4879 = vst [vmem:[%s6832_s30 + $0x80] sm:$0xff] %v4705_v39  ;;  %v4707_v10 = vadd.f32 %v4706_v21, %v4474_v54  ;;  %v4476_v48 = vadd.f32 %v4475_v15, %v8004_v16 }
 0x2f2   : > { %v4477_v40 = vpop.f32.mrf.mxu1  ;;  %v4710_v52 = vpop.f32.mrf.mxu0 }
 0x2f3   : > { %4880 = vst [vmem:[%s6832_s30 + $0x88] sm:$0xff] %v4707_v10  ;;  %v4709_v35 = vadd.f32 %v4708_v1, %v4476_v48  ;;  %v4478_v37 = vadd.f32 %v4477_v40, %v8007_v47 }
 0x2f4   : > { %v4481_v3 = vpop.f32.mrf.mxu1  ;;  %v4714_v13 = vpop.f32.mrf.mxu0 }
 0x2f5   : > { %4881 = vst [vmem:[%s6832_s30 + $0x90] sm:$0xff] %v4709_v35  ;;  %v4711_v30 = vadd.f32 %v4710_v52, %v4478_v37  ;;  %v4482_v63 = vadd.f32 %v4481_v3, %v8011_v41 }
 0x2f6   : > { %v4483_v20 = vpop.f32.mrf.mxu1  ;;  %v4716_v22 = vpop.f32.mrf.mxu0 }
 0x2f7   : > { %4882 = vst [vmem:[%s6832_s30 + $0x98] sm:$0xff] %v4711_v30  ;;  %v4715_v23 = vadd.f32 %v4714_v13, %v4482_v63  ;;  %v4484_v16 = vadd.f32 %v4483_v20, %v8014_v28 }
 0x2f8   : > { %v4485_v60 = vpop.f32.mrf.mxu1  ;;  %v4718_v34 = vpop.f32.mrf.mxu0 }
 0x2f9   : > { %4883 = vst [vmem:[%s6832_s30 + $0xa0] sm:$0xff] %v4715_v23  ;;  %v4717_v49 = vadd.f32 %v4716_v22, %v4484_v16  ;;  %v4486_v47 = vadd.f32 %v4485_v60, %v8017_v61 }
 0x2fa   : > { %v4487_v36 = vpop.f32.mrf.mxu1  ;;  %v4720_v27 = vpop.f32.mrf.mxu0 }
 0x2fb   : > { %4884 = vst [vmem:[%s6832_s30 + $0xa8] sm:$0xff] %v4717_v49  ;;  %v4719_v25 = vadd.f32 %v4718_v34, %v4486_v47  ;;  %v4488_v41 = vadd.f32 %v4487_v36, %v8020_v33 }
 0x2fc   : > { %v4491_v14 = vpop.f32.mrf.mxu1  ;;  %v4724_v59 = vpop.f32.mrf.mxu0 }
 0x2fd   : > { %4885 = vst [vmem:[%s6832_s30 + $0xb0] sm:$0xff] %v4719_v25  ;;  %v4721_v18 = vadd.f32 %v4720_v27, %v4488_v41  ;;  %v4492_v28 = vadd.f32 %v4491_v14, %v8024_v2 }
 0x2fe   : > { %v4493_v55 = vpop.f32.mrf.mxu1  ;;  %v4726_v12 = vpop.f32.mrf.mxu0 }
 0x2ff   : > { %4886 = vst [vmem:[%s6832_s30 + $0xb8] sm:$0xff] %v4721_v18  ;;  %v4725_v29 = vadd.f32 %v4724_v59, %v4492_v28  ;;  %v4494_v61 = vadd.f32 %v4493_v55, %v8027_v17 }
 0x300   : > { %v4495_v7 = vpop.f32.mrf.mxu1  ;;  %v4728_v57 = vpop.f32.mrf.mxu0 }
 0x301   : > { %4887 = vst [vmem:[%s6832_s30 + $0xc0] sm:$0xff] %v4725_v29  ;;  %v4727_v26 = vadd.f32 %v4726_v12, %v4494_v61  ;;  %v4496_v33 = vadd.f32 %v4495_v7, %v8030_v5 }
 0x302   : > { %v4497_v21 = vpop.f32.mrf.mxu1  ;;  %v4730_v39 = vpop.f32.mrf.mxu0 }
 0x303   : > { %4888 = vst [vmem:[%s6832_s30 + $0xc8] sm:$0xff] %v4727_v26  ;;  %v4729_v54 = vadd.f32 %v4728_v57, %v4496_v33  ;;  %v4498_v2 = vadd.f32 %v4497_v21, %v8033_v9 }
 0x304   : > { %v4501_v15 = vpop.f32.mrf.mxu1  ;;  %v4734_v1 = vpop.f32.mrf.mxu0 }
 0x305   : > { %4889 = vst [vmem:[%s6832_s30 + $0xd0] sm:$0xff] %v4729_v54  ;;  %v4731_v10 = vadd.f32 %v4730_v39, %v4498_v2  ;;  %v4502_v17 = vadd.f32 %v4501_v15, %v8037_v6 }
 0x306   : > { %v4503_v48 = vpop.f32.mrf.mxu1  ;;  %v4736_v40 = vpop.f32.mrf.mxu0 }
 0x307   : > { %4890 = vst [vmem:[%s6832_s30 + $0xd8] sm:$0xff] %v4731_v10  ;;  %v4735_v52 = vadd.f32 %v4734_v1, %v4502_v17  ;;  %v4504_v5 = vadd.f32 %v4503_v48, %v8040_v45 }
 0x308   : > { %v4505_v35 = vpop.f32.mrf.mxu1  ;;  %v4738_v37 = vpop.f32.mrf.mxu0 }
 0x309   : > { %4891 = vst [vmem:[%s6832_s30 + $0xe0] sm:$0xff] %v4735_v52  ;;  %v4737_v3 = vadd.f32 %v4736_v40, %v4504_v5  ;;  %v4506_v9 = vadd.f32 %v4505_v35, %v8043_v11 }
 0x30a   : > { %v4507_v13 = vpop.f32.mrf.mxu1  ;;  %v4740_v30 = vpop.f32.mrf.mxu0 }
 0x30b   : > { %4892 = vst [vmem:[%s6832_s30 + $0xe8] sm:$0xff] %v4737_v3  ;;  %v4739_v63 = vadd.f32 %v4738_v37, %v4506_v9  ;;  %v4508_v6 = vadd.f32 %v4507_v13, %v8046_v43 }
 0x30c   : > { %v4511_v20 = vpop.f32.mrf.mxu1  ;;  %v4744_v22 = vpop.f32.mrf.mxu0 }
 0x30d   : > { %4893 = vst [vmem:[%s6832_s30 + $0xf0] sm:$0xff] %v4739_v63  ;;  %v4741_v23 = vadd.f32 %v4740_v30, %v4508_v6  ;;  %v4512_v45 = vadd.f32 %v4511_v20, %v8050_v42 }
 0x30e   : > { %v4513_v16 = vpop.f32.mrf.mxu1  ;;  %v4746_v60 = vpop.f32.mrf.mxu0 }
 0x30f   : > { %4894 = vst [vmem:[%s6832_s30 + $0xf8] sm:$0xff] %v4741_v23  ;;  %v4745_v34 = vadd.f32 %v4744_v22, %v4512_v45  ;;  %v4514_v11 = vadd.f32 %v4513_v16, %v8053_v58  ;;  %v8669_v16 = vld [vmem:[#allocation42_spill] sm:$0xff] }
 0x310   : > { %v4515_v49 = vpop.f32.mrf.mxu1  ;;  %v4748_v47 = vpop.f32.mrf.mxu0 }
 0x311   : > { %4895 = vst [vmem:[%s6832_s30 + $0x100] sm:$0xff] %v4745_v34  ;;  %v4747_v36 = vadd.f32 %v4746_v60, %v4514_v11  ;;  %v4516_v43 = vadd.f32 %v4515_v49, %v8056_v31 }
 0x312   : > { %v4517_v27 = vpop.f32.mrf.mxu1  ;;  %v4750_v25 = vpop.f32.mrf.mxu0 }
 0x313   : > { %4896 = vst [vmem:[%s6832_s30 + $0x108] sm:$0xff] %v4747_v36  ;;  %v4749_v41 = vadd.f32 %v4748_v47, %v4516_v43  ;;  %v4518_v42 = vadd.f32 %v4517_v27, %v8059_v38  ;;  %v8670_v47 = vld [vmem:[#allocation5_spill] sm:$0xff] }
 0x314   : > { %v4521_v14 = vpop.f32.mrf.mxu1  ;;  %v4754_v59 = vpop.f32.mrf.mxu0 }
 0x315   : > { %4897 = vst [vmem:[%s6832_s30 + $0x110] sm:$0xff] %v4749_v41  ;;  %v4751_v18 = vadd.f32 %v4750_v25, %v4518_v42  ;;  %v4522_v58 = vadd.f32 %v4521_v14, %v8063_v46  ;;  %v8671_v41 = vld [vmem:[#allocation6_spill] sm:$0xff] }
 0x316   : > { %v4523_v28 = vpop.f32.mrf.mxu1  ;;  %v4756_v55 = vpop.f32.mrf.mxu0 }
 0x317   : > { %4898 = vst [vmem:[%s6832_s30 + $0x118] sm:$0xff] %v4751_v18  ;;  %v4755_v12 = vadd.f32 %v4754_v59, %v4522_v58  ;;  %v4524_v31 = vadd.f32 %v4523_v28, %v8066_v32  ;;  %v8672_v58 = vld [vmem:[#allocation7_spill] sm:$0xff] }
 0x318   : > { %v4525_v29 = vpop.f32.mrf.mxu1  ;;  %v4758_v61 = vpop.f32.mrf.mxu0 }
 0x319   : > { %4899 = vst [vmem:[%s6832_s30 + $0x120] sm:$0xff] %v4755_v12  ;;  %v4757_v7 = vadd.f32 %v4756_v55, %v4524_v31  ;;  %v4526_v38 = vadd.f32 %v4525_v29, %v8069_v53  ;;  %v8673_v29 = vld [vmem:[#allocation8_spill] sm:$0xff] }
 0x31a   : > { %v4527_v57 = vpop.f32.mrf.mxu1  ;;  %v4760_v26 = vpop.f32.mrf.mxu0 }
 0x31b   : > { %4900 = vst [vmem:[%s6832_s30 + $0x128] sm:$0xff] %v4757_v7  ;;  %v4759_v33 = vadd.f32 %v4758_v61, %v4526_v38  ;;  %v4528_v46 = vadd.f32 %v4527_v57, %v8072_v51 }
 0x31c   : > { %v4531_v21 = vpop.f32.mrf.mxu1  ;;  %v4764_v39 = vpop.f32.mrf.mxu0 }
 0x31d   : > { %4901 = vst [vmem:[%s6832_s30 + $0x130] sm:$0xff] %v4759_v33  ;;  %v4761_v54 = vadd.f32 %v4760_v26, %v4528_v46  ;;  %v4532_v32 = vadd.f32 %v4531_v21, %v8076_v4  ;;  %v8666_v4 = vld [vmem:[#allocation39_spill] sm:$0xff]  ;;  %v8674_v26 = vld [vmem:[#allocation9_spill] sm:$0xff] }
 0x31e   : > { %v4533_v2 = vpop.f32.mrf.mxu1  ;;  %v4766_v15 = vpop.f32.mrf.mxu0 }
 0x31f   : > { %4902 = vst [vmem:[%s6832_s30 + $0x138] sm:$0xff] %v4761_v54  ;;  %v4765_v1 = vadd.f32 %v4764_v39, %v4532_v32  ;;  %v4534_v53 = vadd.f32 %v4533_v2, %v8079_v19  ;;  %v8667_v19 = vld [vmem:[#allocation40_spill] sm:$0xff] }
 0x320   : > { %v4535_v10 = vpop.f32.mrf.mxu1  ;;  %v4768_v17 = vpop.f32.mrf.mxu0 }
 0x321   : > { %4903 = vst [vmem:[%s6832_s30 + $0x140] sm:$0xff] %v4765_v1  ;;  %v4767_v48 = vadd.f32 %v4766_v15, %v4534_v53  ;;  %v4536_v51 = vadd.f32 %v4535_v10, %v8082_v8  ;;  %v8668_v8 = vld [vmem:[#allocation41_spill] sm:$0xff]  ;;  %v8675_v1 = vld [vmem:[#allocation10_spill] sm:$0xff] }
 0x322   : > { %v4537_v40 = vpop.f32.mrf.mxu1  ;;  %v4770_v52 = vpop.f32.mrf.mxu0 }
 0x323   : > { %4904 = vst [vmem:[%s6832_s30 + $0x148] sm:$0xff] %v4767_v48  ;;  %v4769_v5 = vadd.f32 %v4768_v17, %v4536_v51  ;;  %v4538_v35 = vadd.f32 %v4537_v40, %v8666_v4  ;;  %v8676_v51 = vld [vmem:[#allocation11_spill] sm:$0xff] }
 0x324   : > { %v4541_v37 = vpop.f32.mrf.mxu1  ;;  %v4774_v3 = vpop.f32.mrf.mxu0 }
 0x325   : > { %4905 = vst [vmem:[%s6832_s30 + $0x150] sm:$0xff] %v4769_v5  ;;  %v4771_v9 = vadd.f32 %v4770_v52, %v4538_v35  ;;  %v4542_v13 = vadd.f32 %v4541_v37, %v8667_v19  ;;  %v8678_v19 = vld [vmem:[#allocation13_spill] sm:$0xff] }
 0x326   : > { %v4543_v30 = vpop.f32.mrf.mxu1  ;;  %v4776_v63 = vpop.f32.mrf.mxu0 }
 0x327   : > { %4906 = vst [vmem:[%s6832_s30 + $0x158] sm:$0xff] %v4771_v9  ;;  %v4775_v6 = vadd.f32 %v4774_v3, %v4542_v13  ;;  %v4544_v20 = vadd.f32 %v4543_v30, %v8668_v8  ;;  %v8679_v8 = vld [vmem:[#allocation14_spill] sm:$0xff] }
 0x328   : > { %v4545_v22 = vpop.f32.mrf.mxu1  ;;  %v4778_v23 = vpop.f32.mrf.mxu0 }
 0x329   : > { %4907 = vst [vmem:[%s6832_s30 + $0x160] sm:$0xff] %v4775_v6  ;;  %v4777_v45 = vadd.f32 %v4776_v63, %v4544_v20  ;;  %v4546_v60 = vadd.f32 %v4545_v22, %v8669_v16  ;;  %v8680_v16 = vld [vmem:[#allocation15_spill] sm:$0xff] }
 0x32a   : > { %v4547_v34 = vpop.f32.mrf.mxu1  ;;  %v4780_v11 = vpop.f32.mrf.mxu0 }
 0x32b   : > { %4908 = vst [vmem:[%s6832_s30 + $0x168] sm:$0xff] %v4777_v45  ;;  %v4779_v49 = vadd.f32 %v4778_v23, %v4546_v60  ;;  %v4548_v36 = vadd.f32 %v4547_v34, %v8670_v47 }
 0x32c   : > { %v4551_v43 = vpop.f32.mrf.mxu1  ;;  %v4784_v27 = vpop.f32.mrf.mxu0 }
 0x32d   : > { %4909 = vst [vmem:[%s6832_s30 + $0x170] sm:$0xff] %v4779_v49  ;;  %v4781_v25 = vadd.f32 %v4780_v11, %v4548_v36  ;;  %v4552_v42 = vadd.f32 %v4551_v43, %v8671_v41 }
 0x32e   : > { %v4553_v14 = vpop.f32.mrf.mxu1  ;;  %v4786_v59 = vpop.f32.mrf.mxu0 }
 0x32f   : > { %4910 = vst [vmem:[%s6832_s30 + $0x178] sm:$0xff] %v4781_v25  ;;  %v4785_v18 = vadd.f32 %v4784_v27, %v4552_v42  ;;  %v4554_v28 = vadd.f32 %v4553_v14, %v8672_v58  ;;  %v8681_v25 = vld [vmem:[#allocation16_spill] sm:$0xff] }
 0x330   : > { %v4555_v55 = vpop.f32.mrf.mxu1  ;;  %v4788_v12 = vpop.f32.mrf.mxu0 }
 0x331   : > { %4911 = vst [vmem:[%s6832_s30 + $0x180] sm:$0xff] %v4785_v18  ;;  %v4787_v31 = vadd.f32 %v4786_v59, %v4554_v28  ;;  %v4556_v61 = vadd.f32 %v4555_v55, %v8673_v29  ;;  %v8682_v18 = vld [vmem:[#allocation17_spill] sm:$0xff] }
 0x332   : > { %v4557_v7 = vpop.f32.mrf.mxu1  ;;  %v4790_v38 = vpop.f32.mrf.mxu0 }
 0x333   : > { %4912 = vst [vmem:[%s6832_s30 + $0x188] sm:$0xff] %v4787_v31  ;;  %v4789_v57 = vadd.f32 %v4788_v12, %v4556_v61  ;;  %v4558_v33 = vadd.f32 %v4557_v7, %v8674_v26 }
 0x334   : > { %v4561_v46 = vpop.f32.mrf.mxu1  ;;  %v4794_v21 = vpop.f32.mrf.mxu0 }
 0x335   : > { %4913 = vst [vmem:[%s6832_s30 + $0x190] sm:$0xff] %v4789_v57  ;;  %v4791_v39 = vadd.f32 %v4790_v38, %v4558_v33  ;;  %v4562_v54 = vadd.f32 %v4561_v46, %v8115_v62  ;;  %v8677_v62 = vld [vmem:[#allocation12_spill] sm:$0xff]  ;;  %v8684_v38 = vld [vmem:[#allocation19_spill] sm:$0xff] }
 0x336   : > { %v4563_v32 = vpop.f32.mrf.mxu1  ;;  %v4796_v2 = vpop.f32.mrf.mxu0 }
 0x337   : > { %4914 = vst [vmem:[%s6832_s30 + $0x198] sm:$0xff] %v4791_v39  ;;  %v4795_v15 = vadd.f32 %v4794_v21, %v4562_v54  ;;  %v4564_v53 = vadd.f32 %v4563_v32, %v8675_v1  ;;  %v8685_v21 = vld [vmem:[#allocation20_spill] sm:$0xff] }
 0x338   : > { %v4565_v10 = vpop.f32.mrf.mxu1  ;;  %v4798_v17 = vpop.f32.mrf.mxu0 }
 0x339   : > { %4915 = vst [vmem:[%s6832_s30 + $0x1a0] sm:$0xff] %v4795_v15  ;;  %v4797_v48 = vadd.f32 %v4796_v2, %v4564_v53  ;;  %v4566_v40 = vadd.f32 %v4565_v10, %v8676_v51  ;;  %v8686_v15 = vld [vmem:[#allocation21_spill] sm:$0xff] }
 0x33a   : > { %v4567_v52 = vpop.f32.mrf.mxu1  ;;  %v4800_v5 = vpop.f32.mrf.mxu0 }
 0x33b   : > { %4916 = vst [vmem:[%s6832_s30 + $0x1a8] sm:$0xff] %v4797_v48  ;;  %v4799_v4 = vadd.f32 %v4798_v17, %v4566_v40  ;;  %v4568_v35 = vadd.f32 %v4567_v52, %v8677_v62  ;;  %v8687_v48 = vld [vmem:[#allocation22_spill] sm:$0xff] }
 0x33c   : > { %v4571_v37 = vpop.f32.mrf.mxu1  ;;  %v4804_v3 = vpop.f32.mrf.mxu0 }
 0x33d   : > { %4917 = vst [vmem:[%s6832_s30 + $0x1b0] sm:$0xff] %v4799_v4  ;;  %v4801_v9 = vadd.f32 %v4800_v5, %v4568_v35  ;;  %v4572_v13 = vadd.f32 %v4571_v37, %v8678_v19  ;;  %v8688_v4 = vld [vmem:[#allocation23_spill] sm:$0xff] }
 0x33e   : > { %v4573_v30 = vpop.f32.mrf.mxu1  ;;  %v4806_v63 = vpop.f32.mrf.mxu0 }
 0x33f   : > { %4918 = vst [vmem:[%s6832_s30 + $0x1b8] sm:$0xff] %v4801_v9  ;;  %v4805_v6 = vadd.f32 %v4804_v3, %v4572_v13  ;;  %v4574_v20 = vadd.f32 %v4573_v30, %v8679_v8  ;;  %v8689_v9 = vld [vmem:[#allocation24_spill] sm:$0xff] }
 0x340   : > { %v4575_v22 = vpop.f32.mrf.mxu1  ;;  %v4808_v23 = vpop.f32.mrf.mxu0 }
 0x341   : > { %4919 = vst [vmem:[%s6832_s30 + $0x1c0] sm:$0xff] %v4805_v6  ;;  %v4807_v45 = vadd.f32 %v4806_v63, %v4574_v20  ;;  %v4576_v60 = vadd.f32 %v4575_v22, %v8680_v16  ;;  %v8690_v6 = vld [vmem:[#allocation25_spill] sm:$0xff] }
 0x342   : > { %v4577_v34 = vpop.f32.mrf.mxu1  ;;  %v4810_v11 = vpop.f32.mrf.mxu0 }
 0x343   : > { %4920 = vst [vmem:[%s6832_s30 + $0x1c8] sm:$0xff] %v4807_v45  ;;  %v4809_v49 = vadd.f32 %v4808_v23, %v4576_v60  ;;  %v4578_v47 = vadd.f32 %v4577_v34, %v8137_v44  ;;  %v8683_v44 = vld [vmem:[#allocation18_spill] sm:$0xff] }
 0x344   : > { %v4581_v36 = vpop.f32.mrf.mxu1  ;;  %v4814_v43 = vpop.f32.mrf.mxu0  ;;  %v8691_v45 = vld [vmem:[#allocation26_spill] sm:$0xff] }
 0x345   : > { %4921 = vst [vmem:[%s6832_s30 + $0x1d0] sm:$0xff] %v4809_v49  ;;  %v4811_v27 = vadd.f32 %v4810_v11, %v4578_v47  ;;  %v4582_v41 = vadd.f32 %v4581_v36, %v8681_v25  ;;  %v8692_v49 = vld [vmem:[#allocation27_spill] sm:$0xff]  ;;  %v8693_v25 = vld [vmem:[#allocation28_spill] sm:$0xff] }
 0x346   : > { %v4583_v42 = vpop.f32.mrf.mxu1  ;;  %v4816_v14 = vpop.f32.mrf.mxu0 }
 0x347   : > { %4922 = vst [vmem:[%s6832_s30 + $0x1d8] sm:$0xff] %v4811_v27  ;;  %v4815_v59 = vadd.f32 %v4814_v43, %v4582_v41  ;;  %v4584_v58 = vadd.f32 %v4583_v42, %v8682_v18  ;;  %v8694_v18 = vld [vmem:[#allocation29_spill] sm:$0xff] }
 0x348   : > { %v4585_v28 = vpop.f32.mrf.mxu1  ;;  %v4818_v55 = vpop.f32.mrf.mxu0 }
 0x349   : > { %4923 = vst [vmem:[%s6832_s30 + $0x1e0] sm:$0xff] %v4815_v59  ;;  %v4817_v12 = vadd.f32 %v4816_v14, %v4584_v58  ;;  %v4586_v31 = vadd.f32 %v4585_v28, %v8683_v44  ;;  %v8695_v44 = vld [vmem:[#allocation30_spill] sm:$0xff] }
 0x34a   : > { %v4587_v29 = vpop.f32.mrf.mxu1  ;;  %v4820_v61 = vpop.f32.mrf.mxu0 }
 0x34b   : > { %4924 = vst [vmem:[%s6832_s30 + $0x1e8] sm:$0xff] %v4817_v12  ;;  %v4819_v7 = vadd.f32 %v4818_v55, %v4586_v31  ;;  %v4588_v57 = vadd.f32 %v4587_v29, %v8684_v38 }
 0x34c   : > { %v4591_v26 = vpop.f32.mrf.mxu1  ;;  %v4824_v33 = vpop.f32.mrf.mxu0 }
 0x34d   : > { %4925 = vst [vmem:[%s6832_s30 + $0x1f0] sm:$0xff] %v4819_v7  ;;  %v4821_v46 = vadd.f32 %v4820_v61, %v4588_v57  ;;  %v4592_v39 = vadd.f32 %v4591_v26, %v8685_v21 }
 0x34e   : > { %v4593_v54 = vpop.f32.mrf.mxu1  ;;  %v4826_v32 = vpop.f32.mrf.mxu0 }
 0x34f   : > { %4926 = vst [vmem:[%s6832_s30 + $0x1f8] sm:$0xff] %v4821_v46  ;;  %v4825_v2 = vadd.f32 %v4824_v33, %v4592_v39  ;;  %v4594_v1 = vadd.f32 %v4593_v54, %v8686_v15 }
 0x350   : > { %v4595_v53 = vpop.f32.mrf.mxu1  ;;  %v4828_v10 = vpop.f32.mrf.mxu0 }
 0x351   : > { %4927 = vst [vmem:[%s6832_s30 + $0x200] sm:$0xff] %v4825_v2  ;;  %v4827_v17 = vadd.f32 %v4826_v32, %v4594_v1  ;;  %v4596_v51 = vadd.f32 %v4595_v53, %v8687_v48 }
 0x352   : > { %v4597_v40 = vpop.f32.mrf.mxu1  ;;  %v4830_v52 = vpop.f32.mrf.mxu0 }
 0x353   : > { %4928 = vst [vmem:[%s6832_s30 + $0x208] sm:$0xff] %v4827_v17  ;;  %v4829_v5 = vadd.f32 %v4828_v10, %v4596_v51  ;;  %v4598_v62 = vadd.f32 %v4597_v40, %v8688_v4  ;;  %v4972_v40 = vld [vmem:[%s6832_s30 + $0x10] sm:$0xff] (%p6515_p9)  ;;  %v4978_v4 = vld [vmem:[%s6832_s30 + $0x28] sm:$0xff] (%p6515_p9) }
 0x354   : > { %v4601_v35 = vpop.f32.mrf.mxu1  ;;  %v4834_v37 = vpop.f32.mrf.mxu0  ;;  %4973 = vst [vmem:[%s8378_s23 + $0x20] sm:$0xff] (%p6515_p9), %v4972_v40  ;;  %4979 = vst [vmem:[%s8378_s23 + $0x48] sm:$0xff] (%p6515_p9), %v4978_v4 }
 0x355   : > { %4929 = vst [vmem:[%s6832_s30 + $0x210] sm:$0xff] %v4829_v5  ;;  %v4831_v3 = vadd.f32 %v4830_v52, %v4598_v62  ;;  %v4602_v19 = vadd.f32 %v4601_v35, %v8689_v9  ;;  %v4974_v52 = vld [vmem:[%s6832_s30 + $0x18] sm:$0xff] (%p6515_p9)  ;;  %v4976_v5 = vld [vmem:[%s6832_s30 + $0x20] sm:$0xff] (%p6515_p9)  ;;  %v4980_v62 = vld [vmem:[%s6832_s30 + $0x30] sm:$0xff] (%p6515_p9) }
 0x356   : > { %v4603_v13 = vpop.f32.mrf.mxu1  ;;  %v4836_v30 = vpop.f32.mrf.mxu0  ;;  %v4982_v35 = vld [vmem:[%s6832_s30 + $0x38] sm:$0xff] (%p6515_p9)  ;;  %v4988_v9 = vld [vmem:[%s6832_s30 + $0x50] sm:$0xff] (%p6515_p9)  ;;  %4975 = vst [vmem:[%s8378_s23 + $0x28] sm:$0xff] (%p6515_p9), %v4974_v52  ;;  %4977 = vst [vmem:[%s8378_s23 + $0x40] sm:$0xff] (%p6515_p9), %v4976_v5 }
 0x357   : > { %4930 = vst [vmem:[%s6832_s30 + $0x218] sm:$0xff] %v4831_v3  ;;  %v4835_v63 = vadd.f32 %v4834_v37, %v4602_v19  ;;  %v4604_v8 = vadd.f32 %v4603_v13, %v8690_v6  ;;  %v4984_v37 = vld [vmem:[%s6832_s30 + $0x40] sm:$0xff] (%p6515_p9)  ;;  %v4986_v3 = vld [vmem:[%s6832_s30 + $0x48] sm:$0xff] (%p6515_p9)  ;;  %v4990_v19 = vld [vmem:[%s6832_s30 + $0x58] sm:$0xff] (%p6515_p9) }
 0x358   : > { %v4605_v20 = vpop.f32.mrf.mxu1  ;;  %v4838_v22 = vpop.f32.mrf.mxu0  ;;  %v4992_v13 = vld [vmem:[%s6832_s30 + $0x60] sm:$0xff] (%p6515_p9)  ;;  %4981 = vst [vmem:[%s8378_s23 + $0x60] sm:$0xff] (%p6515_p9), %v4980_v62  ;;  %4983 = vst [vmem:[%s8378_s23 + $0x68] sm:$0xff] (%p6515_p9), %v4982_v35  ;;  %v4998_v6 = vld [vmem:[%s6832_s30 + $0x78] sm:$0xff] (%p6515_p9) }
 0x359   : > { %4931 = vst [vmem:[%s6832_s30 + $0x220] sm:$0xff] %v4835_v63  ;;  %v4837_v23 = vadd.f32 %v4836_v30, %v4604_v8  ;;  %v4606_v16 = vadd.f32 %v4605_v20, %v8691_v45  ;;  %v4994_v30 = vld [vmem:[%s6832_s30 + $0x68] sm:$0xff] (%p6515_p9)  ;;  %v4996_v63 = vld [vmem:[%s6832_s30 + $0x70] sm:$0xff] (%p6515_p9)  ;;  %4985 = vst [vmem:[%s8378_s23 + $0x80] sm:$0xff] (%p6515_p9), %v4984_v37 }
 0x35a   : > { %v4607_v60 = vpop.f32.mrf.mxu1  ;;  %v4840_v34 = vpop.f32.mrf.mxu0  ;;  %4987 = vst [vmem:[%s8378_s23 + $0x88] sm:$0xff] (%p6515_p9), %v4986_v3  ;;  %4989 = vst [vmem:[%s8378_s23 + $0xa0] sm:$0xff] (%p6515_p9), %v4988_v9  ;;  %v5000_v8 = vld [vmem:[%s6832_s30 + $0x80] sm:$0xff] (%p6515_p9)  ;;  %v5002_v20 = vld [vmem:[%s6832_s30 + $0x88] sm:$0xff] (%p6515_p9) }
 0x35b   : > { %4932 = vst [vmem:[%s6832_s30 + $0x228] sm:$0xff] %v4837_v23  ;;  %v4839_v11 = vadd.f32 %v4838_v22, %v4606_v16  ;;  %v4608_v47 = vadd.f32 %v4607_v60, %v8692_v49  ;;  %4991 = vst [vmem:[%s8378_s23 + $0xa8] sm:$0xff] (%p6515_p9), %v4990_v19  ;;  %v5004_v22 = vld [vmem:[%s6832_s30 + $0x90] sm:$0xff] (%p6515_p9)  ;;  %v5006_v23 = vld [vmem:[%s6832_s30 + $0x98] sm:$0xff] (%p6515_p9) }
 0x35c   : > { %v4611_v36 = vpop.f32.mrf.mxu1  ;;  %v4844_v43 = vpop.f32.mrf.mxu0  ;;  %4993 = vst [vmem:[%s8378_s23 + $0xc0] sm:$0xff] (%p6515_p9), %v4992_v13  ;;  %4995 = vst [vmem:[%s8378_s23 + $0xc8] sm:$0xff] (%p6515_p9), %v4994_v30  ;;  %v5008_v45 = vld [vmem:[%s6832_s30 + $0xa0] sm:$0xff] (%p6515_p9)  ;;  %v5010_v16 = vld [vmem:[%s6832_s30 + $0xa8] sm:$0xff] (%p6515_p9) }
 0x35d   : > { %4933 = vst [vmem:[%s6832_s30 + $0x230] sm:$0xff] %v4839_v11  ;;  %v4841_v27 = vadd.f32 %v4840_v34, %v4608_v47  ;;  %v4612_v41 = vadd.f32 %v4611_v36, %v8693_v25  ;;  %4997 = vst [vmem:[%s8378_s23 + $0xe0] sm:$0xff] (%p6515_p9), %v4996_v63  ;;  %v5012_v60 = vld [vmem:[%s6832_s30 + $0xb0] sm:$0xff] (%p6515_p9)  ;;  %v5014_v34 = vld [vmem:[%s6832_s30 + $0xb8] sm:$0xff] (%p6515_p9) }
 0x35e   : > { %v4613_v42 = vpop.f32.mrf.mxu1  ;;  %v4846_v14 = vpop.f32.mrf.mxu0  ;;  %4999 = vst [vmem:[%s8378_s23 + $0xe8] sm:$0xff] (%p6515_p9), %v4998_v6  ;;  %5001 = vst [vmem:[%s8378_s23 + $0x100] sm:$0xff] (%p6515_p9), %v5000_v8  ;;  %v5016_v11 = vld [vmem:[%s6832_s30 + $0xc0] sm:$0xff] (%p6515_p9)  ;;  %v5018_v49 = vld [vmem:[%s6832_s30 + $0xc8] sm:$0xff] (%p6515_p9) }
 0x35f   : > { %4934 = vst [vmem:[%s6832_s30 + $0x238] sm:$0xff] %v4841_v27  ;;  %v4845_v59 = vadd.f32 %v4844_v43, %v4612_v41  ;;  %v4614_v58 = vadd.f32 %v4613_v42, %v8694_v18  ;;  %5003 = vst [vmem:[%s8378_s23 + $0x108] sm:$0xff] (%p6515_p9), %v5002_v20  ;;  %v5020_v47 = vld [vmem:[%s6832_s30 + $0xd0] sm:$0xff] (%p6515_p9)  ;;  %v5022_v36 = vld [vmem:[%s6832_s30 + $0xd8] sm:$0xff] (%p6515_p9) }
 0x360   : > { %v4615_v28 = vpop.f32.mrf.mxu1  ;;  %v4848_v55 = vpop.f32.mrf.mxu0  ;;  %5005 = vst [vmem:[%s8378_s23 + $0x120] sm:$0xff] (%p6515_p9), %v5004_v22  ;;  %5007 = vst [vmem:[%s8378_s23 + $0x128] sm:$0xff] (%p6515_p9), %v5006_v23  ;;  %v5024_v43 = vld [vmem:[%s6832_s30 + $0xe0] sm:$0xff] (%p6515_p9)  ;;  %v5026_v27 = vld [vmem:[%s6832_s30 + $0xe8] sm:$0xff] (%p6515_p9) }
 0x361   : > { %4935 = vst [vmem:[%s6832_s30 + $0x240] sm:$0xff] %v4845_v59  ;;  %v4847_v12 = vadd.f32 %v4846_v14, %v4614_v58  ;;  %v4616_v31 = vadd.f32 %v4615_v28, %v8695_v44  ;;  %5009 = vst [vmem:[%s8378_s23 + $0x140] sm:$0xff] (%p6515_p9), %v5008_v45  ;;  %v5028_v25 = vld [vmem:[%s6832_s30 + $0xf0] sm:$0xff] (%p6515_p9)  ;;  %v5030_v41 = vld [vmem:[%s6832_s30 + $0xf8] sm:$0xff] (%p6515_p9) }
 0x362   : > { %v4617_v29 = vpop.f32.mrf.mxu1  ;;  %v4850_v61 = vpop.f32.mrf.mxu0  ;;  %5011 = vst [vmem:[%s8378_s23 + $0x148] sm:$0xff] (%p6515_p9), %v5010_v16  ;;  %5013 = vst [vmem:[%s8378_s23 + $0x160] sm:$0xff] (%p6515_p9), %v5012_v60  ;;  %v5032_v42 = vld [vmem:[%s6832_s30 + $0x100] sm:$0xff] (%p6515_p9)  ;;  %v5034_v14 = vld [vmem:[%s6832_s30 + $0x108] sm:$0xff] (%p6515_p9) }
 0x363   : > { %4936 = vst [vmem:[%s6832_s30 + $0x248] sm:$0xff] %v4847_v12  ;;  %v4849_v7 = vadd.f32 %v4848_v55, %v4616_v31  ;;  %v4618_v38 = vadd.f32 %v4617_v29, %v8185_v0  ;;  %v8696_v0 = vld [vmem:[#allocation31_spill] sm:$0xff]  ;;  %5015 = vst [vmem:[%s8378_s23 + $0x168] sm:$0xff] (%p6515_p9), %v5014_v34  ;;  %v5038_v18 = vld [vmem:[%s6832_s30 + $0x118] sm:$0xff] (%p6515_p9) }
 0x364   : > { %v4621_v57 = vpop.f32.mrf.mxu1  ;;  %v4854_v26 = vpop.f32.mrf.mxu0  ;;  %5017 = vst [vmem:[%s8378_s23 + $0x180] sm:$0xff] (%p6515_p9), %v5016_v11  ;;  %5019 = vst [vmem:[%s8378_s23 + $0x188] sm:$0xff] (%p6515_p9), %v5018_v49  ;;  %v5036_v59 = vld [vmem:[%s6832_s30 + $0x110] sm:$0xff] (%p6515_p9)  ;;  %v5040_v58 = vld [vmem:[%s6832_s30 + $0x120] sm:$0xff] (%p6515_p9) }
 0x365   : > { %4937 = vst [vmem:[%s6832_s30 + $0x250] sm:$0xff] %v4849_v7  ;;  %v4851_v33 = vadd.f32 %v4850_v61, %v4618_v38  ;;  %v4622_v46 = vadd.f32 %v4621_v57, %v8188_v24  ;;  %5021 = vst [vmem:[%s8378_s23 + $0x1a0] sm:$0xff] (%p6515_p9), %v5020_v47  ;;  %v5042_v28 = vld [vmem:[%s6832_s30 + $0x128] sm:$0xff] (%p6515_p9)  ;;  %v5044_v55 = vld [vmem:[%s6832_s30 + $0x130] sm:$0xff] (%p6515_p9) }
 0x366   : > { %v4623_v21 = vpop.f32.mrf.mxu1  ;;  %v4856_v39 = vpop.f32.mrf.mxu0  ;;  %5023 = vst [vmem:[%s8378_s23 + $0x1a8] sm:$0xff] (%p6515_p9), %v5022_v36  ;;  %5025 = vst [vmem:[%s8378_s23 + $0x1c0] sm:$0xff] (%p6515_p9), %v5024_v43  ;;  %v5046_v12 = vld [vmem:[%s6832_s30 + $0x138] sm:$0xff] (%p6515_p9)  ;;  %v5048_v44 = vld [vmem:[%s6832_s30 + $0x140] sm:$0xff] (%p6515_p9) }
 0x367   : > { %4938 = vst [vmem:[%s6832_s30 + $0x258] sm:$0xff] %v4851_v33  ;;  %v4855_v54 = vadd.f32 %v4854_v26, %v4622_v46  ;;  %v4624_v32 = vadd.f32 %v4623_v21, %v8191_v50  ;;  %v4968_v50 = vld [vmem:[%s6832_s30] sm:$0xff] (%p6515_p9)  ;;  %5027 = vst [vmem:[%s8378_s23 + $0x1c8] sm:$0xff] (%p6515_p9), %v5026_v27  ;;  %v5050_v31 = vld [vmem:[%s6832_s30 + $0x148] sm:$0xff] (%p6515_p9) }
 0x368   : > { %v4625_v2 = vpop.f32.mrf.mxu1  ;;  %v4858_v15 = vpop.f32.mrf.mxu0  ;;  %4969 = vst [vmem:[%s8378_s23] sm:$0xff] (%p6515_p9), %v4968_v50  ;;  %5029 = vst [vmem:[%s8378_s23 + $0x1e0] sm:$0xff] (%p6515_p9), %v5028_v25  ;;  %v5052_v29 = vld [vmem:[%s6832_s30 + $0x150] sm:$0xff] (%p6515_p9)  ;;  %v5054_v61 = vld [vmem:[%s6832_s30 + $0x158] sm:$0xff] (%p6515_p9) }
 0x369   : > { %4939 = vst [vmem:[%s6832_s30 + $0x260] sm:$0xff] %v4855_v54  ;;  %v4857_v1 = vadd.f32 %v4856_v39, %v4624_v32  ;;  %v4626_v53 = vadd.f32 %v4625_v2, %v8696_v0  ;;  %5031 = vst [vmem:[%s8378_s23 + $0x1e8] sm:$0xff] (%p6515_p9), %v5030_v41  ;;  %v5056_v7 = vld [vmem:[%s6832_s30 + $0x160] sm:$0xff] (%p6515_p9)  ;;  %v5058_v38 = vld [vmem:[%s6832_s30 + $0x168] sm:$0xff] (%p6515_p9) }
 0x36a   : > { %v4627_v10 = vpop.f32.mrf.mxu1  ;;  %v4860_v24 = vpop.f32.mrf.mxu0  ;;  %5033 = vst [vmem:[%s8378_s23 + $0x200] sm:$0xff] (%p6515_p9), %v5032_v42  ;;  %5035 = vst [vmem:[%s8378_s23 + $0x208] sm:$0xff] (%p6515_p9), %v5034_v14  ;;  %v5060_v57 = vld [vmem:[%s6832_s30 + $0x170] sm:$0xff] (%p6515_p9)  ;;  %v5062_v26 = vld [vmem:[%s6832_s30 + $0x178] sm:$0xff] (%p6515_p9) }
 0x36b   : > { %4940 = vst [vmem:[%s6832_s30 + $0x268] sm:$0xff] %v4857_v1  ;;  %v4859_v17 = vadd.f32 %v4858_v15, %v4626_v53  ;;  %v4628_v48 = vadd.f32 %v4627_v10, %v8197_v56  ;;  %4949 = sbr.rel (!%p6515_p9) target bundleno = 900 (0x384), region = 93  ;;  %v4970_v56 = vld [vmem:[%s6832_s30 + $0x8] sm:$0xff] (%p6515_p9)  ;;  %5037 = vst [vmem:[%s8378_s23 + $0x220] sm:$0xff] (%p6515_p9), %v5036_v59  ;;  %v5064_v33 = vld [vmem:[%s6832_s30 + $0x180] sm:$0xff] (%p6515_p9) }
 0x36c   : > { %4971 = vst [vmem:[%s8378_s23 + $0x8] sm:$0xff] (%p6515_p9), %v4970_v56  ;;  %5039 = vst [vmem:[%s8378_s23 + $0x228] sm:$0xff] (%p6515_p9), %v5038_v18  ;;  %v5066_v46 = vld [vmem:[%s6832_s30 + $0x188] sm:$0xff] (%p6515_p9)  ;;  %v5068_v21 = vld [vmem:[%s6832_s30 + $0x190] sm:$0xff] (%p6515_p9) }
 0x36d   : > { %4941 = vst [vmem:[%s6832_s30 + $0x270] sm:$0xff] %v4859_v17  ;;  %v4861_v51 = vadd.f32 %v4860_v24, %v4628_v48  ;;  %5041 = vst [vmem:[%s8378_s23 + $0x240] sm:$0xff] (%p6515_p9), %v5040_v58  ;;  %v5070_v39 = vld [vmem:[%s6832_s30 + $0x198] sm:$0xff] (%p6515_p9)  ;;  %v5072_v54 = vld [vmem:[%s6832_s30 + $0x1a0] sm:$0xff] (%p6515_p9) }
 0x36e   : > { %5043 = vst [vmem:[%s8378_s23 + $0x248] sm:$0xff] (%p6515_p9), %v5042_v28  ;;  %5045 = vst [vmem:[%s8378_s23 + $0x260] sm:$0xff] (%p6515_p9), %v5044_v55  ;;  %v5074_v32 = vld [vmem:[%s6832_s30 + $0x1a8] sm:$0xff] (%p6515_p9)  ;;  %v5076_v2 = vld [vmem:[%s6832_s30 + $0x1b0] sm:$0xff] (%p6515_p9) }
 0x36f   : > { %4942 = vst [vmem:[%s6832_s30 + $0x278] sm:$0xff] %v4861_v51  ;;  %5047 = vst [vmem:[%s8378_s23 + $0x268] sm:$0xff] (%p6515_p9), %v5046_v12  ;;  %v5078_v15 = vld [vmem:[%s6832_s30 + $0x1b8] sm:$0xff] (%p6515_p9)  ;;  %v5080_v1 = vld [vmem:[%s6832_s30 + $0x1c0] sm:$0xff] (%p6515_p9) }
 0x370   : > { %5049 = vst [vmem:[%s8378_s23 + $0x280] sm:$0xff] %v5048_v44  ;;  %5051 = vst [vmem:[%s8378_s23 + $0x288] sm:$0xff] %v5050_v31  ;;  %v5082_v0 = vld [vmem:[%s6832_s30 + $0x1c8] sm:$0xff]  ;;  %v5084_v53 = vld [vmem:[%s6832_s30 + $0x1d0] sm:$0xff] }
 0x371   : > { %5053 = vst [vmem:[%s8378_s23 + $0x2a0] sm:$0xff] %v5052_v29  ;;  %5055 = vst [vmem:[%s8378_s23 + $0x2a8] sm:$0xff] %v5054_v61  ;;  %v5086_v10 = vld [vmem:[%s6832_s30 + $0x1d8] sm:$0xff]  ;;  %v5088_v17 = vld [vmem:[%s6832_s30 + $0x1e0] sm:$0xff] }
 0x372   : > { %5057 = vst [vmem:[%s8378_s23 + $0x2c0] sm:$0xff] %v5056_v7  ;;  %5059 = vst [vmem:[%s8378_s23 + $0x2c8] sm:$0xff] %v5058_v38  ;;  %v5090_v48 = vld [vmem:[%s6832_s30 + $0x1e8] sm:$0xff]  ;;  %v5092_v24 = vld [vmem:[%s6832_s30 + $0x1f0] sm:$0xff] }
 0x373   : > { %5061 = vst [vmem:[%s8378_s23 + $0x2e0] sm:$0xff] %v5060_v57  ;;  %5063 = vst [vmem:[%s8378_s23 + $0x2e8] sm:$0xff] %v5062_v26  ;;  %v5094_v51 = vld [vmem:[%s6832_s30 + $0x1f8] sm:$0xff]  ;;  %v5096_v50 = vld [vmem:[%s6832_s30 + $0x200] sm:$0xff] }
 0x374   : > { %5065 = vst [vmem:[%s8378_s23 + $0x300] sm:$0xff] %v5064_v33  ;;  %5067 = vst [vmem:[%s8378_s23 + $0x308] sm:$0xff] %v5066_v46  ;;  %v5098_v56 = vld [vmem:[%s6832_s30 + $0x208] sm:$0xff]  ;;  %v5100_v40 = vld [vmem:[%s6832_s30 + $0x210] sm:$0xff] }
 0x375   : > { %5069 = vst [vmem:[%s8378_s23 + $0x320] sm:$0xff] %v5068_v21  ;;  %5071 = vst [vmem:[%s8378_s23 + $0x328] sm:$0xff] %v5070_v39  ;;  %v5102_v52 = vld [vmem:[%s6832_s30 + $0x218] sm:$0xff]  ;;  %v5104_v5 = vld [vmem:[%s6832_s30 + $0x220] sm:$0xff] }
 0x376   : > { %5073 = vst [vmem:[%s8378_s23 + $0x340] sm:$0xff] %v5072_v54  ;;  %5075 = vst [vmem:[%s8378_s23 + $0x348] sm:$0xff] %v5074_v32  ;;  %v5106_v4 = vld [vmem:[%s6832_s30 + $0x228] sm:$0xff]  ;;  %v5108_v62 = vld [vmem:[%s6832_s30 + $0x230] sm:$0xff] }
 0x377   : > { %5077 = vst [vmem:[%s8378_s23 + $0x360] sm:$0xff] %v5076_v2  ;;  %5079 = vst [vmem:[%s8378_s23 + $0x368] sm:$0xff] %v5078_v15  ;;  %v5110_v35 = vld [vmem:[%s6832_s30 + $0x238] sm:$0xff]  ;;  %v5112_v37 = vld [vmem:[%s6832_s30 + $0x240] sm:$0xff] }
 0x378   : > { %5081 = vst [vmem:[%s8378_s23 + $0x380] sm:$0xff] %v5080_v1  ;;  %5083 = vst [vmem:[%s8378_s23 + $0x388] sm:$0xff] %v5082_v0  ;;  %v5114_v3 = vld [vmem:[%s6832_s30 + $0x248] sm:$0xff]  ;;  %v5116_v9 = vld [vmem:[%s6832_s30 + $0x250] sm:$0xff] }
 0x379   : > { %5085 = vst [vmem:[%s8378_s23 + $0x3a0] sm:$0xff] %v5084_v53  ;;  %5087 = vst [vmem:[%s8378_s23 + $0x3a8] sm:$0xff] %v5086_v10  ;;  %v5118_v19 = vld [vmem:[%s6832_s30 + $0x258] sm:$0xff]  ;;  %v5120_v13 = vld [vmem:[%s6832_s30 + $0x260] sm:$0xff] }
 0x37a   : > { %5089 = vst [vmem:[%s8378_s23 + $0x3c0] sm:$0xff] %v5088_v17  ;;  %5091 = vst [vmem:[%s8378_s23 + $0x3c8] sm:$0xff] %v5090_v48  ;;  %v5122_v30 = vld [vmem:[%s6832_s30 + $0x268] sm:$0xff]  ;;  %v5124_v63 = vld [vmem:[%s6832_s30 + $0x270] sm:$0xff] }
 0x37b   : > { %5093 = vst [vmem:[%s8378_s23 + $0x3e0] sm:$0xff] %v5092_v24  ;;  %5095 = vst [vmem:[%s8378_s23 + $0x3e8] sm:$0xff] %v5094_v51  ;;  %v5126_v6 = vld [vmem:[%s6832_s30 + $0x278] sm:$0xff] }
 0x37c   : > { %5097 = vst [vmem:[%s8378_s23 + $0x400] sm:$0xff] %v5096_v50  ;;  %5099 = vst [vmem:[%s8378_s23 + $0x408] sm:$0xff] %v5098_v56 }
 0x37d   : > { %5101 = vst [vmem:[%s8378_s23 + $0x420] sm:$0xff] %v5100_v40  ;;  %5103 = vst [vmem:[%s8378_s23 + $0x428] sm:$0xff] %v5102_v52 }
 0x37e   : > { %5105 = vst [vmem:[%s8378_s23 + $0x440] sm:$0xff] %v5104_v5  ;;  %5107 = vst [vmem:[%s8378_s23 + $0x448] sm:$0xff] %v5106_v4 }
 0x37f   : > { %5109 = vst [vmem:[%s8378_s23 + $0x460] sm:$0xff] %v5108_v62  ;;  %5111 = vst [vmem:[%s8378_s23 + $0x468] sm:$0xff] %v5110_v35 }
 0x380   : > { %5113 = vst [vmem:[%s8378_s23 + $0x480] sm:$0xff] %v5112_v37  ;;  %5115 = vst [vmem:[%s8378_s23 + $0x488] sm:$0xff] %v5114_v3 }
 0x381   : > { %5117 = vst [vmem:[%s8378_s23 + $0x4a0] sm:$0xff] %v5116_v9  ;;  %5119 = vst [vmem:[%s8378_s23 + $0x4a8] sm:$0xff] %v5118_v19 }
 0x382   : > { %5121 = vst [vmem:[%s8378_s23 + $0x4c0] sm:$0xff] %v5120_v13  ;;  %5123 = vst [vmem:[%s8378_s23 + $0x4c8] sm:$0xff] %v5122_v30 }
 0x383   : > { %5125 = vst [vmem:[%s8378_s23 + $0x4e0] sm:$0xff] %v5124_v63  ;;  %5127 = vst [vmem:[%s8378_s23 + $0x4e8] sm:$0xff] %v5126_v6 }
 0x384 PF: > { %s15_s26 = sadd.s32 1, %s6409_s26   ;;  %s8697_s18 = smov %s6381_s19 }
 0x385   : > { %p12_p3 = scmp.ge.s32.totalorder %s15_s26, 6   ;;  %s8698_s19 = smov %s6520_s12 }
 0x386   : > { %s8699_s20 = smov %s6389_s21  ;;  %s8700_s21 = smov %s6509_s8 }
 0x387   : > { %s8701_s22 = smov %s6401_s24  ;;  %s8702_s23 = smov %s6405_s25 }
 0x388   : > { %s8703_s24 = smov %s8706_s28  ;;  %s8704_s25 = smov %s8710_s29 }
 0x389   :  { %14 = sbr.rel (!%p12_p3) target bundleno = 7 (0x7), region = 163 }

</bundles_post_ra>
